<compile_context>
chip_gen: v6e
topology: v6e:2x2x1
jax: 0.10.0
libtpu: 0.0.40
codegen_flags: <defaults>
</compile_context>

<pallas_src>
import jax
import jax.numpy as jnp
from jax import lax
from jax.experimental import pallas as pl
from jax.experimental.pallas import tpu as pltpu

# ----------------------------- model sizes -----------------------------
B = 2               # batch
L = 8               # sequence length
EMBED = 32          # args.embeds_dim
HID = 32            # args.hidden_size
LINEAR = 64         # args.linear_size
NUM_CLASSES = 3
NUM_WORDS = 50
VOCAB_PAD = 64      # embedding rows padded for a layout-friendly one-hot matmul
BN_EPS = 1e-5
BN_SCALE = float(1.0 / (1.0 + BN_EPS) ** 0.5)   # eval-mode BN, running stats (0, 1)

SB = 2 * B          # streams: (sent1, sent2) x batch -> 4
NG = 4 * HID        # gate lanes per direction -> 128
ROWS = L * SB       # 32 flattened (time, stream) rows
DROWS = L * 2 * SB  # 64 doubled step-major rows for the lstm1 precompute

_VMEM = pl.BlockSpec(memory_space=pltpu.MemorySpace.VMEM)


def _esim_kernel(tok_ref, amask_ref, emb_ref,
                 w1x_ref, w1h_ref, b1_ref,
                 w2x_ref, w2h_ref, b2_ref,
                 fw1_ref, fb1_ref, fw2_ref, fb2_ref, fw3_ref, fb3_ref,
                 out_ref, o_scr):
    # ---------------- hoisted constants (gate lane masks) ----------------
    lane = lax.broadcasted_iota(jnp.int32, (2 * SB, NG), 1)
    row = lax.broadcasted_iota(jnp.int32, (2 * SB, NG), 0)
    is_fwd = row < SB                                    # rows 0:4 fwd, 4:8 bwd
    is_g = (lane >= 2 * HID) & (lane < 3 * HID)          # tanh (g) gate lanes
    g_scl = jnp.where(is_g, 1.0, 0.5).astype(jnp.float32)
    g_ofs = jnp.where(is_g, 0.0, 0.5).astype(jnp.float32)

    def bilstm(xg_blocks, wh):
        """Fused 4-stream bidirectional LSTM (fully unrolled, L static).

        xg_blocks[t]: (8, 128) x-gate contributions; rows 0:4 = fwd inputs at
        time t, rows 4:8 = bwd inputs at time L-1-t (already direction-selected).
        wh: (HID, 256) = [Whh_f | Whh_b].
        Returns hf, hb lists: hf[t] fwd output at time t, hb[t] bwd output at
        time L-1-t (each (4, HID)).
        """
        h = jnp.zeros((2 * SB, HID), jnp.float32)
        c = jnp.zeros((2 * SB, HID), jnp.float32)
        hf, hb = [], []
        for t in range(L):
            ga = jnp.dot(h, wh, preferred_element_type=jnp.float32)           # (8, 256)
            gates = jnp.where(is_fwd, ga[:, :NG], ga[:, NG:]) + xg_blocks[t]  # (8, 128)
            # single tanh for all gates: sigmoid(x) = 0.5*tanh(0.5*x) + 0.5
            th = jnp.tanh(gates * g_scl)
            act = th * g_scl + g_ofs
            i_g = act[:, 0 * HID:1 * HID]
            f_g = act[:, 1 * HID:2 * HID]
            g_g = act[:, 2 * HID:3 * HID]
            o_g = act[:, 3 * HID:4 * HID]
            c = f_g * c + i_g * g_g
            h = o_g * jnp.tanh(c)
            hf.append(h[:SB, :])
            hb.append(h[SB:, :])
        return hf, hb

    # -------- embedding lookup (one-hot matmul); BN folded into table --------
    tok = tok_ref[...]                                              # (64, 1) int32
    vocab_i = lax.broadcasted_iota(jnp.int32, (DROWS, VOCAB_PAD), 1)
    onehot = (vocab_i == tok).astype(jnp.float32)                   # (64, 64)
    x_steps = jnp.dot(onehot, emb_ref[...],
                      preferred_element_type=jnp.float32)           # (64, E)

    # -------- lstm1 x-gate precompute, already step-major & dir-selected -----
    xg1 = jnp.dot(x_steps.astype(jnp.bfloat16), w1x_ref[...],
                  preferred_element_type=jnp.float32) + b1_ref[...]  # (64, 256)
    is_fwd_d = (lax.broadcasted_iota(jnp.int32, (DROWS, NG), 0) % (2 * SB)) < SB
    xg1_sel = jnp.where(is_fwd_d, xg1[:, :NG], xg1[:, NG:])          # (64, 128)
    xg1_blocks = [xg1_sel[t * 2 * SB:(t + 1) * 2 * SB, :] for t in range(L)]

    hf1, hb1 = bilstm(xg1_blocks, w1h_ref[...])
    # time-major output scratch: row = t*SB + s, cols [fwd | bwd]
    for t in range(L):
        o_scr[t * SB:(t + 1) * SB, 0:HID] = hf1[t]
        o_scr[(L - 1 - t) * SB:(L - t) * SB, HID:2 * HID] = hb1[t]

    # -------- batched soft-attention align (both sentences & batches) --------
    o_all = o_scr[...]                                               # (32, 64)
    att = lax.dot_general(o_all, o_all, (((1,), (1,)), ((), ())),
                          preferred_element_type=jnp.float32)        # (32, 32)
    att = att + amask_ref[...]
    att = att - jnp.max(att, axis=-1, keepdims=True)
    e = jnp.exp(att)
    w = e * pl.reciprocal(jnp.sum(e, axis=-1, keepdims=True), approx=True)
    aligned = jnp.dot(w, o_all, preferred_element_type=jnp.float32)  # (32, 64)

    q = jnp.concatenate([o_all, aligned, o_all - aligned, o_all * aligned],
                        axis=-1)                                     # (32, 256)

    # -------- lstm2 x-gate precompute; per-step blocks built once, pre-loop --
    xg2 = jnp.dot(q.astype(jnp.bfloat16), w2x_ref[...],
                  preferred_element_type=jnp.float32) + b2_ref[...]  # (32, 256)
    xg2_blocks = [
        jnp.concatenate([xg2[t * SB:(t + 1) * SB, :NG],
                         xg2[(L - 1 - t) * SB:(L - t) * SB, NG:]], axis=0)
        for t in range(L)
    ]
    hf2, hb2 = bilstm(xg2_blocks, w2h_ref[...])

    # -------- apply_multiple: reference avg-pools for BOTH avg and max -------
    fsum = hf2[0]
    bsum = hb2[0]
    for t in range(1, L):
        fsum = fsum + hf2[t]
        bsum = bsum + hb2[t]
    rep = jnp.concatenate([fsum, bsum], axis=-1) * (1.0 / L)         # (SB, 2H)
    q1 = rep[0:B, :]                                                 # sent1 reps
    q2 = rep[B:SB, :]                                                # sent2 reps
    feat = jnp.concatenate([q1, q1, q2, q2], axis=-1)                # (B, 8H)

    # -------- FC head (BNs folded into weights, dropout = identity) ----------
    h1 = jnp.dot(feat, fw1_ref[...], preferred_element_type=jnp.float32) + fb1_ref[...]
    h1 = jnp.where(h1 > 0, h1, jnp.exp(h1) - 1.0)                    # ELU
    h2 = jnp.dot(h1, fw2_ref[...], preferred_element_type=jnp.float32) + fb2_ref[...]
    h2 = jnp.where(h2 > 0, h2, jnp.exp(h2) - 1.0)
    logits = jnp.dot(h2, fw3_ref[...], preferred_element_type=jnp.float32) + fb3_ref[...]
    logits = logits - jnp.max(logits, axis=-1, keepdims=True)
    pe = jnp.exp(logits)
    out_ref[...] = pe / jnp.sum(pe, axis=-1, keepdims=True)


# ------------------------------ JAX wrapper ------------------------------
def esim_forward(kp, sent1, sent2):
    # stream order s = sent*B + b  (sentence-1 batches first, then sentence-2)
    toks = jnp.concatenate([sent1, sent2], axis=0).astype(jnp.int32)  # (SB, L)
    toks_tm = toks.T                                                  # (L, SB)
    # doubled step-major tokens: row r = t*8 + j; j<4 -> time t, j>=4 -> time L-1-t
    tok_steps = jnp.concatenate([toks_tm, toks_tm[::-1, :]],
                                axis=1).reshape(DROWS, 1)

    # additive attention mask over flattened (time, stream) rows i = t*SB + s:
    # query i may attend key j iff same batch, other sentence and key not padding.
    s_idx = jnp.arange(ROWS, dtype=jnp.int32) % SB
    t_idx = jnp.arange(ROWS, dtype=jnp.int32) // SB
    sent = s_idx // B
    bat = s_idx % B
    key_pad = toks[s_idx, t_idx] == 1
    valid = ((bat[:, None] == bat[None, :])
             & (sent[:, None] != sent[None, :])
             & (~key_pad)[None, :])
    # -1e30 instead of -inf: identical (exactly-zero) weights, NaN-safe
    amask = jnp.where(valid, 0.0, -1e30).astype(jnp.float32)          # (32, 32)

    args = (tok_steps, amask, kp["embed"],
            kp["w1x"], kp["w1h"], kp["b1"],
            kp["w2x"], kp["w2h"], kp["b2"],
            kp["fw1"], kp["fb1"], kp["fw2"], kp["fb2"], kp["fw3"], kp["fb3"])

    return pl.pallas_call(
        _esim_kernel,
        out_shape=jax.ShapeDtypeStruct((B, NUM_CLASSES), jnp.float32),
        in_specs=[_VMEM] * len(args),
        out_specs=_VMEM,
        scratch_shapes=[pltpu.VMEM((ROWS, 2 * HID), jnp.float32)],
    )(*args)


# --------------------- host-side prep: fold eval-mode BN ---------------------
def prepare_params(p):
    """Fold eval-mode BatchNorms into adjacent weights; cast Wih to bf16."""
    fc = p["fc"]
    s0 = (BN_SCALE * fc["g0"]).reshape(-1, 1)
    s1 = (BN_SCALE * fc["g1"]).reshape(-1, 1)
    s2 = (BN_SCALE * fc["g2"]).reshape(-1, 1)
    return dict(
        # one-hot rows have exactly one 1, so beta folds into the table as well
        embed=(p["embed"] * (BN_SCALE * p["bn_emb_gamma"])
               + p["bn_emb_beta"]).astype(jnp.float32),
        w1x=p["lstm1"]["wx"].astype(jnp.bfloat16),
        w1h=p["lstm1"]["wh"].astype(jnp.float32),
        b1=p["lstm1"]["b"].astype(jnp.float32),
        w2x=p["lstm2"]["wx"].astype(jnp.bfloat16),
        w2h=p["lstm2"]["wh"].astype(jnp.float32),
        b2=p["lstm2"]["b"].astype(jnp.float32),
        fw1=(fc["w1"] * s0).astype(jnp.float32),
        fb1=(fc["c1"] + fc["b0"] @ fc["w1"]).astype(jnp.float32),
        fw2=(fc["w2"] * s1).astype(jnp.float32),
        fb2=(fc["c2"] + fc["b1"] @ fc["w2"]).astype(jnp.float32),
        fw3=(fc["w3"] * s2).astype(jnp.float32),
        fb3=(fc["c3"] + fc["b2"] @ fc["w3"]).astype(jnp.float32),
    )


# --------------------------- deterministic init ---------------------------
def init_params(key):
    keys = iter(jax.random.split(key, 24))

    def nrm(shape, scale=0.1):
        return (scale * jax.random.normal(next(keys), shape)).astype(jnp.float32)

    def lstm_params(din, h):
        # fused [forward | backward] weights along the gate axis (order i,f,g,o)
        return dict(
            wx=jnp.concatenate([nrm((din, 4 * h)), nrm((din, 4 * h))], axis=1),
            wh=jnp.concatenate([nrm((h, 4 * h)), nrm((h, 4 * h))], axis=1),
            b=jnp.concatenate([nrm((1, 4 * h)), nrm((1, 4 * h))], axis=1),
        )

    d8 = 8 * HID
    return dict(
        embed=nrm((VOCAB_PAD, EMBED), 1.0),    # rows >= NUM_WORDS never selected
        bn_emb_gamma=jnp.ones((1, EMBED), jnp.float32),
        bn_emb_beta=jnp.zeros((1, EMBED), jnp.float32),
        lstm1=lstm_params(EMBED, HID),
        lstm2=lstm_params(8 * HID, HID),
        fc=dict(
            g0=jnp.ones((1, d8), jnp.float32), b0=jnp.zeros((1, d8), jnp.float32),
            w1=nrm((d8, LINEAR)), c1=nrm((1, LINEAR)),
            g1=jnp.ones((1, LINEAR), jnp.float32), b1=jnp.zeros((1, LINEAR), jnp.float32),
            w2=nrm((LINEAR, LINEAR)), c2=nrm((1, LINEAR)),
            g2=jnp.ones((1, LINEAR), jnp.float32), b2=jnp.zeros((1, LINEAR), jnp.float32),
            w3=nrm((LINEAR, NUM_CLASSES)), c3=nrm((1, NUM_CLASSES)),
        ),
    )


if __name__ == "__main__":
    key = jax.random.PRNGKey(0)
    pkey, s1key, s2key = jax.random.split(key, 3)
    raw_params = init_params(pkey)
    kparams = prepare_params(raw_params)

    sent1 = jax.random.randint(s1key, (B, L), 2, NUM_WORDS, dtype=jnp.int32)
    sent2 = jax.random.randint(s2key, (B, L), 2, NUM_WORDS, dtype=jnp.int32)
    # a few padding tokens (id == 1) so the attention mask path is exercised
    sent1 = sent1.at[:, -2:].set(1)
    sent2 = sent2.at[:, -1:].set(1)

    fwd = jax.jit(esim_forward)
    out = jax.block_until_ready(fwd(kparams, sent1, sent2))

    assert out.shape == (B, NUM_CLASSES), out.shape
    assert bool(jnp.all(jnp.isfinite(out)))
    assert bool(jnp.allclose(jnp.sum(out, axis=-1), 1.0, atol=1e-4))
    print("KERNEL_OK")
</pallas_src>

<mosaic_0001>
module attributes {stable_mosaic.version = 11 : i64} {
  func.func @_esim_kernel(%arg0: memref<64x1xi32, #tpu.memory_space<vmem>>, %arg1: memref<32x32xf32, #tpu.memory_space<vmem>>, %arg2: memref<64x32xf32, #tpu.memory_space<vmem>>, %arg3: memref<32x256xbf16, #tpu.memory_space<vmem>>, %arg4: memref<32x256xf32, #tpu.memory_space<vmem>>, %arg5: memref<1x256xf32, #tpu.memory_space<vmem>>, %arg6: memref<256x256xbf16, #tpu.memory_space<vmem>>, %arg7: memref<32x256xf32, #tpu.memory_space<vmem>>, %arg8: memref<1x256xf32, #tpu.memory_space<vmem>>, %arg9: memref<256x64xf32, #tpu.memory_space<vmem>>, %arg10: memref<1x64xf32, #tpu.memory_space<vmem>>, %arg11: memref<64x64xf32, #tpu.memory_space<vmem>>, %arg12: memref<1x64xf32, #tpu.memory_space<vmem>>, %arg13: memref<64x3xf32, #tpu.memory_space<vmem>>, %arg14: memref<1x3xf32, #tpu.memory_space<vmem>>, %arg15: memref<2x3xf32, #tpu.memory_space<vmem>>, %arg16: memref<32x64xf32, #tpu.memory_space<vmem>>) attributes {dimension_semantics = [], scalar_prefetch = 0 : i64, scratch_operands = 1 : i64, tpu.core_type = #tpu.core_type<tc>} {
    %0 = tpu.iota {dimensions = array<i32: 1>} : vector<8x128xi32>
    %1 = tpu.iota {dimensions = array<i32: 0>} : vector<8x128xi32>
    %c4_i32 = arith.constant 4 : i32
    %2 = vector.broadcast %c4_i32 : i32 to vector<8x128xi32>
    %3 = arith.cmpi slt, %1, %2 : vector<8x128xi32>
    %c64_i32 = arith.constant 64 : i32
    %4 = vector.broadcast %c64_i32 : i32 to vector<8x128xi32>
    %5 = arith.cmpi sge, %0, %4 : vector<8x128xi32>
    %c96_i32 = arith.constant 96 : i32
    %6 = vector.broadcast %c96_i32 : i32 to vector<8x128xi32>
    %7 = arith.cmpi slt, %0, %6 : vector<8x128xi32>
    %8 = arith.andi %5, %7 : vector<8x128xi1>
    %cst = arith.constant 1.000000e+00 : f32
    %cst_0 = arith.constant 5.000000e-01 : f32
    %9 = vector.broadcast %cst : f32 to vector<8x128xf32>
    %10 = vector.broadcast %cst_0 : f32 to vector<8x128xf32>
    %11 = arith.select %8, %9, %10 : vector<8x128xi1>, vector<8x128xf32>
    %cst_1 = arith.constant 0.000000e+00 : f32
    %cst_2 = arith.constant 5.000000e-01 : f32
    %12 = vector.broadcast %cst_1 : f32 to vector<8x128xf32>
    %13 = vector.broadcast %cst_2 : f32 to vector<8x128xf32>
    %14 = arith.select %8, %12, %13 : vector<8x128xi1>, vector<8x128xf32>
    %c0 = arith.constant 0 : index
    %c0_3 = arith.constant 0 : index
    %15 = vector.load %arg0[%c0, %c0_3] : memref<64x1xi32, #tpu.memory_space<vmem>>, vector<64x1xi32>
    %16 = tpu.iota {dimensions = array<i32: 1>} : vector<64x64xi32>
    %17 = vector.broadcast %15 : vector<64x1xi32> to vector<64x64xi32>
    %18 = arith.cmpi eq, %16, %17 : vector<64x64xi32>
    %19 = arith.extui %18 : vector<64x64xi1> to vector<64x64xi32>
    %20 = arith.sitofp %19 : vector<64x64xi32> to vector<64x64xf32>
    %c0_4 = arith.constant 0 : index
    %c0_5 = arith.constant 0 : index
    %21 = vector.load %arg2[%c0_4, %c0_5] : memref<64x32xf32, #tpu.memory_space<vmem>>, vector<64x32xf32>
    %cst_6 = arith.constant dense<0.000000e+00> : vector<64x32xf32>
    %22 = tpu.matmul %20, %21, %cst_6 {dimension_numbers = #tpu.dot_dimension_numbers<[1], [0], [0], [1], [0, 0, 1, 1], [], []>} : vector<64x64xf32>, vector<64x32xf32>, vector<64x32xf32> -> vector<64x32xf32>
    %23 = arith.truncf %22 : vector<64x32xf32> to vector<64x32xbf16>
    %c0_7 = arith.constant 0 : index
    %c0_8 = arith.constant 0 : index
    %24 = vector.load %arg3[%c0_7, %c0_8] : memref<32x256xbf16, #tpu.memory_space<vmem>>, vector<32x256xbf16>
    %cst_9 = arith.constant dense<0.000000e+00> : vector<64x256xf32>
    %25 = tpu.matmul %23, %24, %cst_9 {dimension_numbers = #tpu.dot_dimension_numbers<[1], [0], [0], [1], [0, 0, 1, 1], [], []>} : vector<64x32xbf16>, vector<32x256xbf16>, vector<64x256xf32> -> vector<64x256xf32>
    %c0_10 = arith.constant 0 : index
    %c0_11 = arith.constant 0 : index
    %26 = vector.load %arg5[%c0_10, %c0_11] : memref<1x256xf32, #tpu.memory_space<vmem>>, vector<1x256xf32>
    %27 = vector.broadcast %26 : vector<1x256xf32> to vector<64x256xf32>
    %28 = arith.addf %25, %27 : vector<64x256xf32>
    %29 = tpu.iota {dimensions = array<i32: 0>} : vector<64x128xi32>
    %c8_i32 = arith.constant 8 : i32
    %c0_i32 = arith.constant 0 : i32
    %30 = arith.cmpi eq, %c8_i32, %c0_i32 : i32
    %c1_i32 = arith.constant 1 : i32
    %31 = arith.select %30, %c1_i32, %c8_i32 : i32
    %32 = vector.broadcast %31 : i32 to vector<64x128xi32>
    %33 = arith.remsi %29, %32 : vector<64x128xi32>
    %c0_i32_12 = arith.constant 0 : i32
    %34 = vector.broadcast %c0_i32_12 : i32 to vector<64x128xi32>
    %35 = arith.cmpi ne, %33, %34 : vector<64x128xi32>
    %c0_i32_13 = arith.constant 0 : i32
    %36 = vector.broadcast %c0_i32_13 : i32 to vector<64x128xi32>
    %37 = arith.cmpi slt, %33, %36 : vector<64x128xi32>
    %c0_i32_14 = arith.constant 0 : i32
    %38 = arith.cmpi slt, %31, %c0_i32_14 : i32
    %39 = vector.broadcast %38 : i1 to vector<64x128xi1>
    %40 = vector.broadcast %39 : vector<64x128xi1> to vector<64x128xi1>
    %41 = arith.xori %37, %40 : vector<64x128xi1>
    %42 = arith.andi %41, %35 : vector<64x128xi1>
    %43 = vector.broadcast %31 : i32 to vector<64x128xi32>
    %44 = arith.addi %33, %43 : vector<64x128xi32>
    %45 = arith.select %42, %44, %33 : vector<64x128xi1>, vector<64x128xi32>
    %c4_i32_15 = arith.constant 4 : i32
    %46 = vector.broadcast %c4_i32_15 : i32 to vector<64x128xi32>
    %47 = arith.cmpi slt, %45, %46 : vector<64x128xi32>
    %48 = vector.extract_strided_slice %28 {offsets = [0, 0], sizes = [64, 128], strides = [1, 1]} : vector<64x256xf32> to vector<64x128xf32>
    %49 = vector.extract_strided_slice %28 {offsets = [0, 128], sizes = [64, 128], strides = [1, 1]} : vector<64x256xf32> to vector<64x128xf32>
    %50 = arith.select %47, %48, %49 : vector<64x128xi1>, vector<64x128xf32>
    %51 = vector.extract_strided_slice %50 {offsets = [0, 0], sizes = [8, 128], strides = [1, 1]} : vector<64x128xf32> to vector<8x128xf32>
    %52 = vector.extract_strided_slice %50 {offsets = [8, 0], sizes = [8, 128], strides = [1, 1]} : vector<64x128xf32> to vector<8x128xf32>
    %53 = vector.extract_strided_slice %50 {offsets = [16, 0], sizes = [8, 128], strides = [1, 1]} : vector<64x128xf32> to vector<8x128xf32>
    %54 = vector.extract_strided_slice %50 {offsets = [24, 0], sizes = [8, 128], strides = [1, 1]} : vector<64x128xf32> to vector<8x128xf32>
    %55 = vector.extract_strided_slice %50 {offsets = [32, 0], sizes = [8, 128], strides = [1, 1]} : vector<64x128xf32> to vector<8x128xf32>
    %56 = vector.extract_strided_slice %50 {offsets = [40, 0], sizes = [8, 128], strides = [1, 1]} : vector<64x128xf32> to vector<8x128xf32>
    %57 = vector.extract_strided_slice %50 {offsets = [48, 0], sizes = [8, 128], strides = [1, 1]} : vector<64x128xf32> to vector<8x128xf32>
    %58 = vector.extract_strided_slice %50 {offsets = [56, 0], sizes = [8, 128], strides = [1, 1]} : vector<64x128xf32> to vector<8x128xf32>
    %c0_16 = arith.constant 0 : index
    %c0_17 = arith.constant 0 : index
    %59 = vector.load %arg4[%c0_16, %c0_17] : memref<32x256xf32, #tpu.memory_space<vmem>>, vector<32x256xf32>
    %cst_18 = arith.constant 0.000000e+00 : f32
    %60 = vector.broadcast %cst_18 : f32 to vector<8x32xf32>
    %cst_19 = arith.constant 0.000000e+00 : f32
    %61 = vector.broadcast %cst_19 : f32 to vector<8x32xf32>
    %cst_20 = arith.constant dense<0.000000e+00> : vector<8x256xf32>
    %62 = tpu.matmul %60, %59, %cst_20 {dimension_numbers = #tpu.dot_dimension_numbers<[1], [0], [0], [1], [0, 0, 1, 1], [], []>} : vector<8x32xf32>, vector<32x256xf32>, vector<8x256xf32> -> vector<8x256xf32>
    %63 = vector.extract_strided_slice %62 {offsets = [0, 0], sizes = [8, 128], strides = [1, 1]} : vector<8x256xf32> to vector<8x128xf32>
    %64 = vector.extract_strided_slice %62 {offsets = [0, 128], sizes = [8, 128], strides = [1, 1]} : vector<8x256xf32> to vector<8x128xf32>
    %65 = arith.select %3, %63, %64 : vector<8x128xi1>, vector<8x128xf32>
    %66 = arith.addf %65, %51 : vector<8x128xf32>
    %67 = arith.mulf %66, %11 : vector<8x128xf32>
    %68 = math.tanh %67 : vector<8x128xf32>
    %69 = arith.mulf %68, %11 : vector<8x128xf32>
    %70 = arith.addf %69, %14 : vector<8x128xf32>
    %71 = vector.extract_strided_slice %70 {offsets = [0, 0], sizes = [8, 32], strides = [1, 1]} : vector<8x128xf32> to vector<8x32xf32>
    %72 = vector.extract_strided_slice %70 {offsets = [0, 32], sizes = [8, 32], strides = [1, 1]} : vector<8x128xf32> to vector<8x32xf32>
    %73 = vector.extract_strided_slice %70 {offsets = [0, 64], sizes = [8, 32], strides = [1, 1]} : vector<8x128xf32> to vector<8x32xf32>
    %74 = vector.extract_strided_slice %70 {offsets = [0, 96], sizes = [8, 32], strides = [1, 1]} : vector<8x128xf32> to vector<8x32xf32>
    %75 = arith.mulf %72, %61 : vector<8x32xf32>
    %76 = arith.mulf %71, %73 : vector<8x32xf32>
    %77 = arith.addf %75, %76 : vector<8x32xf32>
    %78 = math.tanh %77 : vector<8x32xf32>
    %79 = arith.mulf %74, %78 : vector<8x32xf32>
    %80 = vector.extract_strided_slice %79 {offsets = [0, 0], sizes = [4, 32], strides = [1, 1]} : vector<8x32xf32> to vector<4x32xf32>
    %81 = vector.extract_strided_slice %79 {offsets = [4, 0], sizes = [4, 32], strides = [1, 1]} : vector<8x32xf32> to vector<4x32xf32>
    %cst_21 = arith.constant dense<0.000000e+00> : vector<8x256xf32>
    %82 = tpu.matmul %79, %59, %cst_21 {dimension_numbers = #tpu.dot_dimension_numbers<[1], [0], [0], [1], [0, 0, 1, 1], [], []>} : vector<8x32xf32>, vector<32x256xf32>, vector<8x256xf32> -> vector<8x256xf32>
    %83 = vector.extract_strided_slice %82 {offsets = [0, 0], sizes = [8, 128], strides = [1, 1]} : vector<8x256xf32> to vector<8x128xf32>
    %84 = vector.extract_strided_slice %82 {offsets = [0, 128], sizes = [8, 128], strides = [1, 1]} : vector<8x256xf32> to vector<8x128xf32>
    %85 = arith.select %3, %83, %84 : vector<8x128xi1>, vector<8x128xf32>
    %86 = arith.addf %85, %52 : vector<8x128xf32>
    %87 = arith.mulf %86, %11 : vector<8x128xf32>
    %88 = math.tanh %87 : vector<8x128xf32>
    %89 = arith.mulf %88, %11 : vector<8x128xf32>
    %90 = arith.addf %89, %14 : vector<8x128xf32>
    %91 = vector.extract_strided_slice %90 {offsets = [0, 0], sizes = [8, 32], strides = [1, 1]} : vector<8x128xf32> to vector<8x32xf32>
    %92 = vector.extract_strided_slice %90 {offsets = [0, 32], sizes = [8, 32], strides = [1, 1]} : vector<8x128xf32> to vector<8x32xf32>
    %93 = vector.extract_strided_slice %90 {offsets = [0, 64], sizes = [8, 32], strides = [1, 1]} : vector<8x128xf32> to vector<8x32xf32>
    %94 = vector.extract_strided_slice %90 {offsets = [0, 96], sizes = [8, 32], strides = [1, 1]} : vector<8x128xf32> to vector<8x32xf32>
    %95 = arith.mulf %92, %77 : vector<8x32xf32>
    %96 = arith.mulf %91, %93 : vector<8x32xf32>
    %97 = arith.addf %95, %96 : vector<8x32xf32>
    %98 = math.tanh %97 : vector<8x32xf32>
    %99 = arith.mulf %94, %98 : vector<8x32xf32>
    %100 = vector.extract_strided_slice %99 {offsets = [0, 0], sizes = [4, 32], strides = [1, 1]} : vector<8x32xf32> to vector<4x32xf32>
    %101 = vector.extract_strided_slice %99 {offsets = [4, 0], sizes = [4, 32], strides = [1, 1]} : vector<8x32xf32> to vector<4x32xf32>
    %cst_22 = arith.constant dense<0.000000e+00> : vector<8x256xf32>
    %102 = tpu.matmul %99, %59, %cst_22 {dimension_numbers = #tpu.dot_dimension_numbers<[1], [0], [0], [1], [0, 0, 1, 1], [], []>} : vector<8x32xf32>, vector<32x256xf32>, vector<8x256xf32> -> vector<8x256xf32>
    %103 = vector.extract_strided_slice %102 {offsets = [0, 0], sizes = [8, 128], strides = [1, 1]} : vector<8x256xf32> to vector<8x128xf32>
    %104 = vector.extract_strided_slice %102 {offsets = [0, 128], sizes = [8, 128], strides = [1, 1]} : vector<8x256xf32> to vector<8x128xf32>
    %105 = arith.select %3, %103, %104 : vector<8x128xi1>, vector<8x128xf32>
    %106 = arith.addf %105, %53 : vector<8x128xf32>
    %107 = arith.mulf %106, %11 : vector<8x128xf32>
    %108 = math.tanh %107 : vector<8x128xf32>
    %109 = arith.mulf %108, %11 : vector<8x128xf32>
    %110 = arith.addf %109, %14 : vector<8x128xf32>
    %111 = vector.extract_strided_slice %110 {offsets = [0, 0], sizes = [8, 32], strides = [1, 1]} : vector<8x128xf32> to vector<8x32xf32>
    %112 = vector.extract_strided_slice %110 {offsets = [0, 32], sizes = [8, 32], strides = [1, 1]} : vector<8x128xf32> to vector<8x32xf32>
    %113 = vector.extract_strided_slice %110 {offsets = [0, 64], sizes = [8, 32], strides = [1, 1]} : vector<8x128xf32> to vector<8x32xf32>
    %114 = vector.extract_strided_slice %110 {offsets = [0, 96], sizes = [8, 32], strides = [1, 1]} : vector<8x128xf32> to vector<8x32xf32>
    %115 = arith.mulf %112, %97 : vector<8x32xf32>
    %116 = arith.mulf %111, %113 : vector<8x32xf32>
    %117 = arith.addf %115, %116 : vector<8x32xf32>
    %118 = math.tanh %117 : vector<8x32xf32>
    %119 = arith.mulf %114, %118 : vector<8x32xf32>
    %120 = vector.extract_strided_slice %119 {offsets = [0, 0], sizes = [4, 32], strides = [1, 1]} : vector<8x32xf32> to vector<4x32xf32>
    %121 = vector.extract_strided_slice %119 {offsets = [4, 0], sizes = [4, 32], strides = [1, 1]} : vector<8x32xf32> to vector<4x32xf32>
    %cst_23 = arith.constant dense<0.000000e+00> : vector<8x256xf32>
    %122 = tpu.matmul %119, %59, %cst_23 {dimension_numbers = #tpu.dot_dimension_numbers<[1], [0], [0], [1], [0, 0, 1, 1], [], []>} : vector<8x32xf32>, vector<32x256xf32>, vector<8x256xf32> -> vector<8x256xf32>
    %123 = vector.extract_strided_slice %122 {offsets = [0, 0], sizes = [8, 128], strides = [1, 1]} : vector<8x256xf32> to vector<8x128xf32>
    %124 = vector.extract_strided_slice %122 {offsets = [0, 128], sizes = [8, 128], strides = [1, 1]} : vector<8x256xf32> to vector<8x128xf32>
    %125 = arith.select %3, %123, %124 : vector<8x128xi1>, vector<8x128xf32>
    %126 = arith.addf %125, %54 : vector<8x128xf32>
    %127 = arith.mulf %126, %11 : vector<8x128xf32>
    %128 = math.tanh %127 : vector<8x128xf32>
    %129 = arith.mulf %128, %11 : vector<8x128xf32>
    %130 = arith.addf %129, %14 : vector<8x128xf32>
    %131 = vector.extract_strided_slice %130 {offsets = [0, 0], sizes = [8, 32], strides = [1, 1]} : vector<8x128xf32> to vector<8x32xf32>
    %132 = vector.extract_strided_slice %130 {offsets = [0, 32], sizes = [8, 32], strides = [1, 1]} : vector<8x128xf32> to vector<8x32xf32>
    %133 = vector.extract_strided_slice %130 {offsets = [0, 64], sizes = [8, 32], strides = [1, 1]} : vector<8x128xf32> to vector<8x32xf32>
    %134 = vector.extract_strided_slice %130 {offsets = [0, 96], sizes = [8, 32], strides = [1, 1]} : vector<8x128xf32> to vector<8x32xf32>
    %135 = arith.mulf %132, %117 : vector<8x32xf32>
    %136 = arith.mulf %131, %133 : vector<8x32xf32>
    %137 = arith.addf %135, %136 : vector<8x32xf32>
    %138 = math.tanh %137 : vector<8x32xf32>
    %139 = arith.mulf %134, %138 : vector<8x32xf32>
    %140 = vector.extract_strided_slice %139 {offsets = [0, 0], sizes = [4, 32], strides = [1, 1]} : vector<8x32xf32> to vector<4x32xf32>
    %141 = vector.extract_strided_slice %139 {offsets = [4, 0], sizes = [4, 32], strides = [1, 1]} : vector<8x32xf32> to vector<4x32xf32>
    %cst_24 = arith.constant dense<0.000000e+00> : vector<8x256xf32>
    %142 = tpu.matmul %139, %59, %cst_24 {dimension_numbers = #tpu.dot_dimension_numbers<[1], [0], [0], [1], [0, 0, 1, 1], [], []>} : vector<8x32xf32>, vector<32x256xf32>, vector<8x256xf32> -> vector<8x256xf32>
    %143 = vector.extract_strided_slice %142 {offsets = [0, 0], sizes = [8, 128], strides = [1, 1]} : vector<8x256xf32> to vector<8x128xf32>
    %144 = vector.extract_strided_slice %142 {offsets = [0, 128], sizes = [8, 128], strides = [1, 1]} : vector<8x256xf32> to vector<8x128xf32>
    %145 = arith.select %3, %143, %144 : vector<8x128xi1>, vector<8x128xf32>
    %146 = arith.addf %145, %55 : vector<8x128xf32>
    %147 = arith.mulf %146, %11 : vector<8x128xf32>
    %148 = math.tanh %147 : vector<8x128xf32>
    %149 = arith.mulf %148, %11 : vector<8x128xf32>
    %150 = arith.addf %149, %14 : vector<8x128xf32>
    %151 = vector.extract_strided_slice %150 {offsets = [0, 0], sizes = [8, 32], strides = [1, 1]} : vector<8x128xf32> to vector<8x32xf32>
    %152 = vector.extract_strided_slice %150 {offsets = [0, 32], sizes = [8, 32], strides = [1, 1]} : vector<8x128xf32> to vector<8x32xf32>
    %153 = vector.extract_strided_slice %150 {offsets = [0, 64], sizes = [8, 32], strides = [1, 1]} : vector<8x128xf32> to vector<8x32xf32>
    %154 = vector.extract_strided_slice %150 {offsets = [0, 96], sizes = [8, 32], strides = [1, 1]} : vector<8x128xf32> to vector<8x32xf32>
    %155 = arith.mulf %152, %137 : vector<8x32xf32>
    %156 = arith.mulf %151, %153 : vector<8x32xf32>
    %157 = arith.addf %155, %156 : vector<8x32xf32>
    %158 = math.tanh %157 : vector<8x32xf32>
    %159 = arith.mulf %154, %158 : vector<8x32xf32>
    %160 = vector.extract_strided_slice %159 {offsets = [0, 0], sizes = [4, 32], strides = [1, 1]} : vector<8x32xf32> to vector<4x32xf32>
    %161 = vector.extract_strided_slice %159 {offsets = [4, 0], sizes = [4, 32], strides = [1, 1]} : vector<8x32xf32> to vector<4x32xf32>
    %cst_25 = arith.constant dense<0.000000e+00> : vector<8x256xf32>
    %162 = tpu.matmul %159, %59, %cst_25 {dimension_numbers = #tpu.dot_dimension_numbers<[1], [0], [0], [1], [0, 0, 1, 1], [], []>} : vector<8x32xf32>, vector<32x256xf32>, vector<8x256xf32> -> vector<8x256xf32>
    %163 = vector.extract_strided_slice %162 {offsets = [0, 0], sizes = [8, 128], strides = [1, 1]} : vector<8x256xf32> to vector<8x128xf32>
    %164 = vector.extract_strided_slice %162 {offsets = [0, 128], sizes = [8, 128], strides = [1, 1]} : vector<8x256xf32> to vector<8x128xf32>
    %165 = arith.select %3, %163, %164 : vector<8x128xi1>, vector<8x128xf32>
    %166 = arith.addf %165, %56 : vector<8x128xf32>
    %167 = arith.mulf %166, %11 : vector<8x128xf32>
    %168 = math.tanh %167 : vector<8x128xf32>
    %169 = arith.mulf %168, %11 : vector<8x128xf32>
    %170 = arith.addf %169, %14 : vector<8x128xf32>
    %171 = vector.extract_strided_slice %170 {offsets = [0, 0], sizes = [8, 32], strides = [1, 1]} : vector<8x128xf32> to vector<8x32xf32>
    %172 = vector.extract_strided_slice %170 {offsets = [0, 32], sizes = [8, 32], strides = [1, 1]} : vector<8x128xf32> to vector<8x32xf32>
    %173 = vector.extract_strided_slice %170 {offsets = [0, 64], sizes = [8, 32], strides = [1, 1]} : vector<8x128xf32> to vector<8x32xf32>
    %174 = vector.extract_strided_slice %170 {offsets = [0, 96], sizes = [8, 32], strides = [1, 1]} : vector<8x128xf32> to vector<8x32xf32>
    %175 = arith.mulf %172, %157 : vector<8x32xf32>
    %176 = arith.mulf %171, %173 : vector<8x32xf32>
    %177 = arith.addf %175, %176 : vector<8x32xf32>
    %178 = math.tanh %177 : vector<8x32xf32>
    %179 = arith.mulf %174, %178 : vector<8x32xf32>
    %180 = vector.extract_strided_slice %179 {offsets = [0, 0], sizes = [4, 32], strides = [1, 1]} : vector<8x32xf32> to vector<4x32xf32>
    %181 = vector.extract_strided_slice %179 {offsets = [4, 0], sizes = [4, 32], strides = [1, 1]} : vector<8x32xf32> to vector<4x32xf32>
    %cst_26 = arith.constant dense<0.000000e+00> : vector<8x256xf32>
    %182 = tpu.matmul %179, %59, %cst_26 {dimension_numbers = #tpu.dot_dimension_numbers<[1], [0], [0], [1], [0, 0, 1, 1], [], []>} : vector<8x32xf32>, vector<32x256xf32>, vector<8x256xf32> -> vector<8x256xf32>
    %183 = vector.extract_strided_slice %182 {offsets = [0, 0], sizes = [8, 128], strides = [1, 1]} : vector<8x256xf32> to vector<8x128xf32>
    %184 = vector.extract_strided_slice %182 {offsets = [0, 128], sizes = [8, 128], strides = [1, 1]} : vector<8x256xf32> to vector<8x128xf32>
    %185 = arith.select %3, %183, %184 : vector<8x128xi1>, vector<8x128xf32>
    %186 = arith.addf %185, %57 : vector<8x128xf32>
    %187 = arith.mulf %186, %11 : vector<8x128xf32>
    %188 = math.tanh %187 : vector<8x128xf32>
    %189 = arith.mulf %188, %11 : vector<8x128xf32>
    %190 = arith.addf %189, %14 : vector<8x128xf32>
    %191 = vector.extract_strided_slice %190 {offsets = [0, 0], sizes = [8, 32], strides = [1, 1]} : vector<8x128xf32> to vector<8x32xf32>
    %192 = vector.extract_strided_slice %190 {offsets = [0, 32], sizes = [8, 32], strides = [1, 1]} : vector<8x128xf32> to vector<8x32xf32>
    %193 = vector.extract_strided_slice %190 {offsets = [0, 64], sizes = [8, 32], strides = [1, 1]} : vector<8x128xf32> to vector<8x32xf32>
    %194 = vector.extract_strided_slice %190 {offsets = [0, 96], sizes = [8, 32], strides = [1, 1]} : vector<8x128xf32> to vector<8x32xf32>
    %195 = arith.mulf %192, %177 : vector<8x32xf32>
    %196 = arith.mulf %191, %193 : vector<8x32xf32>
    %197 = arith.addf %195, %196 : vector<8x32xf32>
    %198 = math.tanh %197 : vector<8x32xf32>
    %199 = arith.mulf %194, %198 : vector<8x32xf32>
    %200 = vector.extract_strided_slice %199 {offsets = [0, 0], sizes = [4, 32], strides = [1, 1]} : vector<8x32xf32> to vector<4x32xf32>
    %201 = vector.extract_strided_slice %199 {offsets = [4, 0], sizes = [4, 32], strides = [1, 1]} : vector<8x32xf32> to vector<4x32xf32>
    %cst_27 = arith.constant dense<0.000000e+00> : vector<8x256xf32>
    %202 = tpu.matmul %199, %59, %cst_27 {dimension_numbers = #tpu.dot_dimension_numbers<[1], [0], [0], [1], [0, 0, 1, 1], [], []>} : vector<8x32xf32>, vector<32x256xf32>, vector<8x256xf32> -> vector<8x256xf32>
    %203 = vector.extract_strided_slice %202 {offsets = [0, 0], sizes = [8, 128], strides = [1, 1]} : vector<8x256xf32> to vector<8x128xf32>
    %204 = vector.extract_strided_slice %202 {offsets = [0, 128], sizes = [8, 128], strides = [1, 1]} : vector<8x256xf32> to vector<8x128xf32>
    %205 = arith.select %3, %203, %204 : vector<8x128xi1>, vector<8x128xf32>
    %206 = arith.addf %205, %58 : vector<8x128xf32>
    %207 = arith.mulf %206, %11 : vector<8x128xf32>
    %208 = math.tanh %207 : vector<8x128xf32>
    %209 = arith.mulf %208, %11 : vector<8x128xf32>
    %210 = arith.addf %209, %14 : vector<8x128xf32>
    %211 = vector.extract_strided_slice %210 {offsets = [0, 0], sizes = [8, 32], strides = [1, 1]} : vector<8x128xf32> to vector<8x32xf32>
    %212 = vector.extract_strided_slice %210 {offsets = [0, 32], sizes = [8, 32], strides = [1, 1]} : vector<8x128xf32> to vector<8x32xf32>
    %213 = vector.extract_strided_slice %210 {offsets = [0, 64], sizes = [8, 32], strides = [1, 1]} : vector<8x128xf32> to vector<8x32xf32>
    %214 = vector.extract_strided_slice %210 {offsets = [0, 96], sizes = [8, 32], strides = [1, 1]} : vector<8x128xf32> to vector<8x32xf32>
    %215 = arith.mulf %212, %197 : vector<8x32xf32>
    %216 = arith.mulf %211, %213 : vector<8x32xf32>
    %217 = arith.addf %215, %216 : vector<8x32xf32>
    %218 = math.tanh %217 : vector<8x32xf32>
    %219 = arith.mulf %214, %218 : vector<8x32xf32>
    %220 = vector.extract_strided_slice %219 {offsets = [0, 0], sizes = [4, 32], strides = [1, 1]} : vector<8x32xf32> to vector<4x32xf32>
    %221 = vector.extract_strided_slice %219 {offsets = [4, 0], sizes = [4, 32], strides = [1, 1]} : vector<8x32xf32> to vector<4x32xf32>
    %c0_28 = arith.constant 0 : index
    %c0_29 = arith.constant 0 : index
    %222 = vector.load %arg16[%c0_28, %c0_29] : memref<32x64xf32, #tpu.memory_space<vmem>>, vector<4x32xf32>
    tpu.vector_store %arg16[%c0_28, %c0_29], %80 {strides = array<i32>} : memref<32x64xf32, #tpu.memory_space<vmem>>, vector<4x32xf32>,
    %c28 = arith.constant 28 : index
    %c32 = arith.constant 32 : index
    %223 = vector.load %arg16[%c28, %c32] : memref<32x64xf32, #tpu.memory_space<vmem>>, vector<4x32xf32>
    tpu.vector_store %arg16[%c28, %c32], %81 {strides = array<i32>} : memref<32x64xf32, #tpu.memory_space<vmem>>, vector<4x32xf32>,
    %c4 = arith.constant 4 : index
    %c0_30 = arith.constant 0 : index
    %224 = vector.load %arg16[%c4, %c0_30] : memref<32x64xf32, #tpu.memory_space<vmem>>, vector<4x32xf32>
    tpu.vector_store %arg16[%c4, %c0_30], %100 {strides = array<i32>} : memref<32x64xf32, #tpu.memory_space<vmem>>, vector<4x32xf32>,
    %c24 = arith.constant 24 : index
    %c32_31 = arith.constant 32 : index
    %225 = vector.load %arg16[%c24, %c32_31] : memref<32x64xf32, #tpu.memory_space<vmem>>, vector<4x32xf32>
    tpu.vector_store %arg16[%c24, %c32_31], %101 {strides = array<i32>} : memref<32x64xf32, #tpu.memory_space<vmem>>, vector<4x32xf32>,
    %c8 = arith.constant 8 : index
    %c0_32 = arith.constant 0 : index
    %226 = vector.load %arg16[%c8, %c0_32] : memref<32x64xf32, #tpu.memory_space<vmem>>, vector<4x32xf32>
    tpu.vector_store %arg16[%c8, %c0_32], %120 {strides = array<i32>} : memref<32x64xf32, #tpu.memory_space<vmem>>, vector<4x32xf32>,
    %c20 = arith.constant 20 : index
    %c32_33 = arith.constant 32 : index
    %227 = vector.load %arg16[%c20, %c32_33] : memref<32x64xf32, #tpu.memory_space<vmem>>, vector<4x32xf32>
    tpu.vector_store %arg16[%c20, %c32_33], %121 {strides = array<i32>} : memref<32x64xf32, #tpu.memory_space<vmem>>, vector<4x32xf32>,
    %c12 = arith.constant 12 : index
    %c0_34 = arith.constant 0 : index
    %228 = vector.load %arg16[%c12, %c0_34] : memref<32x64xf32, #tpu.memory_space<vmem>>, vector<4x32xf32>
    tpu.vector_store %arg16[%c12, %c0_34], %140 {strides = array<i32>} : memref<32x64xf32, #tpu.memory_space<vmem>>, vector<4x32xf32>,
    %c16 = arith.constant 16 : index
    %c32_35 = arith.constant 32 : index
    %229 = vector.load %arg16[%c16, %c32_35] : memref<32x64xf32, #tpu.memory_space<vmem>>, vector<4x32xf32>
    tpu.vector_store %arg16[%c16, %c32_35], %141 {strides = array<i32>} : memref<32x64xf32, #tpu.memory_space<vmem>>, vector<4x32xf32>,
    %c16_36 = arith.constant 16 : index
    %c0_37 = arith.constant 0 : index
    %230 = vector.load %arg16[%c16_36, %c0_37] : memref<32x64xf32, #tpu.memory_space<vmem>>, vector<4x32xf32>
    tpu.vector_store %arg16[%c16_36, %c0_37], %160 {strides = array<i32>} : memref<32x64xf32, #tpu.memory_space<vmem>>, vector<4x32xf32>,
    %c12_38 = arith.constant 12 : index
    %c32_39 = arith.constant 32 : index
    %231 = vector.load %arg16[%c12_38, %c32_39] : memref<32x64xf32, #tpu.memory_space<vmem>>, vector<4x32xf32>
    tpu.vector_store %arg16[%c12_38, %c32_39], %161 {strides = array<i32>} : memref<32x64xf32, #tpu.memory_space<vmem>>, vector<4x32xf32>,
    %c20_40 = arith.constant 20 : index
    %c0_41 = arith.constant 0 : index
    %232 = vector.load %arg16[%c20_40, %c0_41] : memref<32x64xf32, #tpu.memory_space<vmem>>, vector<4x32xf32>
    tpu.vector_store %arg16[%c20_40, %c0_41], %180 {strides = array<i32>} : memref<32x64xf32, #tpu.memory_space<vmem>>, vector<4x32xf32>,
    %c8_42 = arith.constant 8 : index
    %c32_43 = arith.constant 32 : index
    %233 = vector.load %arg16[%c8_42, %c32_43] : memref<32x64xf32, #tpu.memory_space<vmem>>, vector<4x32xf32>
    tpu.vector_store %arg16[%c8_42, %c32_43], %181 {strides = array<i32>} : memref<32x64xf32, #tpu.memory_space<vmem>>, vector<4x32xf32>,
    %c24_44 = arith.constant 24 : index
    %c0_45 = arith.constant 0 : index
    %234 = vector.load %arg16[%c24_44, %c0_45] : memref<32x64xf32, #tpu.memory_space<vmem>>, vector<4x32xf32>
    tpu.vector_store %arg16[%c24_44, %c0_45], %200 {strides = array<i32>} : memref<32x64xf32, #tpu.memory_space<vmem>>, vector<4x32xf32>,
    %c4_46 = arith.constant 4 : index
    %c32_47 = arith.constant 32 : index
    %235 = vector.load %arg16[%c4_46, %c32_47] : memref<32x64xf32, #tpu.memory_space<vmem>>, vector<4x32xf32>
    tpu.vector_store %arg16[%c4_46, %c32_47], %201 {strides = array<i32>} : memref<32x64xf32, #tpu.memory_space<vmem>>, vector<4x32xf32>,
    %c28_48 = arith.constant 28 : index
    %c0_49 = arith.constant 0 : index
    %236 = vector.load %arg16[%c28_48, %c0_49] : memref<32x64xf32, #tpu.memory_space<vmem>>, vector<4x32xf32>
    tpu.vector_store %arg16[%c28_48, %c0_49], %220 {strides = array<i32>} : memref<32x64xf32, #tpu.memory_space<vmem>>, vector<4x32xf32>,
    %c0_50 = arith.constant 0 : index
    %c32_51 = arith.constant 32 : index
    %237 = vector.load %arg16[%c0_50, %c32_51] : memref<32x64xf32, #tpu.memory_space<vmem>>, vector<4x32xf32>
    tpu.vector_store %arg16[%c0_50, %c32_51], %221 {strides = array<i32>} : memref<32x64xf32, #tpu.memory_space<vmem>>, vector<4x32xf32>,
    %c0_52 = arith.constant 0 : index
    %c0_53 = arith.constant 0 : index
    %238 = vector.load %arg16[%c0_52, %c0_53] : memref<32x64xf32, #tpu.memory_space<vmem>>, vector<32x64xf32>
    %cst_54 = arith.constant dense<0.000000e+00> : vector<32x32xf32>
    %239 = tpu.matmul %238, %238, %cst_54 {dimension_numbers = #tpu.dot_dimension_numbers<[1], [1], [0], [0], [0, 0, 1, 0], [], []>} : vector<32x64xf32>, vector<32x64xf32>, vector<32x32xf32> -> vector<32x32xf32>
    %c0_55 = arith.constant 0 : index
    %c0_56 = arith.constant 0 : index
    %240 = vector.load %arg1[%c0_55, %c0_56] : memref<32x32xf32, #tpu.memory_space<vmem>>, vector<32x32xf32>
    %241 = arith.addf %239, %240 : vector<32x32xf32>
    %cst_57 = arith.constant dense<0xFF800000> : vector<32xf32>
    %242 = vector.multi_reduction <maximumf>, %241, %cst_57 [1] : vector<32x32xf32> to vector<32xf32>
    %243 = vector.shape_cast %242 : vector<32xf32> to vector<32x1xf32>
    %244 = vector.broadcast %243 : vector<32x1xf32> to vector<32x32xf32>
    %245 = arith.subf %241, %244 : vector<32x32xf32>
    %246 = math.exp %245 : vector<32x32xf32>
    %cst_58 = arith.constant dense<0.000000e+00> : vector<32xf32>
    %247 = vector.multi_reduction <add>, %246, %cst_58 [1] : vector<32x32xf32> to vector<32xf32>
    %248 = vector.shape_cast %247 : vector<32xf32> to vector<32x1xf32>
    %249 = tpu.reciprocal %248 {approx = true} : vector<32x1xf32> -> vector<32x1xf32>
    %250 = vector.broadcast %249 : vector<32x1xf32> to vector<32x32xf32>
    %251 = arith.mulf %246, %250 : vector<32x32xf32>
    %cst_59 = arith.constant dense<0.000000e+00> : vector<32x64xf32>
    %252 = tpu.matmul %251, %238, %cst_59 {dimension_numbers = #tpu.dot_dimension_numbers<[1], [0], [0], [1], [0, 0, 1, 1], [], []>} : vector<32x32xf32>, vector<32x64xf32>, vector<32x64xf32> -> vector<32x64xf32>
    %253 = arith.subf %238, %252 : vector<32x64xf32>
    %254 = arith.mulf %238, %252 : vector<32x64xf32>
    %255 = tpu.concatenate %238, %252, %253, %254 in 1 : vector<32x64xf32>, vector<32x64xf32>, vector<32x64xf32>, vector<32x64xf32> -> vector<32x256xf32>
    %256 = arith.truncf %255 : vector<32x256xf32> to vector<32x256xbf16>
    %c0_60 = arith.constant 0 : index
    %c0_61 = arith.constant 0 : index
    %257 = vector.load %arg6[%c0_60, %c0_61] : memref<256x256xbf16, #tpu.memory_space<vmem>>, vector<256x256xbf16>
    %cst_62 = arith.constant dense<0.000000e+00> : vector<32x256xf32>
    %258 = tpu.matmul %256, %257, %cst_62 {dimension_numbers = #tpu.dot_dimension_numbers<[1], [0], [0], [1], [0, 0, 1, 1], [], []>} : vector<32x256xbf16>, vector<256x256xbf16>, vector<32x256xf32> -> vector<32x256xf32>
    %c0_63 = arith.constant 0 : index
    %c0_64 = arith.constant 0 : index
    %259 = vector.load %arg8[%c0_63, %c0_64] : memref<1x256xf32, #tpu.memory_space<vmem>>, vector<1x256xf32>
    %260 = vector.broadcast %259 : vector<1x256xf32> to vector<32x256xf32>
    %261 = arith.addf %258, %260 : vector<32x256xf32>
    %262 = vector.extract_strided_slice %261 {offsets = [0, 0], sizes = [4, 128], strides = [1, 1]} : vector<32x256xf32> to vector<4x128xf32>
    %263 = vector.extract_strided_slice %261 {offsets = [28, 128], sizes = [4, 128], strides = [1, 1]} : vector<32x256xf32> to vector<4x128xf32>
    %264 = tpu.concatenate %262, %263 in 0 : vector<4x128xf32>, vector<4x128xf32> -> vector<8x128xf32>
    %265 = vector.extract_strided_slice %261 {offsets = [4, 0], sizes = [4, 128], strides = [1, 1]} : vector<32x256xf32> to vector<4x128xf32>
    %266 = vector.extract_strided_slice %261 {offsets = [24, 128], sizes = [4, 128], strides = [1, 1]} : vector<32x256xf32> to vector<4x128xf32>
    %267 = tpu.concatenate %265, %266 in 0 : vector<4x128xf32>, vector<4x128xf32> -> vector<8x128xf32>
    %268 = vector.extract_strided_slice %261 {offsets = [8, 0], sizes = [4, 128], strides = [1, 1]} : vector<32x256xf32> to vector<4x128xf32>
    %269 = vector.extract_strided_slice %261 {offsets = [20, 128], sizes = [4, 128], strides = [1, 1]} : vector<32x256xf32> to vector<4x128xf32>
    %270 = tpu.concatenate %268, %269 in 0 : vector<4x128xf32>, vector<4x128xf32> -> vector<8x128xf32>
    %271 = vector.extract_strided_slice %261 {offsets = [12, 0], sizes = [4, 128], strides = [1, 1]} : vector<32x256xf32> to vector<4x128xf32>
    %272 = vector.extract_strided_slice %261 {offsets = [16, 128], sizes = [4, 128], strides = [1, 1]} : vector<32x256xf32> to vector<4x128xf32>
    %273 = tpu.concatenate %271, %272 in 0 : vector<4x128xf32>, vector<4x128xf32> -> vector<8x128xf32>
    %274 = vector.extract_strided_slice %261 {offsets = [16, 0], sizes = [4, 128], strides = [1, 1]} : vector<32x256xf32> to vector<4x128xf32>
    %275 = vector.extract_strided_slice %261 {offsets = [12, 128], sizes = [4, 128], strides = [1, 1]} : vector<32x256xf32> to vector<4x128xf32>
    %276 = tpu.concatenate %274, %275 in 0 : vector<4x128xf32>, vector<4x128xf32> -> vector<8x128xf32>
    %277 = vector.extract_strided_slice %261 {offsets = [20, 0], sizes = [4, 128], strides = [1, 1]} : vector<32x256xf32> to vector<4x128xf32>
    %278 = vector.extract_strided_slice %261 {offsets = [8, 128], sizes = [4, 128], strides = [1, 1]} : vector<32x256xf32> to vector<4x128xf32>
    %279 = tpu.concatenate %277, %278 in 0 : vector<4x128xf32>, vector<4x128xf32> -> vector<8x128xf32>
    %280 = vector.extract_strided_slice %261 {offsets = [24, 0], sizes = [4, 128], strides = [1, 1]} : vector<32x256xf32> to vector<4x128xf32>
    %281 = vector.extract_strided_slice %261 {offsets = [4, 128], sizes = [4, 128], strides = [1, 1]} : vector<32x256xf32> to vector<4x128xf32>
    %282 = tpu.concatenate %280, %281 in 0 : vector<4x128xf32>, vector<4x128xf32> -> vector<8x128xf32>
    %283 = vector.extract_strided_slice %261 {offsets = [28, 0], sizes = [4, 128], strides = [1, 1]} : vector<32x256xf32> to vector<4x128xf32>
    %284 = vector.extract_strided_slice %261 {offsets = [0, 128], sizes = [4, 128], strides = [1, 1]} : vector<32x256xf32> to vector<4x128xf32>
    %285 = tpu.concatenate %283, %284 in 0 : vector<4x128xf32>, vector<4x128xf32> -> vector<8x128xf32>
    %c0_65 = arith.constant 0 : index
    %c0_66 = arith.constant 0 : index
    %286 = vector.load %arg7[%c0_65, %c0_66] : memref<32x256xf32, #tpu.memory_space<vmem>>, vector<32x256xf32>
    %cst_67 = arith.constant 0.000000e+00 : f32
    %287 = vector.broadcast %cst_67 : f32 to vector<8x32xf32>
    %cst_68 = arith.constant 0.000000e+00 : f32
    %288 = vector.broadcast %cst_68 : f32 to vector<8x32xf32>
    %cst_69 = arith.constant dense<0.000000e+00> : vector<8x256xf32>
    %289 = tpu.matmul %287, %286, %cst_69 {dimension_numbers = #tpu.dot_dimension_numbers<[1], [0], [0], [1], [0, 0, 1, 1], [], []>} : vector<8x32xf32>, vector<32x256xf32>, vector<8x256xf32> -> vector<8x256xf32>
    %290 = vector.extract_strided_slice %289 {offsets = [0, 0], sizes = [8, 128], strides = [1, 1]} : vector<8x256xf32> to vector<8x128xf32>
    %291 = vector.extract_strided_slice %289 {offsets = [0, 128], sizes = [8, 128], strides = [1, 1]} : vector<8x256xf32> to vector<8x128xf32>
    %292 = arith.select %3, %290, %291 : vector<8x128xi1>, vector<8x128xf32>
    %293 = arith.addf %292, %264 : vector<8x128xf32>
    %294 = arith.mulf %293, %11 : vector<8x128xf32>
    %295 = math.tanh %294 : vector<8x128xf32>
    %296 = arith.mulf %295, %11 : vector<8x128xf32>
    %297 = arith.addf %296, %14 : vector<8x128xf32>
    %298 = vector.extract_strided_slice %297 {offsets = [0, 0], sizes = [8, 32], strides = [1, 1]} : vector<8x128xf32> to vector<8x32xf32>
    %299 = vector.extract_strided_slice %297 {offsets = [0, 32], sizes = [8, 32], strides = [1, 1]} : vector<8x128xf32> to vector<8x32xf32>
    %300 = vector.extract_strided_slice %297 {offsets = [0, 64], sizes = [8, 32], strides = [1, 1]} : vector<8x128xf32> to vector<8x32xf32>
    %301 = vector.extract_strided_slice %297 {offsets = [0, 96], sizes = [8, 32], strides = [1, 1]} : vector<8x128xf32> to vector<8x32xf32>
    %302 = arith.mulf %299, %288 : vector<8x32xf32>
    %303 = arith.mulf %298, %300 : vector<8x32xf32>
    %304 = arith.addf %302, %303 : vector<8x32xf32>
    %305 = math.tanh %304 : vector<8x32xf32>
    %306 = arith.mulf %301, %305 : vector<8x32xf32>
    %307 = vector.extract_strided_slice %306 {offsets = [0, 0], sizes = [4, 32], strides = [1, 1]} : vector<8x32xf32> to vector<4x32xf32>
    %308 = vector.extract_strided_slice %306 {offsets = [4, 0], sizes = [4, 32], strides = [1, 1]} : vector<8x32xf32> to vector<4x32xf32>
    %cst_70 = arith.constant dense<0.000000e+00> : vector<8x256xf32>
    %309 = tpu.matmul %306, %286, %cst_70 {dimension_numbers = #tpu.dot_dimension_numbers<[1], [0], [0], [1], [0, 0, 1, 1], [], []>} : vector<8x32xf32>, vector<32x256xf32>, vector<8x256xf32> -> vector<8x256xf32>
    %310 = vector.extract_strided_slice %309 {offsets = [0, 0], sizes = [8, 128], strides = [1, 1]} : vector<8x256xf32> to vector<8x128xf32>
    %311 = vector.extract_strided_slice %309 {offsets = [0, 128], sizes = [8, 128], strides = [1, 1]} : vector<8x256xf32> to vector<8x128xf32>
    %312 = arith.select %3, %310, %311 : vector<8x128xi1>, vector<8x128xf32>
    %313 = arith.addf %312, %267 : vector<8x128xf32>
    %314 = arith.mulf %313, %11 : vector<8x128xf32>
    %315 = math.tanh %314 : vector<8x128xf32>
    %316 = arith.mulf %315, %11 : vector<8x128xf32>
    %317 = arith.addf %316, %14 : vector<8x128xf32>
    %318 = vector.extract_strided_slice %317 {offsets = [0, 0], sizes = [8, 32], strides = [1, 1]} : vector<8x128xf32> to vector<8x32xf32>
    %319 = vector.extract_strided_slice %317 {offsets = [0, 32], sizes = [8, 32], strides = [1, 1]} : vector<8x128xf32> to vector<8x32xf32>
    %320 = vector.extract_strided_slice %317 {offsets = [0, 64], sizes = [8, 32], strides = [1, 1]} : vector<8x128xf32> to vector<8x32xf32>
    %321 = vector.extract_strided_slice %317 {offsets = [0, 96], sizes = [8, 32], strides = [1, 1]} : vector<8x128xf32> to vector<8x32xf32>
    %322 = arith.mulf %319, %304 : vector<8x32xf32>
    %323 = arith.mulf %318, %320 : vector<8x32xf32>
    %324 = arith.addf %322, %323 : vector<8x32xf32>
    %325 = math.tanh %324 : vector<8x32xf32>
    %326 = arith.mulf %321, %325 : vector<8x32xf32>
    %327 = vector.extract_strided_slice %326 {offsets = [0, 0], sizes = [4, 32], strides = [1, 1]} : vector<8x32xf32> to vector<4x32xf32>
    %328 = vector.extract_strided_slice %326 {offsets = [4, 0], sizes = [4, 32], strides = [1, 1]} : vector<8x32xf32> to vector<4x32xf32>
    %cst_71 = arith.constant dense<0.000000e+00> : vector<8x256xf32>
    %329 = tpu.matmul %326, %286, %cst_71 {dimension_numbers = #tpu.dot_dimension_numbers<[1], [0], [0], [1], [0, 0, 1, 1], [], []>} : vector<8x32xf32>, vector<32x256xf32>, vector<8x256xf32> -> vector<8x256xf32>
    %330 = vector.extract_strided_slice %329 {offsets = [0, 0], sizes = [8, 128], strides = [1, 1]} : vector<8x256xf32> to vector<8x128xf32>
    %331 = vector.extract_strided_slice %329 {offsets = [0, 128], sizes = [8, 128], strides = [1, 1]} : vector<8x256xf32> to vector<8x128xf32>
    %332 = arith.select %3, %330, %331 : vector<8x128xi1>, vector<8x128xf32>
    %333 = arith.addf %332, %270 : vector<8x128xf32>
    %334 = arith.mulf %333, %11 : vector<8x128xf32>
    %335 = math.tanh %334 : vector<8x128xf32>
    %336 = arith.mulf %335, %11 : vector<8x128xf32>
    %337 = arith.addf %336, %14 : vector<8x128xf32>
    %338 = vector.extract_strided_slice %337 {offsets = [0, 0], sizes = [8, 32], strides = [1, 1]} : vector<8x128xf32> to vector<8x32xf32>
    %339 = vector.extract_strided_slice %337 {offsets = [0, 32], sizes = [8, 32], strides = [1, 1]} : vector<8x128xf32> to vector<8x32xf32>
    %340 = vector.extract_strided_slice %337 {offsets = [0, 64], sizes = [8, 32], strides = [1, 1]} : vector<8x128xf32> to vector<8x32xf32>
    %341 = vector.extract_strided_slice %337 {offsets = [0, 96], sizes = [8, 32], strides = [1, 1]} : vector<8x128xf32> to vector<8x32xf32>
    %342 = arith.mulf %339, %324 : vector<8x32xf32>
    %343 = arith.mulf %338, %340 : vector<8x32xf32>
    %344 = arith.addf %342, %343 : vector<8x32xf32>
    %345 = math.tanh %344 : vector<8x32xf32>
    %346 = arith.mulf %341, %345 : vector<8x32xf32>
    %347 = vector.extract_strided_slice %346 {offsets = [0, 0], sizes = [4, 32], strides = [1, 1]} : vector<8x32xf32> to vector<4x32xf32>
    %348 = vector.extract_strided_slice %346 {offsets = [4, 0], sizes = [4, 32], strides = [1, 1]} : vector<8x32xf32> to vector<4x32xf32>
    %cst_72 = arith.constant dense<0.000000e+00> : vector<8x256xf32>
    %349 = tpu.matmul %346, %286, %cst_72 {dimension_numbers = #tpu.dot_dimension_numbers<[1], [0], [0], [1], [0, 0, 1, 1], [], []>} : vector<8x32xf32>, vector<32x256xf32>, vector<8x256xf32> -> vector<8x256xf32>
    %350 = vector.extract_strided_slice %349 {offsets = [0, 0], sizes = [8, 128], strides = [1, 1]} : vector<8x256xf32> to vector<8x128xf32>
    %351 = vector.extract_strided_slice %349 {offsets = [0, 128], sizes = [8, 128], strides = [1, 1]} : vector<8x256xf32> to vector<8x128xf32>
    %352 = arith.select %3, %350, %351 : vector<8x128xi1>, vector<8x128xf32>
    %353 = arith.addf %352, %273 : vector<8x128xf32>
    %354 = arith.mulf %353, %11 : vector<8x128xf32>
    %355 = math.tanh %354 : vector<8x128xf32>
    %356 = arith.mulf %355, %11 : vector<8x128xf32>
    %357 = arith.addf %356, %14 : vector<8x128xf32>
    %358 = vector.extract_strided_slice %357 {offsets = [0, 0], sizes = [8, 32], strides = [1, 1]} : vector<8x128xf32> to vector<8x32xf32>
    %359 = vector.extract_strided_slice %357 {offsets = [0, 32], sizes = [8, 32], strides = [1, 1]} : vector<8x128xf32> to vector<8x32xf32>
    %360 = vector.extract_strided_slice %357 {offsets = [0, 64], sizes = [8, 32], strides = [1, 1]} : vector<8x128xf32> to vector<8x32xf32>
    %361 = vector.extract_strided_slice %357 {offsets = [0, 96], sizes = [8, 32], strides = [1, 1]} : vector<8x128xf32> to vector<8x32xf32>
    %362 = arith.mulf %359, %344 : vector<8x32xf32>
    %363 = arith.mulf %358, %360 : vector<8x32xf32>
    %364 = arith.addf %362, %363 : vector<8x32xf32>
    %365 = math.tanh %364 : vector<8x32xf32>
    %366 = arith.mulf %361, %365 : vector<8x32xf32>
    %367 = vector.extract_strided_slice %366 {offsets = [0, 0], sizes = [4, 32], strides = [1, 1]} : vector<8x32xf32> to vector<4x32xf32>
    %368 = vector.extract_strided_slice %366 {offsets = [4, 0], sizes = [4, 32], strides = [1, 1]} : vector<8x32xf32> to vector<4x32xf32>
    %cst_73 = arith.constant dense<0.000000e+00> : vector<8x256xf32>
    %369 = tpu.matmul %366, %286, %cst_73 {dimension_numbers = #tpu.dot_dimension_numbers<[1], [0], [0], [1], [0, 0, 1, 1], [], []>} : vector<8x32xf32>, vector<32x256xf32>, vector<8x256xf32> -> vector<8x256xf32>
    %370 = vector.extract_strided_slice %369 {offsets = [0, 0], sizes = [8, 128], strides = [1, 1]} : vector<8x256xf32> to vector<8x128xf32>
    %371 = vector.extract_strided_slice %369 {offsets = [0, 128], sizes = [8, 128], strides = [1, 1]} : vector<8x256xf32> to vector<8x128xf32>
    %372 = arith.select %3, %370, %371 : vector<8x128xi1>, vector<8x128xf32>
    %373 = arith.addf %372, %276 : vector<8x128xf32>
    %374 = arith.mulf %373, %11 : vector<8x128xf32>
    %375 = math.tanh %374 : vector<8x128xf32>
    %376 = arith.mulf %375, %11 : vector<8x128xf32>
    %377 = arith.addf %376, %14 : vector<8x128xf32>
    %378 = vector.extract_strided_slice %377 {offsets = [0, 0], sizes = [8, 32], strides = [1, 1]} : vector<8x128xf32> to vector<8x32xf32>
    %379 = vector.extract_strided_slice %377 {offsets = [0, 32], sizes = [8, 32], strides = [1, 1]} : vector<8x128xf32> to vector<8x32xf32>
    %380 = vector.extract_strided_slice %377 {offsets = [0, 64], sizes = [8, 32], strides = [1, 1]} : vector<8x128xf32> to vector<8x32xf32>
    %381 = vector.extract_strided_slice %377 {offsets = [0, 96], sizes = [8, 32], strides = [1, 1]} : vector<8x128xf32> to vector<8x32xf32>
    %382 = arith.mulf %379, %364 : vector<8x32xf32>
    %383 = arith.mulf %378, %380 : vector<8x32xf32>
    %384 = arith.addf %382, %383 : vector<8x32xf32>
    %385 = math.tanh %384 : vector<8x32xf32>
    %386 = arith.mulf %381, %385 : vector<8x32xf32>
    %387 = vector.extract_strided_slice %386 {offsets = [0, 0], sizes = [4, 32], strides = [1, 1]} : vector<8x32xf32> to vector<4x32xf32>
    %388 = vector.extract_strided_slice %386 {offsets = [4, 0], sizes = [4, 32], strides = [1, 1]} : vector<8x32xf32> to vector<4x32xf32>
    %cst_74 = arith.constant dense<0.000000e+00> : vector<8x256xf32>
    %389 = tpu.matmul %386, %286, %cst_74 {dimension_numbers = #tpu.dot_dimension_numbers<[1], [0], [0], [1], [0, 0, 1, 1], [], []>} : vector<8x32xf32>, vector<32x256xf32>, vector<8x256xf32> -> vector<8x256xf32>
    %390 = vector.extract_strided_slice %389 {offsets = [0, 0], sizes = [8, 128], strides = [1, 1]} : vector<8x256xf32> to vector<8x128xf32>
    %391 = vector.extract_strided_slice %389 {offsets = [0, 128], sizes = [8, 128], strides = [1, 1]} : vector<8x256xf32> to vector<8x128xf32>
    %392 = arith.select %3, %390, %391 : vector<8x128xi1>, vector<8x128xf32>
    %393 = arith.addf %392, %279 : vector<8x128xf32>
    %394 = arith.mulf %393, %11 : vector<8x128xf32>
    %395 = math.tanh %394 : vector<8x128xf32>
    %396 = arith.mulf %395, %11 : vector<8x128xf32>
    %397 = arith.addf %396, %14 : vector<8x128xf32>
    %398 = vector.extract_strided_slice %397 {offsets = [0, 0], sizes = [8, 32], strides = [1, 1]} : vector<8x128xf32> to vector<8x32xf32>
    %399 = vector.extract_strided_slice %397 {offsets = [0, 32], sizes = [8, 32], strides = [1, 1]} : vector<8x128xf32> to vector<8x32xf32>
    %400 = vector.extract_strided_slice %397 {offsets = [0, 64], sizes = [8, 32], strides = [1, 1]} : vector<8x128xf32> to vector<8x32xf32>
    %401 = vector.extract_strided_slice %397 {offsets = [0, 96], sizes = [8, 32], strides = [1, 1]} : vector<8x128xf32> to vector<8x32xf32>
    %402 = arith.mulf %399, %384 : vector<8x32xf32>
    %403 = arith.mulf %398, %400 : vector<8x32xf32>
    %404 = arith.addf %402, %403 : vector<8x32xf32>
    %405 = math.tanh %404 : vector<8x32xf32>
    %406 = arith.mulf %401, %405 : vector<8x32xf32>
    %407 = vector.extract_strided_slice %406 {offsets = [0, 0], sizes = [4, 32], strides = [1, 1]} : vector<8x32xf32> to vector<4x32xf32>
    %408 = vector.extract_strided_slice %406 {offsets = [4, 0], sizes = [4, 32], strides = [1, 1]} : vector<8x32xf32> to vector<4x32xf32>
    %cst_75 = arith.constant dense<0.000000e+00> : vector<8x256xf32>
    %409 = tpu.matmul %406, %286, %cst_75 {dimension_numbers = #tpu.dot_dimension_numbers<[1], [0], [0], [1], [0, 0, 1, 1], [], []>} : vector<8x32xf32>, vector<32x256xf32>, vector<8x256xf32> -> vector<8x256xf32>
    %410 = vector.extract_strided_slice %409 {offsets = [0, 0], sizes = [8, 128], strides = [1, 1]} : vector<8x256xf32> to vector<8x128xf32>
    %411 = vector.extract_strided_slice %409 {offsets = [0, 128], sizes = [8, 128], strides = [1, 1]} : vector<8x256xf32> to vector<8x128xf32>
    %412 = arith.select %3, %410, %411 : vector<8x128xi1>, vector<8x128xf32>
    %413 = arith.addf %412, %282 : vector<8x128xf32>
    %414 = arith.mulf %413, %11 : vector<8x128xf32>
    %415 = math.tanh %414 : vector<8x128xf32>
    %416 = arith.mulf %415, %11 : vector<8x128xf32>
    %417 = arith.addf %416, %14 : vector<8x128xf32>
    %418 = vector.extract_strided_slice %417 {offsets = [0, 0], sizes = [8, 32], strides = [1, 1]} : vector<8x128xf32> to vector<8x32xf32>
    %419 = vector.extract_strided_slice %417 {offsets = [0, 32], sizes = [8, 32], strides = [1, 1]} : vector<8x128xf32> to vector<8x32xf32>
    %420 = vector.extract_strided_slice %417 {offsets = [0, 64], sizes = [8, 32], strides = [1, 1]} : vector<8x128xf32> to vector<8x32xf32>
    %421 = vector.extract_strided_slice %417 {offsets = [0, 96], sizes = [8, 32], strides = [1, 1]} : vector<8x128xf32> to vector<8x32xf32>
    %422 = arith.mulf %419, %404 : vector<8x32xf32>
    %423 = arith.mulf %418, %420 : vector<8x32xf32>
    %424 = arith.addf %422, %423 : vector<8x32xf32>
    %425 = math.tanh %424 : vector<8x32xf32>
    %426 = arith.mulf %421, %425 : vector<8x32xf32>
    %427 = vector.extract_strided_slice %426 {offsets = [0, 0], sizes = [4, 32], strides = [1, 1]} : vector<8x32xf32> to vector<4x32xf32>
    %428 = vector.extract_strided_slice %426 {offsets = [4, 0], sizes = [4, 32], strides = [1, 1]} : vector<8x32xf32> to vector<4x32xf32>
    %cst_76 = arith.constant dense<0.000000e+00> : vector<8x256xf32>
    %429 = tpu.matmul %426, %286, %cst_76 {dimension_numbers = #tpu.dot_dimension_numbers<[1], [0], [0], [1], [0, 0, 1, 1], [], []>} : vector<8x32xf32>, vector<32x256xf32>, vector<8x256xf32> -> vector<8x256xf32>
    %430 = vector.extract_strided_slice %429 {offsets = [0, 0], sizes = [8, 128], strides = [1, 1]} : vector<8x256xf32> to vector<8x128xf32>
    %431 = vector.extract_strided_slice %429 {offsets = [0, 128], sizes = [8, 128], strides = [1, 1]} : vector<8x256xf32> to vector<8x128xf32>
    %432 = arith.select %3, %430, %431 : vector<8x128xi1>, vector<8x128xf32>
    %433 = arith.addf %432, %285 : vector<8x128xf32>
    %434 = arith.mulf %433, %11 : vector<8x128xf32>
    %435 = math.tanh %434 : vector<8x128xf32>
    %436 = arith.mulf %435, %11 : vector<8x128xf32>
    %437 = arith.addf %436, %14 : vector<8x128xf32>
    %438 = vector.extract_strided_slice %437 {offsets = [0, 0], sizes = [8, 32], strides = [1, 1]} : vector<8x128xf32> to vector<8x32xf32>
    %439 = vector.extract_strided_slice %437 {offsets = [0, 32], sizes = [8, 32], strides = [1, 1]} : vector<8x128xf32> to vector<8x32xf32>
    %440 = vector.extract_strided_slice %437 {offsets = [0, 64], sizes = [8, 32], strides = [1, 1]} : vector<8x128xf32> to vector<8x32xf32>
    %441 = vector.extract_strided_slice %437 {offsets = [0, 96], sizes = [8, 32], strides = [1, 1]} : vector<8x128xf32> to vector<8x32xf32>
    %442 = arith.mulf %439, %424 : vector<8x32xf32>
    %443 = arith.mulf %438, %440 : vector<8x32xf32>
    %444 = arith.addf %442, %443 : vector<8x32xf32>
    %445 = math.tanh %444 : vector<8x32xf32>
    %446 = arith.mulf %441, %445 : vector<8x32xf32>
    %447 = vector.extract_strided_slice %446 {offsets = [0, 0], sizes = [4, 32], strides = [1, 1]} : vector<8x32xf32> to vector<4x32xf32>
    %448 = vector.extract_strided_slice %446 {offsets = [4, 0], sizes = [4, 32], strides = [1, 1]} : vector<8x32xf32> to vector<4x32xf32>
    %449 = arith.addf %307, %327 : vector<4x32xf32>
    %450 = arith.addf %308, %328 : vector<4x32xf32>
    %451 = arith.addf %449, %347 : vector<4x32xf32>
    %452 = arith.addf %450, %348 : vector<4x32xf32>
    %453 = arith.addf %451, %367 : vector<4x32xf32>
    %454 = arith.addf %452, %368 : vector<4x32xf32>
    %455 = arith.addf %453, %387 : vector<4x32xf32>
    %456 = arith.addf %454, %388 : vector<4x32xf32>
    %457 = arith.addf %455, %407 : vector<4x32xf32>
    %458 = arith.addf %456, %408 : vector<4x32xf32>
    %459 = arith.addf %457, %427 : vector<4x32xf32>
    %460 = arith.addf %458, %428 : vector<4x32xf32>
    %461 = arith.addf %459, %447 : vector<4x32xf32>
    %462 = arith.addf %460, %448 : vector<4x32xf32>
    %463 = tpu.concatenate %461, %462 in 1 : vector<4x32xf32>, vector<4x32xf32> -> vector<4x64xf32>
    %cst_77 = arith.constant 1.250000e-01 : f32
    %464 = vector.broadcast %cst_77 : f32 to vector<4x64xf32>
    %465 = arith.mulf %463, %464 : vector<4x64xf32>
    %466 = vector.extract_strided_slice %465 {offsets = [0, 0], sizes = [2, 64], strides = [1, 1]} : vector<4x64xf32> to vector<2x64xf32>
    %467 = vector.extract_strided_slice %465 {offsets = [2, 0], sizes = [2, 64], strides = [1, 1]} : vector<4x64xf32> to vector<2x64xf32>
    %468 = tpu.concatenate %466, %466, %467, %467 in 1 : vector<2x64xf32>, vector<2x64xf32>, vector<2x64xf32>, vector<2x64xf32> -> vector<2x256xf32>
    %c0_78 = arith.constant 0 : index
    %c0_79 = arith.constant 0 : index
    %469 = vector.load %arg9[%c0_78, %c0_79] : memref<256x64xf32, #tpu.memory_space<vmem>>, vector<256x64xf32>
    %cst_80 = arith.constant dense<0.000000e+00> : vector<2x64xf32>
    %470 = tpu.matmul %468, %469, %cst_80 {dimension_numbers = #tpu.dot_dimension_numbers<[1], [0], [0], [1], [0, 0, 1, 1], [], []>} : vector<2x256xf32>, vector<256x64xf32>, vector<2x64xf32> -> vector<2x64xf32>
    %c0_81 = arith.constant 0 : index
    %c0_82 = arith.constant 0 : index
    %471 = vector.load %arg10[%c0_81, %c0_82] : memref<1x64xf32, #tpu.memory_space<vmem>>, vector<1x64xf32>
    %472 = vector.broadcast %471 : vector<1x64xf32> to vector<2x64xf32>
    %473 = arith.addf %470, %472 : vector<2x64xf32>
    %cst_83 = arith.constant 0.000000e+00 : f32
    %474 = vector.broadcast %cst_83 : f32 to vector<2x64xf32>
    %475 = arith.cmpf ogt, %473, %474 : vector<2x64xf32>
    %476 = math.exp %473 : vector<2x64xf32>
    %cst_84 = arith.constant 1.000000e+00 : f32
    %477 = vector.broadcast %cst_84 : f32 to vector<2x64xf32>
    %478 = arith.subf %476, %477 : vector<2x64xf32>
    %479 = arith.select %475, %473, %478 : vector<2x64xi1>, vector<2x64xf32>
    %c0_85 = arith.constant 0 : index
    %c0_86 = arith.constant 0 : index
    %480 = vector.load %arg11[%c0_85, %c0_86] : memref<64x64xf32, #tpu.memory_space<vmem>>, vector<64x64xf32>
    %cst_87 = arith.constant dense<0.000000e+00> : vector<2x64xf32>
    %481 = tpu.matmul %479, %480, %cst_87 {dimension_numbers = #tpu.dot_dimension_numbers<[1], [0], [0], [1], [0, 0, 1, 1], [], []>} : vector<2x64xf32>, vector<64x64xf32>, vector<2x64xf32> -> vector<2x64xf32>
    %c0_88 = arith.constant 0 : index
    %c0_89 = arith.constant 0 : index
    %482 = vector.load %arg12[%c0_88, %c0_89] : memref<1x64xf32, #tpu.memory_space<vmem>>, vector<1x64xf32>
    %483 = vector.broadcast %482 : vector<1x64xf32> to vector<2x64xf32>
    %484 = arith.addf %481, %483 : vector<2x64xf32>
    %cst_90 = arith.constant 0.000000e+00 : f32
    %485 = vector.broadcast %cst_90 : f32 to vector<2x64xf32>
    %486 = arith.cmpf ogt, %484, %485 : vector<2x64xf32>
    %487 = math.exp %484 : vector<2x64xf32>
    %cst_91 = arith.constant 1.000000e+00 : f32
    %488 = vector.broadcast %cst_91 : f32 to vector<2x64xf32>
    %489 = arith.subf %487, %488 : vector<2x64xf32>
    %490 = arith.select %486, %484, %489 : vector<2x64xi1>, vector<2x64xf32>
    %c0_92 = arith.constant 0 : index
    %c0_93 = arith.constant 0 : index
    %491 = vector.load %arg13[%c0_92, %c0_93] : memref<64x3xf32, #tpu.memory_space<vmem>>, vector<64x3xf32>
    %cst_94 = arith.constant dense<0.000000e+00> : vector<2x3xf32>
    %492 = tpu.matmul %490, %491, %cst_94 {dimension_numbers = #tpu.dot_dimension_numbers<[1], [0], [0], [1], [0, 0, 1, 1], [], []>} : vector<2x64xf32>, vector<64x3xf32>, vector<2x3xf32> -> vector<2x3xf32>
    %c0_95 = arith.constant 0 : index
    %c0_96 = arith.constant 0 : index
    %493 = vector.load %arg14[%c0_95, %c0_96] : memref<1x3xf32, #tpu.memory_space<vmem>>, vector<1x3xf32>
    %494 = vector.broadcast %493 : vector<1x3xf32> to vector<2x3xf32>
    %495 = arith.addf %492, %494 : vector<2x3xf32>
    %cst_97 = arith.constant dense<0xFF800000> : vector<2xf32>
    %496 = vector.multi_reduction <maximumf>, %495, %cst_97 [1] : vector<2x3xf32> to vector<2xf32>
    %497 = vector.shape_cast %496 : vector<2xf32> to vector<2x1xf32>
    %498 = vector.broadcast %497 : vector<2x1xf32> to vector<2x3xf32>
    %499 = arith.subf %495, %498 : vector<2x3xf32>
    %500 = math.exp %499 : vector<2x3xf32>
    %cst_98 = arith.constant dense<0.000000e+00> : vector<2xf32>
    %501 = vector.multi_reduction <add>, %500, %cst_98 [1] : vector<2x3xf32> to vector<2xf32>
    %502 = vector.shape_cast %501 : vector<2xf32> to vector<2x1xf32>
    %503 = vector.broadcast %502 : vector<2x1xf32> to vector<2x3xf32>
    %504 = arith.divf %500, %503 : vector<2x3xf32>
    %c0_99 = arith.constant 0 : index
    %c0_100 = arith.constant 0 : index
    %505 = vector.load %arg15[%c0_99, %c0_100] : memref<2x3xf32, #tpu.memory_space<vmem>>, vector<2x3xf32>
    tpu.vector_store %arg15[%c0_99, %c0_100], %504 {strides = array<i32>} : memref<2x3xf32, #tpu.memory_space<vmem>>, vector<2x3xf32>,
    return
  }
}

</mosaic_0001>

<bundles_post_ra>
// kernel: esim_forward.1
= control target key start
LH: loop header
LB: loop body
LE: loop exit
PB: predicated region body
PF: predicated region fallthrough
CT: control target
= control target key end

     0   :  { %v3551_v2 = vmov 0   ;;  %s4742_s0 = inlined_call_operand.vmem [shape: s32[64,1], index: 0, kind: input, shape index: {}]   ;;  %s4743_s1 = inlined_call_operand.vmem [shape: f32[32,32], index: 1, kind: input, shape index: {}]   ;;  %s4744_s2 = inlined_call_operand.vmem [shape: f32[64,32], index: 2, kind: input, shape index: {}]   ;;  %s4745_s3 = inlined_call_operand.vmem [shape: bf16[32,256], index: 3, kind: input, shape index: {}]   ;;  %s4746_s4 = inlined_call_operand.vmem [shape: f32[32,256], index: 4, kind: input, shape index: {}]   ;;  %s4747_s5 = inlined_call_operand.vmem [shape: f32[1,256], index: 5, kind: input, shape index: {}]   ;;  %s4748_s6 = inlined_call_operand.vmem [shape: bf16[256,256], index: 6, kind: input, shape index: {}]   ;;  %s4749_s7 = inlined_call_operand.vmem [shape: f32[32,256], index: 7, kind: input, shape index: {}]   ;;  %s4750_s8 = inlined_call_operand.vmem [shape: f32[1,256], index: 8, kind: input, shape index: {}]   ;;  %s4751_s9 = inlined_call_operand.vmem [shape: f32[256,64], index: 9, kind: input, shape index: {}]   ;;  %s4752_s10 = inlined_call_operand.vmem [shape: f32[1,64], index: 10, kind: input, shape index: {}]   ;;  %s4753_s11 = inlined_call_operand.vmem [shape: f32[64,64], index: 11, kind: input, shape index: {}]   ;;  %s4754_s12 = inlined_call_operand.vmem [shape: f32[1,64], index: 12, kind: input, shape index: {}]   ;;  %s4755_s13 = inlined_call_operand.vmem [shape: f32[64,3], index: 13, kind: input, shape index: {}]   ;;  %s4756_s14 = inlined_call_operand.vmem [shape: f32[1,3], index: 14, kind: input, shape index: {}]   ;;  %s4757_s15 = inlined_call_operand.hbm [shape: f32[2,3], index: 15, kind: output, shape index: {}]  }
   0x1   :  { %v62_v0 = vld [vmem:[%s4742_s0] sm:$0xff]  ;;  %v64_v1 = vld [vmem:[%s4742_s0 + $0x10] sm:$0xff]  ;;  %3360 = vset.pattern.permute.xlu0 %v3551_v2  ;;  %3361 = vset.pattern.permute.xlu1 %v3551_v2  ;;  %v125_v3 = vld [vmem:[%s4744_s2 + $0x38] sm:$0xff] }
   0x2   :  { %71 = vperm.xlu0 %3360, %v62_v0   ;;  %77 = vperm.xlu1 %3361, %v64_v1   ;;  %v124_v4 = vld [vmem:[%s4744_s2 + $0x30] sm:$0xff]  ;;  %v63_v5 = vld [vmem:[%s4742_s0 + $0x8] sm:$0xff]  ;;  %v65_v6 = vld [vmem:[%s4742_s0 + $0x18] sm:$0xff] }
   0x3   :  { %3259 = vmatprep.subr.mxu0 %v125_v3  ;;  %341 = vmatprep.mubr.bf16.mxu1 %v3551_v2  ;;  %v123_v7 = vld [vmem:[%s4744_s2 + $0x28] sm:$0xff]  ;;  %v66_v8 = vld [vmem:[%s4742_s0 + $0x20] sm:$0xff]  ;;  %v121_v11 = vld [vmem:[%s4744_s2 + $0x18] sm:$0xff] }
   0x4   :  { %3260 = vmatpush3.msra.mxu0 %v125_v3  ;;  %v67_v9 = vld [vmem:[%s4742_s0 + $0x28] sm:$0xff]  ;;  %v122_v10 = vld [vmem:[%s4744_s2 + $0x20] sm:$0xff]  ;;  %v68_v12 = vld [vmem:[%s4742_s0 + $0x30] sm:$0xff] }
   0x5   :  { %3261 = vmatprep.subr.mxu0 %v124_v4  ;;  %v120_v13 = vld [vmem:[%s4744_s2 + $0x10] sm:$0xff]  ;;  %v119_v14 = vld [vmem:[%s4744_s2 + $0x8] sm:$0xff]  ;;  %v69_v15 = vld [vmem:[%s4742_s0 + $0x38] sm:$0xff] }
   0x6   :  { %74 = vperm.xlu0 %3360, %v63_v5   ;;  %80 = vperm.xlu1 %3361, %v65_v6   ;;  %v118_v16 = vld [vmem:[%s4744_s2] sm:$0xff]  ;;  %v3387_v17 = vld [vmem:[%s4745_s3 + $0x14] ss:$8 sps:$4 sm:$0xff]   ;;  %v3389_v18 = vld [vmem:[%s4745_s3 + $0x10] ss:$8 sps:$4 sm:$0xff]  }
   0x7   :  { %3262 = vmatpush3.msra.mxu0 %v124_v4  ;;  %v3698_v19 = vld [vmem:[%s4746_s4 + $0x38] sm:$0xff]  ;;  %321 = vmatprep.subr.bf16.mxu1 %v3387_v17 }
   0x8   :  { %3263 = vmatprep.subr.mxu0 %v123_v7  ;;  %322 = vmatpush1.bf16.msra.mxu1 %v3389_v18 }
   0x9   :  { %3264 = vmatpush3.msra.mxu0 %v123_v7 }
   0xa   :  { %83 = vperm.xlu0 %3360, %v66_v8   ;;  %86 = vperm.xlu1 %3361, %v67_v9  }
   0xb   :  { %3265 = vmatprep.subr.mxu0 %v122_v10 }
   0xc   :  { %3266 = vmatpush3.msra.mxu0 %v122_v10 }
   0xd   :  { %3267 = vmatprep.subr.mxu0 %v121_v11 }
   0xe   :  { %89 = vperm.xlu0 %3360, %v68_v12   ;;  %3268 = vmatpush3.msra.mxu0 %v121_v11 }
   0xf   :  { %3269 = vmatprep.subr.mxu0 %v120_v13  ;;  %92 = vperm.xlu1 %3361, %v69_v15  }
  0x10   :  { %3270 = vmatpush3.msra.mxu0 %v120_v13 }
  0x11   :  { %3271 = vmatprep.subr.mxu0 %v119_v14 }
  0x12   :  { %3272 = vmatpush3.msra.mxu0 %v119_v14 }
  0x13   :  { %3273 = vmatprep.subr.mxu0 %v118_v16 }
  0x14   :  { %3274 = vmatpush3.msra.mxu0 %v118_v16 }
  0x15   :  { %20 = vsyncpa [#allocation4], 0  ;;  %536 = vmatprep.subr.mxu0 %v3698_v19  ;;  %v52_v20 = vlaneseq  ;;  %vm126_vm0 = vcmask 523264   ;;  %v3552_v24 = vmov 0.0   ;;  %v3714_v29 = vld [vmem:[%s4746_s4 + $0x30] sm:$0xff]  ;;  %v3720_v31 = vld [vmem:[%s4746_s4 + $0x28] sm:$0xff] }
  0x16   :  { %v3726_v32 = vld [vmem:[%s4746_s4 + $0x20] sm:$0xff]  ;;  %v3734_v36 = vld [vmem:[%s4746_s4 + $0x18] sm:$0xff]  ;;  %v3742_v37 = vld [vmem:[%s4746_s4 + $0x10] sm:$0xff]  ;;  %vm296_vm9 = vcmask 261120   ;;  %v3553_v13 = vmov 0.5   ;;  %s3555_s25 = smov 32  }
  0x17   :  { %v3702_v21 = vand.u32 127, %v52_v20  ;;  %v3390_v44 = vld [vmem:[%s4745_s3 + $0x4] ss:$8 sps:$4 sm:$0xff]   ;;  %v3392_v45 = vld [vmem:[%s4745_s3] ss:$8 sps:$4 sm:$0xff]   ;;  %v3806_v60 = vshrl.u32 %v52_v20, 7 }
  0x18   :  { %323 = vmatprep.subr.bf16.mxu1 %v3390_v44  ;;  %v3768_v46 = vld [vmem:[%s4746_s4 + $0x8] sm:$0xff]  ;;  %v3774_v47 = vld [vmem:[%s4746_s4] sm:$0xff] }
  0x19   :  { %324 = vmatpush1.bf16.msra.mxu1 %v3392_v45  ;;  %v268_v61 = vsub.s32 0, %v3806_v60  ;;  %v272_v62 = vsub.s32 1, %v3806_v60  ;;  %v264_v63 = vld [vmem:[%s4747_s5] sm:$0x3]  ;;  %v393_v1 = vand.u32 7, %v3806_v60  ;;  %vm57_vm10 = vcmp.ge.s32.totalorder %v3702_v21, 64 }
  0x1a   :  { %734 = vmatprep.subr.mxu1 %v3698_v19  ;;  %vm58_vm11 = vcmp.lt.s32.totalorder %v3702_v21, 96  ;;  %vm56_vm12 = vcmp.lt.s32.totalorder %v3806_v60, 4  ;;  %s3554_s5 = smov 64  }
  0x1b   :  { %v269_v3 = vrot.slane %v264_v63, %v268_v61  ;;  %v3819_v4 = vrot.slane %v264_v63, %v272_v62  ;;  %vm3824_vm13 = vmand %vm57_vm10, %vm58_vm11  ;;  %vm485_vm14 = vcmp.lt.s32.totalorder %v393_v1, 4  ;;  %v385_v63 = vadd.s32 32, %v3806_v60 }
  0x1c   :  { %v3831_v14 = vsel %vm3824_vm13, 1.0, %v3553_v13  ;;  %vm1907_vm10 = vcmask 1043456  }
  0x7d   :  { %v72_v22 = vpop.permute.xlu0 %71  ;;  %v78_v23 = vpop.permute.xlu1 %77 }
  0x7e   :  { %vm94_vm1 = vcmp.eq.s32.totalorder %v3702_v21, %v72_v22  ;;  %vm96_vm2 = vcmp.eq.s32.totalorder %v3702_v21, %v78_v23 }
  0x7f   :  { %v3085_v25 = vsel %vm94_vm1, 1.0, %v3552_v24  ;;  %v3087_v28 = vsel %vm96_vm2, 1.0, %v3552_v24 }
  0x80   :  { %3275 = vmatprep.mubr.msk.f32.mxu0 %vm126_vm0, %v3085_v25 }
  0x81   :  { %v75_v26 = vpop.permute.xlu0 %74  ;;  %v81_v27 = vpop.permute.xlu1 %80 }
  0x82   :  { %vm95_vm3 = vcmp.eq.s32.totalorder %v3702_v21, %v75_v26  ;;  %vm97_vm4 = vcmp.eq.s32.totalorder %v3702_v21, %v81_v27 }
  0x83   :  { %v3086_v30 = vsel %vm95_vm3, 1.0, %v3552_v24  ;;  %v3088_v33 = vsel %vm97_vm4, 1.0, %v3552_v24 }
  0x84   :  { %3276 = vmatmul.mubr.msk.f32.vlgmr.msra.gmra.mxu0 %vm126_vm0, %v3086_v30 }
  0x85   :  { %v84_v34 = vpop.permute.xlu0 %83  ;;  %3278 = vmatprep.mubr.msk.f32.mxu0 %vm126_vm0, %v3087_v28  ;;  %v87_v35 = vpop.permute.xlu1 %86  ;;  %537 = vmatpush1.msra.mxu0 %v3714_v29 }
  0x86   :  { %vm98_vm5 = vcmp.eq.s32.totalorder %v3702_v21, %v84_v34  ;;  %vm99_vm6 = vcmp.eq.s32.totalorder %v3702_v21, %v87_v35  ;;  %538 = vmatprep.subr.mxu0 %v3720_v31  ;;  %v3853_v34 = vsel %vm3824_vm13, 0.0, %v3553_v13  ;;  %vm3058_vm13 = vcmask 17408  }
  0x87   :  { %v3089_v38 = vsel %vm98_vm5, 1.0, %v3552_v24  ;;  %539 = vmatpush1.msra.mxu0 %v3726_v32  ;;  %v3090_v39 = vsel %vm99_vm6, 1.0, %v3552_v24 }
  0x88   :  { %3279 = vmatmul.mubr.msk.f32.gmra.mxu0 %vm126_vm0, %v3088_v33  ;;  %540 = vmatprep.subr.mxu0 %v3734_v36 }
  0x89   :  { %v90_v40 = vpop.permute.xlu0 %89  ;;  %3281 = vmatprep.mubr.msk.f32.mxu0 %vm126_vm0, %v3089_v38  ;;  %541 = vmatpush1.msra.mxu0 %v3742_v37 }
  0x8a   :  { %vm100_vm7 = vcmp.eq.s32.totalorder %v3702_v21, %v90_v40  ;;  %v93_v41 = vpop.permute.xlu1 %92  ;;  %542 = vmatprep.subr.mxu0 %v3768_v46 }
  0x8b   :  { %v3091_v42 = vsel %vm100_vm7, 1.0, %v3552_v24  ;;  %vm101_vm8 = vcmp.eq.s32.totalorder %v3702_v21, %v93_v41  ;;  %543 = vmatpush1.msra.mxu0 %v3774_v47  ;;  %vm1300_vm7 = vcmask 257024  }
  0x8c   :  { %3282 = vmatmul.mubr.msk.f32.gmra.mxu0 %vm126_vm0, %v3090_v39  ;;  %v3092_v43 = vsel %vm101_vm8, 1.0, %v3552_v24  ;;  %635 = vmatprep.subr.mxu0 %v3698_v19  ;;  %vm1305_vm8 = vcmask 523524  }
  0x8d   :  { %3284 = vmatprep.mubr.msk.f32.mxu0 %vm126_vm0, %v3091_v42 }
  0x90   :  { %3285 = vmatmul.mubr.msk.f32.gmra.mxu0 %vm126_vm0, %v3092_v43 }
  0x91   :  { %576 = vmatprep.mubr.f32.mxu0 %v3552_v24 }
  0x94   :  { %577 = vmatmul.mubr.f32.vlgmr.msra.gmra.mxu0 %v3552_v24 }
  0x95   :  { %636 = vmatpush1.msra.mxu0 %v3714_v29  ;;  %675 = vmatprep.mubr.f32.mxu0 %v3552_v24 }
  0x96   :  { %637 = vmatprep.subr.mxu0 %v3720_v31 }
  0x97   :  { %638 = vmatpush1.msra.mxu0 %v3726_v32 }
  0x98   :  { %639 = vmatprep.subr.mxu0 %v3734_v36 }
  0x99   :  { %640 = vmatpush1.msra.mxu0 %v3742_v37 }
  0x9a   :  { %641 = vmatprep.subr.mxu0 %v3768_v46 }
  0x9b   :  { %642 = vmatpush1.msra.mxu0 %v3774_v47 }
  0x9c   :  { %833 = vmatprep.subr.mxu0 %v3698_v19 }
 0x144   :  { %v3277_v48 = vpop.f32.mrf.mxu0 }
 0x146   :  { %v217_v49 = vpop.f32.mrf.mxu0 }
 0x147   :  { %v256_v50 = vpack.c.bf16 %v3277_v48, %v217_v49 }
 0x148   :  { %v3280_v51 = vpop.f32.mrf.mxu0 }
 0x149   :  { %3105 = vmatmul.mubr.msk.bf16.vlgmr.msra.gmra.mxu1 %vm296_vm9, %v256_v50 }
 0x14a   :  { %v227_v52 = vpop.f32.mrf.mxu0  ;;  %351 = vmatprep.mubr.bf16.mxu1 %v3551_v2  ;;  %735 = vmatpush1.msra.mxu1 %v3714_v29 }
 0x14b   :  { %736 = vmatprep.subr.mxu1 %v3720_v31  ;;  %v257_v53 = vpack.c.bf16 %v3280_v51, %v227_v52 }
 0x14c   :  { %737 = vmatpush1.msra.mxu1 %v3726_v32  ;;  %v3283_v54 = vpop.f32.mrf.mxu0 }
 0x14d   :  { %738 = vmatprep.subr.mxu1 %v3734_v36 }
 0x14e   :  { %739 = vmatpush1.msra.mxu1 %v3742_v37  ;;  %v237_v55 = vpop.f32.mrf.mxu0 }
 0x14f   :  { %740 = vmatprep.subr.mxu1 %v3768_v46  ;;  %v258_v56 = vpack.c.bf16 %v3283_v54, %v237_v55 }
 0x150   :  { %741 = vmatpush1.msra.mxu1 %v3774_v47  ;;  %v3286_v57 = vpop.f32.mrf.mxu0 }
 0x151   :  { %3106 = vmatmul.mubr.msk.bf16.gmra.mxu1 %vm296_vm9, %v257_v53  ;;  %932 = vmatprep.subr.mxu1 %v3698_v19 }
 0x152   :  { %361 = vmatprep.mubr.bf16.mxu1 %v3551_v2  ;;  %v247_v58 = vpop.f32.mrf.mxu0 }
 0x153   :  { %v259_v59 = vpack.c.bf16 %v3286_v57, %v247_v58  ;;  %v383_v58 = vadd.s32 16, %v3806_v60 }
 0x154   :  { %v578_v0 = vpop.f32.mrf.mxu0 }
 0x155   :  { %v407_v7 = vand.u32 7, %v383_v58 }
 0x156   :  { %v580_v8 = vpop.f32.mrf.mxu0 }
 0x157   :  { %v583_v16 = vsel %vm56_vm12, %v578_v0, %v580_v8  ;;  %v386_v0 = vadd.s32 40, %v3806_v60  ;;  %vm3892_vm1 = vcmp.lt.s32.totalorder %v407_v7, 4 }
 0x159   :  { %3107 = vmatmul.mubr.msk.bf16.gmra.mxu1 %vm296_vm9, %v258_v56 }
 0x15a   :  { %371 = vmatprep.mubr.bf16.mxu1 %v3551_v2  ;;  %v382_v2 = vadd.s32 8, %v3806_v60 }
 0x15c   :  { %v400_v9 = vand.u32 7, %v382_v2 }
 0x15e   :  { %vm3835_vm15 = vcmp.lt.s32.totalorder %v400_v9, 4  ;;  %v421_v9 = vand.u32 7, %v385_v63 }
 0x160   :  { %vm3900_vm3 = vcmp.lt.s32.totalorder %v421_v9, 4 }
 0x161   :  { %3108 = vmatmul.mubr.msk.bf16.gmra.mxu1 %vm296_vm9, %v259_v59  ;;  %v384_v59 = vadd.s32 24, %v3806_v60 }
 0x162   :  { %774 = vmatprep.mubr.f32.mxu1 %v3552_v24 }
 0x163   :  { %v414_v8 = vand.u32 7, %v384_v59 }
 0x165   :  { %vm3896_vm2 = vcmp.lt.s32.totalorder %v414_v8, 4 }
 0x209   :  { %v343_v5 = vpop.f32.mrf.mxu1 }
 0x20a   :  { %v344_v10 = vadd.f32 %v343_v5, %v269_v3  ;;  %v387_v5 = vadd.s32 48, %v3806_v60 }
 0x20b   :  { %v345_v6 = vpop.f32.mrf.mxu1 }
 0x20c   :  { %v346_v11 = vadd.f32 %v345_v6, %v3819_v4  ;;  %v388_v6 = vadd.s32 56, %v3806_v60 }
 0x20d   :  { %v347_v12 = vpop.f32.mrf.mxu1 }
 0x20e   :  { %v493_v15 = vsel %vm485_vm14, %v344_v10, %v346_v11  ;;  %v3839_v21 = vadd.f32 %v347_v12, %v269_v3  ;;  %v428_v10 = vand.u32 7, %v386_v0  ;;  %v435_v12 = vand.u32 7, %v387_v5 }
 0x20f   :  { %v584_v17 = vadd.f32 %v583_v16, %v493_v15  ;;  %v349_v18 = vpop.f32.mrf.mxu1  ;;  %v442_v13 = vand.u32 7, %v388_v6 }
 0x210   :  { %v3842_v22 = vadd.f32 %v349_v18, %v3819_v4  ;;  %vm3904_vm4 = vcmp.lt.s32.totalorder %v428_v10, 4  ;;  %vm3924_vm5 = vcmp.lt.s32.totalorder %v435_v12, 4 }
 0x211   :  { %v585_v23 = vmul.f32 %v584_v17, %v3831_v14  ;;  %v353_v26 = vpop.f32.mrf.mxu1  ;;  %vm3928_vm6 = vcmp.lt.s32.totalorder %v442_v13, 4 }
 0x212   :  { %v494_v25 = vsel %vm3835_vm15, %v3839_v21, %v3842_v22  ;;  %v3882_v1 = vadd.f32 %v353_v26, %v269_v3 }
 0x213   :  { %3441 = vtanh.f32 %v585_v23  ;;  %v355_v27 = vpop.f32.mrf.mxu1 }
 0x214   :  { %v3885_v2 = vadd.f32 %v355_v27, %v3819_v4 }
 0x215   :  { %v357_v28 = vpop.f32.mrf.mxu1 }
 0x216   :  { %v3849_v30 = vadd.f32 %v357_v28, %v269_v3 }
 0x217   :  { %v359_v35 = vpop.f32.mrf.mxu1 }
 0x218   :  { %v3857_v39 = vadd.f32 %v359_v35, %v3819_v4 }
 0x219   :  { %v363_v40 = vpop.f32.mrf.mxu1 }
 0x21a   :  { %v3860_v42 = vadd.f32 %v363_v40, %v269_v3  ;;  %v496_v18 = vsel %vm3896_vm2, %v3849_v30, %v3857_v39 }
 0x21b   :  { %v365_v43 = vpop.f32.mrf.mxu1 }
 0x21c   :  { %v3864_v44 = vadd.f32 %v365_v43, %v3819_v4 }
 0x21d   :  { %v367_v45 = vpop.f32.mrf.mxu1 }
 0x21e   :  { %v3866_v48 = vadd.f32 %v367_v45, %v269_v3  ;;  %v497_v23 = vsel %vm3900_vm3, %v3860_v42, %v3864_v44 }
 0x21f   :  { %v369_v49 = vpop.f32.mrf.mxu1 }
 0x220   :  { %v3442_v33 = vpop.eup %3441  ;;  %v3869_v50 = vadd.f32 %v369_v49, %v3819_v4 }
 0x221   :  { %v587_v38 = vmul.f32 %v3442_v33, %v3831_v14  ;;  %v373_v51 = vpop.f32.mrf.mxu1 }
 0x222   :  { %v3871_v52 = vadd.f32 %v373_v51, %v269_v3  ;;  %v498_v26 = vsel %vm3904_vm4, %v3866_v48, %v3869_v50 }
 0x223   :  { %v588_v41 = vadd.f32 %v587_v38, %v3853_v34  ;;  %v375_v53 = vpop.f32.mrf.mxu1 }
 0x224   :  { %v3874_v54 = vadd.f32 %v375_v53, %v3819_v4 }
 0x225   :  { %591 = vrot.lane.b32.xlu0 %v588_v41, %s3554_s5  ;;  %v377_v55 = vpop.f32.mrf.mxu1  ;;  %v589_v43 = vmul.f32 0.0, %v588_v41 }
 0x226   :  { %v3876_v56 = vadd.f32 %v377_v55, %v269_v3  ;;  %v499_v33 = vsel %vm3924_vm5, %v3871_v52, %v3874_v54 }
 0x227   :  { %v379_v57 = vpop.f32.mrf.mxu1 }
 0x228   :  { %v3890_v11 = vadd.f32 %v379_v57, %v3819_v4  ;;  %v495_v4 = vsel %vm3892_vm1, %v3882_v1, %v3885_v2 }
 0x22a   :  { %v500_v35 = vsel %vm3928_vm6, %v3876_v56, %v3890_v11 }
 0x297   :  { %v592_v38 = vpop.permute.xlu0 %591 }
 0x298   :  { %v594_v40 = vmul.f32 %v592_v38, %v588_v41 }
 0x29a   :  { %596 = vrot.lane.b32.xlu1 %v594_v40, %s3555_s25 }
 0x30c   :  { %v597_v45 = vpop.permute.xlu1 %596 }
 0x30d   :  { %v599_v49 = vadd.f32 %v597_v45, %v589_v43 }
 0x30f   :  { %3443 = vtanh.f32 %v599_v49 }
 0x31c   :  { %v3444_v51 = vpop.eup %3443 }
 0x31d   :  { %602 = vrot.lane.b32.xlu0 %v3444_v51, %s3554_s5 }
 0x38f   :  { %v603_v53 = vpop.permute.xlu0 %602 }
 0x390   :  { %v3942_v55 = vmul.f32 %v603_v53, %v588_v41 }
 0x392   :  { %607 = vrot.lane.b32.xlu1 %v3942_v55, %s3555_s25 }
 0x404   :  { %v608_v57 = vpop.permute.xlu1 %607 }
 0x405   :  { %1301 = vst.msk [vmem:[#allocation2] sm:$0xf] %vm1300_vm7, %v608_v57  ;;  %3109 = vmatmul.mubr.msk.f32.vlgmr.msra.gmra.mxu0 %vm296_vm9, %v608_v57 }
 0x406   :  { %834 = vmatpush1.msra.mxu0 %v3714_v29  ;;  %873 = vmatprep.mubr.f32.mxu0 %v3552_v24 }
 0x407   :  { %835 = vmatprep.subr.mxu0 %v3720_v31 }
 0x408   :  { %836 = vmatpush1.msra.mxu0 %v3726_v32 }
 0x409   :  { %837 = vmatprep.subr.mxu0 %v3734_v36 }
 0x40a   :  { %838 = vmatpush1.msra.mxu0 %v3742_v37 }
 0x40b   :  { %839 = vmatprep.subr.mxu0 %v3768_v46 }
 0x40c   :  { %840 = vmatpush1.msra.mxu0 %v3774_v47 }
 0x40d   :  { %1031 = vmatprep.subr.mxu0 %v3698_v19 }
 0x4c5   :  { %v677_v41 = vpop.f32.mrf.mxu0 }
 0x4c7   :  { %v679_v58 = vpop.f32.mrf.mxu0 }
 0x4c8   :  { %v682_v59 = vsel %vm56_vm12, %v677_v41, %v679_v58 }
 0x4c9   :  { %v683_v63 = vadd.f32 %v682_v59, %v494_v25 }
 0x4cb   :  { %v684_v0 = vmul.f32 %v683_v63, %v3831_v14 }
 0x4cd   :  { %3445 = vtanh.f32 %v684_v0 }
 0x4da   :  { %v3446_v5 = vpop.eup %3445 }
 0x4db   :  { %v686_v6 = vmul.f32 %v3446_v5, %v3831_v14 }
 0x4dd   :  { %v687_v7 = vadd.f32 %v686_v6, %v3853_v34 }
 0x4df   :  { %690 = vrot.lane.b32.xlu0 %v687_v7, %s3554_s5  ;;  %v688_v10 = vmul.f32 %v687_v7, %v599_v49 }
 0x551   :  { %v691_v8 = vpop.permute.xlu0 %690 }
 0x552   :  { %v693_v9 = vmul.f32 %v691_v8, %v687_v7 }
 0x554   :  { %695 = vrot.lane.b32.xlu1 %v693_v9, %s3555_s25 }
 0x5c6   :  { %v696_v20 = vpop.permute.xlu1 %695 }
 0x5c7   :  { %v698_v12 = vadd.f32 %v696_v20, %v688_v10 }
 0x5c9   :  { %3447 = vtanh.f32 %v698_v12 }
 0x5d6   :  { %v3448_v21 = vpop.eup %3447 }
 0x5d7   :  { %701 = vrot.lane.b32.xlu0 %v3448_v21, %s3554_s5 }
 0x649   :  { %v702_v22 = vpop.permute.xlu0 %701 }
 0x64a   :  { %v3970_v25 = vmul.f32 %v702_v22, %v687_v7 }
 0x64c   :  { %706 = vrot.lane.b32.xlu1 %v3970_v25, %s3555_s25 }
 0x6be   :  { %v707_v13 = vpop.permute.xlu1 %706 }
 0x6bf   :  { %1308 = vst.msk [vmem:[#allocation2 + $0x4] sm:$0xf] %vm1300_vm7, %v707_v13  ;;  %3110 = vmatmul.mubr.msk.f32.vlgmr.msra.gmra.mxu1 %vm296_vm9, %v707_v13 }
 0x6c0   :  { %933 = vmatpush1.msra.mxu1 %v3714_v29  ;;  %972 = vmatprep.mubr.f32.mxu1 %v3552_v24 }
 0x6c1   :  { %934 = vmatprep.subr.mxu1 %v3720_v31 }
 0x6c2   :  { %935 = vmatpush1.msra.mxu1 %v3726_v32 }
 0x6c3   :  { %936 = vmatprep.subr.mxu1 %v3734_v36 }
 0x6c4   :  { %937 = vmatpush1.msra.mxu1 %v3742_v37 }
 0x6c5   :  { %938 = vmatprep.subr.mxu1 %v3768_v46 }
 0x6c6   :  { %939 = vmatpush1.msra.mxu1 %v3774_v47 }
 0x6c7   :  { %1130 = vmatprep.subr.mxu1 %v3698_v19 }
 0x77f   :  { %v776_v38 = vpop.f32.mrf.mxu1 }
 0x781   :  { %v778_v40 = vpop.f32.mrf.mxu1 }
 0x782   :  { %v781_v43 = vsel %vm56_vm12, %v776_v38, %v778_v40 }
 0x783   :  { %v782_v45 = vadd.f32 %v781_v43, %v495_v4 }
 0x785   :  { %v783_v49 = vmul.f32 %v782_v45, %v3831_v14 }
 0x787   :  { %3449 = vtanh.f32 %v783_v49 }
 0x794   :  { %v3450_v51 = vpop.eup %3449 }
 0x795   :  { %v785_v53 = vmul.f32 %v3450_v51, %v3831_v14 }
 0x797   :  { %v786_v57 = vadd.f32 %v785_v53, %v3853_v34 }
 0x799   :  { %789 = vrot.lane.b32.xlu0 %v786_v57, %s3554_s5  ;;  %v787_v59 = vmul.f32 %v786_v57, %v698_v12 }
 0x80b   :  { %v790_v41 = vpop.permute.xlu0 %789 }
 0x80c   :  { %v792_v58 = vmul.f32 %v790_v41, %v786_v57 }
 0x80e   :  { %794 = vrot.lane.b32.xlu1 %v792_v58, %s3555_s25 }
 0x880   :  { %v795_v15 = vpop.permute.xlu1 %794 }
 0x881   :  { %v797_v63 = vadd.f32 %v795_v15, %v787_v59 }
 0x883   :  { %3451 = vtanh.f32 %v797_v63 }
 0x890   :  { %v3452_v1 = vpop.eup %3451 }
 0x891   :  { %800 = vrot.lane.b32.xlu0 %v3452_v1, %s3554_s5 }
 0x903   :  { %v801_v2 = vpop.permute.xlu0 %800 }
 0x904   :  { %v3998_v4 = vmul.f32 %v801_v2, %v786_v57 }
 0x906   :  { %805 = vrot.lane.b32.xlu1 %v3998_v4, %s3555_s25 }
 0x978   :  { %v806_v0 = vpop.permute.xlu1 %805 }
 0x979   :  { %1314 = vst.msk [vmem:[#allocation2 + $0x8] sm:$0xf] %vm1300_vm7, %v806_v0  ;;  %3111 = vmatmul.mubr.msk.f32.vlgmr.msra.gmra.mxu0 %vm296_vm9, %v806_v0 }
 0x97a   :  { %1032 = vmatpush1.msra.mxu0 %v3714_v29  ;;  %1071 = vmatprep.mubr.f32.mxu0 %v3552_v24 }
 0x97b   :  { %1033 = vmatprep.subr.mxu0 %v3720_v31 }
 0x97c   :  { %1034 = vmatpush1.msra.mxu0 %v3726_v32 }
 0x97d   :  { %1035 = vmatprep.subr.mxu0 %v3734_v36 }
 0x97e   :  { %1036 = vmatpush1.msra.mxu0 %v3742_v37 }
 0x97f   :  { %1037 = vmatprep.subr.mxu0 %v3768_v46 }
 0x980   :  { %1038 = vmatpush1.msra.mxu0 %v3774_v47 }
 0x981   :  { %1229 = vmatprep.subr.mxu0 %v3698_v19 }
 0xa39   :  { %v875_v5 = vpop.f32.mrf.mxu0 }
 0xa3b   :  { %v877_v6 = vpop.f32.mrf.mxu0 }
 0xa3c   :  { %v880_v7 = vsel %vm56_vm12, %v875_v5, %v877_v6 }
 0xa3d   :  { %v881_v8 = vadd.f32 %v880_v7, %v496_v18 }
 0xa3f   :  { %v882_v9 = vmul.f32 %v881_v8, %v3831_v14 }
 0xa41   :  { %3453 = vtanh.f32 %v882_v9 }
 0xa4e   :  { %v3454_v10 = vpop.eup %3453 }
 0xa4f   :  { %v884_v20 = vmul.f32 %v3454_v10, %v3831_v14 }
 0xa51   :  { %v885_v12 = vadd.f32 %v884_v20, %v3853_v34 }
 0xa53   :  { %888 = vrot.lane.b32.xlu0 %v885_v12, %s3554_s5  ;;  %v886_v22 = vmul.f32 %v885_v12, %v797_v63 }
 0xac5   :  { %v889_v19 = vpop.permute.xlu0 %888 }
 0xac6   :  { %v891_v21 = vmul.f32 %v889_v19, %v885_v12 }
 0xac8   :  { %893 = vrot.lane.b32.xlu1 %v891_v21, %s3555_s25 }
 0xb3a   :  { %v894_v3 = vpop.permute.xlu1 %893 }
 0xb3b   :  { %v896_v13 = vadd.f32 %v894_v3, %v886_v22 }
 0xb3d   :  { %3455 = vtanh.f32 %v896_v13 }
 0xb4a   :  { %v3456_v30 = vpop.eup %3455 }
 0xb4b   :  { %899 = vrot.lane.b32.xlu0 %v3456_v30, %s3554_s5 }
 0xbbd   :  { %v900_v39 = vpop.permute.xlu0 %899 }
 0xbbe   :  { %v4026_v18 = vmul.f32 %v900_v39, %v885_v12 }
 0xbc0   :  { %904 = vrot.lane.b32.xlu1 %v4026_v18, %s3555_s25 }
 0xc32   :  { %v905_v38 = vpop.permute.xlu1 %904 }
 0xc33   :  { %1320 = vst.msk [vmem:[#allocation2 + $0xc] sm:$0xf] %vm1300_vm7, %v905_v38  ;;  %3112 = vmatmul.mubr.msk.f32.vlgmr.msra.gmra.mxu1 %vm296_vm9, %v905_v38 }
 0xc34   :  { %1131 = vmatpush1.msra.mxu1 %v3714_v29  ;;  %1170 = vmatprep.mubr.f32.mxu1 %v3552_v24 }
 0xc35   :  { %1132 = vmatprep.subr.mxu1 %v3720_v31 }
 0xc36   :  { %1133 = vmatpush1.msra.mxu1 %v3726_v32 }
 0xc37   :  { %1134 = vmatprep.subr.mxu1 %v3734_v36 }
 0xc38   :  { %1135 = vmatpush1.msra.mxu1 %v3742_v37 }
 0xc39   :  { %1136 = vmatprep.subr.mxu1 %v3768_v46 }
 0xc3a   :  { %1137 = vmatpush1.msra.mxu1 %v3774_v47 }
 0xcf3   :  { %v974_v40 = vpop.f32.mrf.mxu1 }
 0xcf5   :  { %v976_v43 = vpop.f32.mrf.mxu1 }
 0xcf6   :  { %v979_v45 = vsel %vm56_vm12, %v974_v40, %v976_v43 }
 0xcf7   :  { %v980_v49 = vadd.f32 %v979_v45, %v497_v23 }
 0xcf9   :  { %v981_v51 = vmul.f32 %v980_v49, %v3831_v14 }
 0xcfb   :  { %3457 = vtanh.f32 %v981_v51 }
 0xd08   :  { %v3458_v53 = vpop.eup %3457 }
 0xd09   :  { %v983_v57 = vmul.f32 %v3458_v53, %v3831_v14 }
 0xd0b   :  { %v984_v41 = vadd.f32 %v983_v57, %v3853_v34 }
 0xd0d   :  { %987 = vrot.lane.b32.xlu0 %v984_v41, %s3554_s5  ;;  %v985_v15 = vmul.f32 %v984_v41, %v896_v13 }
 0xd7f   :  { %v988_v58 = vpop.permute.xlu0 %987 }
 0xd80   :  { %v990_v59 = vmul.f32 %v988_v58, %v984_v41 }
 0xd82   :  { %992 = vrot.lane.b32.xlu1 %v990_v59, %s3555_s25 }
 0xdf4   :  { %v993_v16 = vpop.permute.xlu1 %992 }
 0xdf5   :  { %v995_v63 = vadd.f32 %v993_v16, %v985_v15 }
 0xdf7   :  { %3459 = vtanh.f32 %v995_v63 }
 0xe04   :  { %v3460_v42 = vpop.eup %3459 }
 0xe05   :  { %998 = vrot.lane.b32.xlu0 %v3460_v42, %s3554_s5 }
 0xe77   :  { %v999_v44 = vpop.permute.xlu0 %998 }
 0xe78   :  { %v4053_v23 = vmul.f32 %v999_v44, %v984_v41 }
 0xe7a   :  { %1003 = vrot.lane.b32.xlu1 %v4053_v23, %s3555_s25 }
 0xeec   :  { %v4057_v1 = vpop.permute.xlu1 %1003 }
 0xeed   :  { %3113 = vmatmul.mubr.msk.f32.vlgmr.msra.gmra.mxu0 %vm296_vm9, %v4057_v1 }
 0xeee   :  { %1230 = vmatpush1.msra.mxu0 %v3714_v29  ;;  %1269 = vmatprep.mubr.f32.mxu0 %v3552_v24 }
 0xeef   :  { %1231 = vmatprep.subr.mxu0 %v3720_v31 }
 0xef0   :  { %1232 = vmatpush1.msra.mxu0 %v3726_v32 }
 0xef1   :  { %1233 = vmatprep.subr.mxu0 %v3734_v36 }
 0xef2   :  { %1234 = vmatpush1.msra.mxu0 %v3742_v37 }
 0xef3   :  { %1235 = vmatprep.subr.mxu0 %v3768_v46 }
 0xef4   :  { %1236 = vmatpush1.msra.mxu0 %v3774_v47 }
 0xfad   :  { %v1073_v2 = vpop.f32.mrf.mxu0 }
 0xfaf   :  { %v1075_v0 = vpop.f32.mrf.mxu0 }
 0xfb0   :  { %v1078_v5 = vsel %vm56_vm12, %v1073_v2, %v1075_v0 }
 0xfb1   :  { %v1079_v29 = vadd.f32 %v1078_v5, %v498_v26 }
 0xfb3   :  { %v1080_v31 = vmul.f32 %v1079_v29, %v3831_v14 }
 0xfb5   :  { %3461 = vtanh.f32 %v1080_v31 }
 0xfc2   :  { %v3462_v32 = vpop.eup %3461 }
 0xfc3   :  { %v1082_v36 = vmul.f32 %v3462_v32, %v3831_v14  ;;  %v1357_v32 = vld [vmem:[%s4743_s1 + $0x8] sm:$0xff] }
 0xfc5   :  { %v1083_v37 = vadd.f32 %v1082_v36, %v3853_v34 }
 0xfc7   :  { %1086 = vrot.lane.b32.xlu0 %v1083_v37, %s3554_s5  ;;  %v1084_v6 = vmul.f32 %v1083_v37, %v995_v63 }
0x1039   :  { %v1087_v46 = vpop.permute.xlu0 %1086 }
0x103a   :  { %v1089_v47 = vmul.f32 %v1087_v46, %v1083_v37 }
0x103c   :  { %1091 = vrot.lane.b32.xlu1 %v1089_v47, %s3555_s25 }
0x10ae   :  { %v1092_v17 = vpop.permute.xlu1 %1091 }
0x10af   :  { %v1094_v7 = vadd.f32 %v1092_v17, %v1084_v6 }
0x10b1   :  { %3463 = vtanh.f32 %v1094_v7 }
0x10be   :  { %v3464_v48 = vpop.eup %3463 }
0x10bf   :  { %1097 = vrot.lane.b32.xlu0 %v3464_v48, %s3554_s5  ;;  %v1358_v48 = vld [vmem:[%s4743_s1 + $0x10] sm:$0xff] }
0x1131   :  { %v1098_v50 = vpop.permute.xlu0 %1097 }
0x1132   :  { %v4082_v26 = vmul.f32 %v1098_v50, %v1083_v37  ;;  %v1356_v37 = vld [vmem:[%s4743_s1] sm:$0xff] }
0x1134   :  { %1102 = vrot.lane.b32.xlu1 %v4082_v26, %s3555_s25 }
0x11a6   :  { %v1103_v8 = vpop.permute.xlu1 %1102 }
0x11a7   :  { %3114 = vmatmul.mubr.msk.f32.vlgmr.msra.gmra.mxu1 %vm296_vm9, %v1103_v8 }
0x1267   :  { %v1172_v9 = vpop.f32.mrf.mxu1 }
0x1269   :  { %v1174_v10 = vpop.f32.mrf.mxu1 }
0x126a   :  { %v1177_v20 = vsel %vm56_vm12, %v1172_v9, %v1174_v10 }
0x126b   :  { %v1178_v12 = vadd.f32 %v1177_v20, %v499_v33 }
0x126d   :  { %v1179_v19 = vmul.f32 %v1178_v12, %v3831_v14 }
0x126f   :  { %3465 = vtanh.f32 %v1179_v19 }
0x127c   :  { %v3466_v21 = vpop.eup %3465 }
0x127d   :  { %v1181_v22 = vmul.f32 %v3466_v21, %v3831_v14 }
0x127f   :  { %v1182_v3 = vadd.f32 %v1181_v22, %v3853_v34 }
0x1281   :  { %1185 = vrot.lane.b32.xlu0 %v1182_v3, %s3554_s5  ;;  %v1183_v39 = vmul.f32 %v1182_v3, %v1094_v7 }
0x12f3   :  { %v1186_v13 = vpop.permute.xlu0 %1185 }
0x12f4   :  { %v1188_v30 = vmul.f32 %v1186_v13, %v1182_v3 }
0x12f6   :  { %1190 = vrot.lane.b32.xlu1 %v1188_v30, %s3555_s25 }
0x1368   :  { %v1191_v27 = vpop.permute.xlu1 %1190 }
0x1369   :  { %v1193_v38 = vadd.f32 %v1191_v27, %v1183_v39 }
0x136b   :  { %3467 = vtanh.f32 %v1193_v38 }
0x1378   :  { %v3468_v52 = vpop.eup %3467 }
0x1379   :  { %1196 = vrot.lane.b32.xlu0 %v3468_v52, %s3554_s5 }
0x13eb   :  { %v1197_v54 = vpop.permute.xlu0 %1196 }
0x13ec   :  { %v1199_v33 = vmul.f32 %v1197_v54, %v1182_v3 }
0x13ee   :  { %1201 = vrot.lane.b32.xlu1 %v1199_v33, %s3555_s25 }
0x1460   :  { %v1202_v40 = vpop.permute.xlu1 %1201 }
0x1461   :  { %3115 = vmatmul.mubr.msk.f32.vlgmr.msra.gmra.mxu0 %vm296_vm9, %v1202_v40 }
0x1521   :  { %v1271_v43 = vpop.f32.mrf.mxu0 }
0x1523   :  { %v1273_v45 = vpop.f32.mrf.mxu0 }
0x1524   :  { %v1276_v49 = vsel %vm56_vm12, %v1271_v43, %v1273_v45 }
0x1525   :  { %v1277_v51 = vadd.f32 %v1276_v49, %v500_v35 }
0x1527   :  { %v1278_v53 = vmul.f32 %v1277_v51, %v3831_v14 }
0x1529   :  { %3469 = vtanh.f32 %v1278_v53 }
0x1536   :  { %v3470_v57 = vpop.eup %3469 }
0x1537   :  { %v1280_v41 = vmul.f32 %v3470_v57, %v3831_v14 }
0x1539   :  { %v1281_v58 = vadd.f32 %v1280_v41, %v3853_v34 }
0x153b   :  { %1284 = vrot.lane.b32.xlu0 %v1281_v58, %s3554_s5  ;;  %v1282_v28 = vmul.f32 %v1281_v58, %v1193_v38 }
0x15ad   :  { %v1285_v59 = vpop.permute.xlu0 %1284 }
0x15ae   :  { %v1287_v15 = vmul.f32 %v1285_v59, %v1281_v58 }
0x15b0   :  { %1289 = vrot.lane.b32.xlu1 %v1287_v15, %s3555_s25 }
0x15b4   :  { %1302 = vrot.lane.b32.xlu1 %v3942_v55, %s3554_s5 }
0x1622   :  { %v1290_v56 = vpop.permute.xlu1 %1289 }
0x1623   :  { %v1292_v11 = vadd.f32 %v1290_v56, %v1282_v28 }
0x1625   :  { %3471 = vtanh.f32 %v1292_v11 }
0x1626   :  { %v1303_v35 = vpop.permute.xlu1 %1302 }
0x1627   :  { %1306 = vst.msk [vmem:[#allocation2 + $0x18] sm:$0xf0] %vm1305_vm8, %v1303_v35 }
0x1632   :  { %v3472_v16 = vpop.eup %3471 }
0x1633   :  { %1295 = vrot.lane.b32.xlu0 %v3472_v16, %s3554_s5 }
0x1637   :  { %1309 = vrot.lane.b32.xlu0 %v3970_v25, %s3554_s5 }
0x163b   :  { %1315 = vrot.lane.b32.xlu0 %v3998_v4, %s3554_s5 }
0x163f   :  { %1327 = vrot.lane.b32.xlu0 %v4053_v23, %s3554_s5 }
0x1643   :  { %1339 = vrot.lane.b32.xlu0 %v1199_v33, %s3554_s5 }
0x16a5   :  { %v1296_v55 = vpop.permute.xlu0 %1295 }
0x16a6   :  { %v1298_v63 = vmul.f32 %v1296_v55, %v1281_v58 }
0x16a8   :  { %1344 = vrot.lane.b32.xlu1 %v1298_v63, %s3555_s25 }
0x16a9   :  { %v1310_v42 = vpop.permute.xlu0 %1309 }
0x16aa   :  { %1312 = vst.msk [vmem:[#allocation2 + $0x14] sm:$0xf0] %vm1305_vm8, %v1310_v42 }
0x16ab   :  { %1338 = vst.msk [vmem:[#allocation2 + $0x18] sm:$0xf] %vm1300_vm7, %v1202_v40 }
0x16ac   :  { %1321 = vrot.lane.b32.xlu1 %v4026_v18, %s3554_s5 }
0x16ad   :  { %v1316_v25 = vpop.permute.xlu0 %1315 }
0x16ae   :  { %1318 = vst.msk [vmem:[#allocation2 + $0x10] sm:$0xf0] %vm1305_vm8, %v1316_v25 }
0x16af   :  { %1332 = vst.msk [vmem:[#allocation2 + $0x14] sm:$0xf] %vm1300_vm7, %v1103_v8 }
0x16b0   :  { %1333 = vrot.lane.b32.xlu1 %v4082_v26, %s3554_s5  ;;  %v1359_v26 = vld [vmem:[%s4743_s1 + $0x18] sm:$0xff] }
0x16b1   :  { %v1328_v4 = vpop.permute.xlu0 %1327 }
0x16b2   :  { %1330 = vst.msk [vmem:[#allocation2 + $0x8] sm:$0xf0] %vm1305_vm8, %v1328_v4  ;;  %v3393_v4 = vld [vmem:[%s4748_s6 + $0x70] ss:$8 sps:$4 sm:$0xff]  }
0x16b4   :  { %1348 = vrot.lane.b32.xlu1 %v1298_v63, %s3554_s5 }
0x16b5   :  { %v1340_v44 = vpop.permute.xlu0 %1339 }
0x16b6   :  { %1342 = vst.msk [vmem:[#allocation2] sm:$0xf0] %vm1305_vm8, %v1340_v44  ;;  %v3395_v44 = vld [vmem:[%s4748_s6 + $0x74] ss:$8 sps:$4 sm:$0xff]  }
0x171a   :  { %v1345_v23 = vpop.permute.xlu1 %1344 }
0x171b   :  { %1347 = vst.msk [vmem:[#allocation2 + $0x1c] sm:$0xf] %vm1300_vm7, %v1345_v23  ;;  %v3398_v23 = vld [vmem:[%s4748_s6 + $0x64] ss:$8 sps:$4 sm:$0xff]  }
0x171e   :  { %v1322_v18 = vpop.permute.xlu1 %1321 }
0x171f   :  { %1324 = vst.msk [vmem:[#allocation2 + $0xc] sm:$0xf0] %vm1305_vm8, %v1322_v18  ;;  %v3396_v18 = vld [vmem:[%s4748_s6 + $0x60] ss:$8 sps:$4 sm:$0xff]  }
0x1720   :  { %1326 = vst.msk [vmem:[#allocation2 + $0x10] sm:$0xf] %vm1300_vm7, %v4057_v1 }
0x1722   :  { %v1334_v2 = vpop.permute.xlu1 %1333  ;;  %v4141_v0 = vld [vmem:[#allocation2 + $0x18] sm:$0xff] }
0x1723   :  { %1336 = vst.msk [vmem:[#allocation2 + $0x4] sm:$0xf0] %vm1305_vm8, %v1334_v2  ;;  %3287 = vmatprep.subr.msk.mxu1 %vm126_vm0, %v4141_v0  ;;  %3301 = vmatprep.subr.mxu0 %v4141_v0  ;;  %v3401_v2 = vld [vmem:[%s4748_s6 + $0x54] ss:$8 sps:$4 sm:$0xff]  }
0x1724   :  { %3288 = vmatpush3.xpose.msk.msra.mxu1 %vm126_vm0, %v4141_v0  ;;  %3302 = vmatpush3.msra.mxu0 %v4141_v0 }
0x1726   :  { %v1349_v5 = vpop.permute.xlu1 %1348 }
0x1727   :  { %1351 = vst.msk [vmem:[#allocation2 - $0x4] sm:$0xf0] %vm1305_vm8, %v1349_v5  ;;  %v4151_v29 = vld [vmem:[#allocation2 + $0x10] sm:$0xff] }
0x1728   :  { %3289 = vmatprep.subr.msk.mxu1 %vm126_vm0, %v4151_v29  ;;  %3303 = vmatprep.subr.mxu0 %v4151_v29  ;;  %v3399_v5 = vld [vmem:[%s4748_s6 + $0x50] ss:$8 sps:$4 sm:$0xff]  }
0x1729   :  { %3290 = vmatpush3.xpose.msk.msra.mxu1 %vm126_vm0, %v4151_v29  ;;  %3304 = vmatpush3.msra.mxu0 %v4151_v29 }
0x172a   :  { %v4159_v1 = vld [vmem:[#allocation2 + $0x8] sm:$0xff] }
0x172b   :  { %3291 = vmatprep.subr.msk.mxu1 %vm126_vm0, %v4159_v1  ;;  %3305 = vmatprep.subr.mxu0 %v4159_v1 }
0x172c   :  { %3306 = vmatpush3.msra.mxu0 %v4159_v1 }
0x172d   :  { %3292 = vmatpush3.xpose.msk.msra.mxu1 %vm126_vm0, %v4159_v1 }
0x172e   :  { %v4167_v31 = vld [vmem:[#allocation2] sm:$0xff] }
0x172f   :  { %3293 = vmatprep.subr.msk.mxu1 %vm126_vm0, %v4167_v31  ;;  %3295 = vmatprep.mubr.msk.f32.mxu1 %vm126_vm0, %v4167_v31 }
0x1730   :  { %3307 = vmatprep.subr.mxu0 %v4167_v31 }
0x1731   :  { %3308 = vmatpush3.msra.mxu0 %v4167_v31  ;;  %3294 = vmatpush3.xpose.msk.msra.mxu1 %vm126_vm0, %v4167_v31 }
0x1732   :  { %1854 = vmatprep.subr.bf16.mxu0 %v3395_v44 }
0x1734   :  { %3296 = vmatmul.mubr.msk.f32.vlgmr.msra.gmra.mxu1 %vm126_vm0, %v4159_v1 }
0x1735   :  { %3298 = vmatprep.mubr.msk.f32.mxu1 %vm126_vm0, %v4151_v29 }
0x1738   :  { %3299 = vmatmul.mubr.msk.f32.gmra.mxu1 %vm126_vm0, %v4141_v0 }
0x1739   :  { %2012 = vmatprep.mubr.f32.mxu1 %v3552_v24 }
0x17f4   :  { %v3297_v36 = vpop.f32.mrf.mxu1 }
0x17f5   :  { %v1444_v46 = vadd.f32 %v3297_v36, %v1357_v32  ;;  %v3404_v32 = vld [vmem:[%s4748_s6 + $0x44] ss:$8 sps:$4 sm:$0xff]   ;;  %v3402_v36 = vld [vmem:[%s4748_s6 + $0x40] ss:$8 sps:$4 sm:$0xff]  }
0x17f6   :  { %v1438_v47 = vpop.f32.mrf.mxu1 }
0x17f7   :  { %v1439_v6 = vadd.f32 %v1438_v47, %v1356_v37  ;;  %v1460_v17 = vsel %vm296_vm9, %v1444_v46, -inf  ;;  %v3407_v37 = vld [vmem:[%s4748_s6 + $0x34] ss:$8 sps:$4 sm:$0xff]   ;;  %v3410_v47 = vld [vmem:[%s4748_s6 + $0x24] ss:$8 sps:$4 sm:$0xff]  }
0x17f8   :  { %1461 = vmax.xlane.f32.xlu1 %v1460_v17  ;;  %v3300_v7 = vpop.f32.mrf.mxu1  ;;  %v3413_v17 = vld [vmem:[%s4748_s6 + $0x14] ss:$8 sps:$4 sm:$0xff]  }
0x17f9   :  { %v1457_v50 = vsel %vm296_vm9, %v1439_v6, -inf  ;;  %v1454_v10 = vadd.f32 %v3300_v7, %v1359_v26  ;;  %v3411_v7 = vld [vmem:[%s4748_s6 + $0x10] ss:$8 sps:$4 sm:$0xff]   ;;  %v3419_v26 = vld [vmem:[%s4748_s6 + $0xf4] ss:$8 sps:$4 sm:$0xff]  }
0x17fa   :  { %v1448_v8 = vpop.f32.mrf.mxu1  ;;  %1458 = vmax.xlane.f32.xlu0 %v1457_v50  ;;  %v3414_v50 = vld [vmem:[%s4748_s6] ss:$8 sps:$4 sm:$0xff]  }
0x17fb   :  { %v1449_v9 = vadd.f32 %v1448_v8, %v1358_v48  ;;  %v1466_v12 = vsel %vm296_vm9, %v1454_v10, -inf  ;;  %v3416_v48 = vld [vmem:[%s4748_s6 + $0x4] ss:$8 sps:$4 sm:$0xff]   ;;  %v3417_v8 = vld [vmem:[%s4748_s6 + $0xf0] ss:$8 sps:$4 sm:$0xff]  }
0x17fd   :  { %v1463_v20 = vsel %vm296_vm9, %v1449_v9, -inf }
0x17fe   :  { %1464 = vmax.xlane.f32.xlu0 %v1463_v20  ;;  %v3425_v20 = vld [vmem:[%s4748_s6 + $0xd4] ss:$8 sps:$4 sm:$0xff]  }
0x1802   :  { %1467 = vmax.xlane.f32.xlu0 %v1466_v12  ;;  %v3423_v12 = vld [vmem:[%s4748_s6 + $0xd0] ss:$8 sps:$4 sm:$0xff]  }
0x1881   :  { %v1462_v19 = vpop.xlane.xlu1 %1461 }
0x1882   :  { %v1470_v21 = vsub.f32 %v1444_v46, %v1462_v19  ;;  %v3405_v46 = vld [vmem:[%s4748_s6 + $0x30] ss:$8 sps:$4 sm:$0xff]   ;;  %v3428_v19 = vld [vmem:[%s4748_s6 + $0xc4] ss:$8 sps:$4 sm:$0xff]  }
0x1883   :  { %v1459_v22 = vpop.xlane.xlu0 %1458 }
0x1884   :  { %v1475_v3 = vmul.f32 1.442695, %v1470_v21  ;;  %v1469_v13 = vsub.f32 %v1439_v6, %v1459_v22  ;;  %v3408_v6 = vld [vmem:[%s4748_s6 + $0x20] ss:$8 sps:$4 sm:$0xff]   ;;  %v3431_v22 = vld [vmem:[%s4748_s6 + $0xb4] ss:$8 sps:$4 sm:$0xff]  }
0x1885   :  { %v3426_v21 = vld [vmem:[%s4748_s6 + $0xc0] ss:$8 sps:$4 sm:$0xff]  }
0x1886   :  { %3473 = vpow2.f32 %v1475_v3  ;;  %v1473_v30 = vmul.f32 1.442695, %v1469_v13  ;;  %v3429_v3 = vld [vmem:[%s4748_s6 + $0xb0] ss:$8 sps:$4 sm:$0xff]   ;;  %v3434_v13 = vld [vmem:[%s4748_s6 + $0xa4] ss:$8 sps:$4 sm:$0xff]  }
0x1887   :  { %v1465_v39 = vpop.xlane.xlu0 %1464 }
0x1888   :  { %3475 = vpow2.f32 %v1473_v30  ;;  %v1471_v27 = vsub.f32 %v1449_v9, %v1465_v39  ;;  %v3422_v9 = vld [vmem:[%s4748_s6 + $0xe4] ss:$8 sps:$4 sm:$0xff]   ;;  %v3432_v30 = vld [vmem:[%s4748_s6 + $0xa0] ss:$8 sps:$4 sm:$0xff]   ;;  %v3437_v39 = vld [vmem:[%s4748_s6 + $0x94] ss:$8 sps:$4 sm:$0xff]  }
0x188a   :  { %v1477_v38 = vmul.f32 1.442695, %v1471_v27  ;;  %v3435_v27 = vld [vmem:[%s4748_s6 + $0x90] ss:$8 sps:$4 sm:$0xff]  }
0x188b   :  { %v1468_v52 = vpop.xlane.xlu0 %1467 }
0x188c   :  { %3477 = vpow2.f32 %v1477_v38  ;;  %v1472_v54 = vsub.f32 %v1454_v10, %v1468_v52  ;;  %v3420_v10 = vld [vmem:[%s4748_s6 + $0xe0] ss:$8 sps:$4 sm:$0xff]   ;;  %v3440_v52 = vld [vmem:[%s4748_s6 + $0x84] ss:$8 sps:$4 sm:$0xff]  }
0x188d   :  { %v3438_v38 = vld [vmem:[%s4748_s6 + $0x80] ss:$8 sps:$4 sm:$0xff]  }
0x188e   :  { %v1479_v33 = vmul.f32 1.442695, %v1472_v54 }
0x1890   :  { %3479 = vpow2.f32 %v1479_v33 }
0x1893   :  { %v3474_v40 = vpop.eup %3473 }
0x1894   :  { %v1484_v43 = vsel %vm296_vm9, %v3474_v40, 0.0 }
0x1895   :  { %v3476_v45 = vpop.eup %3475  ;;  %1485 = vadd.xlane.f32.xlu0 %v1484_v43 }
0x1896   :  { %v1481_v49 = vsel %vm296_vm9, %v3476_v45, 0.0 }
0x1897   :  { %1482 = vadd.xlane.f32.xlu1 %v1481_v49 }
0x1899   :  { %v3478_v51 = vpop.eup %3477 }
0x189a   :  { %v1487_v53 = vsel %vm296_vm9, %v3478_v51, 0.0 }
0x189b   :  { %1488 = vadd.xlane.f32.xlu1 %v1487_v53  ;;  %v4315_v53 = vld [vmem:[%s4749_s7 + $0x30] sm:$0xff] }
0x189d   :  { %v3480_v57 = vpop.eup %3479 }
0x189e   :  { %v1490_v41 = vsel %vm296_vm9, %v3480_v57, 0.0 }
0x189f   :  { %1491 = vadd.xlane.f32.xlu0 %v1490_v41 }
0x191e   :  { %v1486_v58 = vpop.xlane.xlu0 %1485 }
0x191f   :  { %3481 = vrcp.f32 %v1486_v58  ;;  %v4327_v58 = vld [vmem:[%s4749_s7 + $0x20] sm:$0xff] }
0x1920   :  { %v1483_v59 = vpop.xlane.xlu1 %1482 }
0x1921   :  { %3483 = vrcp.f32 %v1483_v59 }
0x1924   :  { %v1489_v15 = vpop.xlane.xlu1 %1488 }
0x1925   :  { %3485 = vrcp.f32 %v1489_v15 }
0x1928   :  { %v1492_v28 = vpop.xlane.xlu0 %1491 }
0x1929   :  { %3487 = vrcp.f32 %v1492_v28 }
0x192c   :  { %v3482_v56 = vpop.eup %3481 }
0x192d   :  { %v1498_v16 = vmul.f32 %v3482_v56, %v3474_v40  ;;  %v4337_v56 = vld [vmem:[%s4749_s7 + $0x18] sm:$0xff] }
0x192e   :  { %v3484_v11 = vpop.eup %3483 }
0x192f   :  { %v1497_v35 = vmul.f32 %v3484_v11, %v3476_v45  ;;  %v4342_v11 = vld [vmem:[%s4749_s7 + $0x10] sm:$0xff] }
0x1931   :  { %3309 = vmatprep.mubr.msk.f32.mxu0 %vm296_vm9, %v1497_v35  ;;  %v4347_v35 = vld [vmem:[%s4749_s7 + $0x8] sm:$0xff] }
0x1932   :  { %v3486_v55 = vpop.eup %3485  ;;  %3310 = vmatmul.mubr.msk.f32.vlgmr.msra.gmra.mxu0 %vm296_vm9, %v1498_v16  ;;  %v4353_v16 = vld [vmem:[%s4749_s7] sm:$0xff] }
0x1933   :  { %v1499_v63 = vmul.f32 %v3486_v55, %v3478_v51  ;;  %1855 = vmatpush1.bf16.msra.mxu0 %v3393_v4  ;;  %v4310_v51 = vld [vmem:[%s4749_s7 + $0x38] sm:$0xff] }
0x1934   :  { %1856 = vmatprep.subr.bf16.mxu0 %v3398_v23  ;;  %1972 = vmatprep.subr.mxu1 %v4310_v51 }
0x1935   :  { %3312 = vmatprep.mubr.msk.f32.mxu0 %vm296_vm9, %v1499_v63  ;;  %1973 = vmatpush1.msra.mxu1 %v4315_v53 }
0x1936   :  { %v3488_v42 = vpop.eup %3487 }
0x1937   :  { %v1500_v25 = vmul.f32 %v3488_v42, %v3480_v57  ;;  %1857 = vmatpush1.bf16.msra.mxu0 %v3396_v18  ;;  %v4320_v57 = vld [vmem:[%s4749_s7 + $0x28] sm:$0xff] }
0x1938   :  { %1858 = vmatprep.subr.bf16.mxu0 %v3401_v2  ;;  %1974 = vmatprep.subr.mxu1 %v4320_v57 }
0x1939   :  { %3313 = vmatmul.mubr.msk.f32.gmra.mxu0 %vm296_vm9, %v1500_v25  ;;  %1975 = vmatpush1.msra.mxu1 %v4327_v58 }
0x193a   :  { %1976 = vmatprep.subr.mxu1 %v4337_v56 }
0x193b   :  { %1859 = vmatpush1.bf16.msra.mxu0 %v3399_v5  ;;  %1977 = vmatpush1.msra.mxu1 %v4342_v11 }
0x193c   :  { %1860 = vmatprep.subr.bf16.mxu0 %v3404_v32  ;;  %1978 = vmatprep.subr.mxu1 %v4347_v35 }
0x193d   :  { %1979 = vmatpush1.msra.mxu1 %v4353_v16 }
0x193e   :  { %2013 = vmatmul.mubr.f32.vlgmr.msra.gmra.mxu1 %v3552_v24  ;;  %2071 = vmatprep.subr.mxu1 %v4310_v51 }
0x193f   :  { %1861 = vmatpush1.bf16.msra.mxu0 %v3402_v36  ;;  %2072 = vmatpush1.msra.mxu1 %v4315_v53 }
0x1940   :  { %1862 = vmatprep.subr.bf16.mxu0 %v3407_v37  ;;  %2111 = vmatprep.mubr.f32.mxu1 %v3552_v24 }
0x1941   :  { %2073 = vmatprep.subr.mxu1 %v4320_v57 }
0x1942   :  { %2074 = vmatpush1.msra.mxu1 %v4327_v58 }
0x1943   :  { %1863 = vmatpush1.bf16.msra.mxu0 %v3405_v46  ;;  %2075 = vmatprep.subr.mxu1 %v4337_v56 }
0x1944   :  { %1864 = vmatprep.subr.bf16.mxu0 %v3410_v47  ;;  %2076 = vmatpush1.msra.mxu1 %v4342_v11 }
0x1945   :  { %2077 = vmatprep.subr.mxu1 %v4347_v35 }
0x1946   :  { %2078 = vmatpush1.msra.mxu1 %v4353_v16 }
0x1947   :  { %1865 = vmatpush1.bf16.msra.mxu0 %v3408_v6  ;;  %2170 = vmatprep.subr.mxu1 %v4310_v51 }
0x1948   :  { %1866 = vmatprep.subr.bf16.mxu0 %v3413_v17 }
0x194b   :  { %1867 = vmatpush1.bf16.msra.mxu0 %v3411_v7 }
0x194c   :  { %1868 = vmatprep.subr.bf16.mxu0 %v3416_v48 }
0x194f   :  { %1869 = vmatpush1.bf16.msra.mxu0 %v3414_v50 }
0x1950   :  { %1870 = vmatprep.subr.bf16.mxu0 %v3419_v26 }
0x1953   :  { %1871 = vmatpush2.bf16.msra.mxu0 %v3417_v8 }
0x1954   :  { %1872 = vmatprep.subr.bf16.mxu0 %v3422_v9 }
0x1957   :  { %1873 = vmatpush2.bf16.msra.mxu0 %v3420_v10 }
0x1958   :  { %1874 = vmatprep.subr.bf16.mxu0 %v3425_v20 }
0x195b   :  { %1875 = vmatpush2.bf16.msra.mxu0 %v3423_v12 }
0x195c   :  { %1876 = vmatprep.subr.bf16.mxu0 %v3428_v19 }
0x195f   :  { %1877 = vmatpush2.bf16.msra.mxu0 %v3426_v21 }
0x1960   :  { %1878 = vmatprep.subr.bf16.mxu0 %v3431_v22  ;;  %v1682_v22 = vld [vmem:[%s4750_s8] sm:$0x3] }
0x1963   :  { %1879 = vmatpush2.bf16.msra.mxu0 %v3429_v3  ;;  %v1691_v3 = vrot.slane %v1682_v22, %v272_v62 }
0x1964   :  { %1880 = vmatprep.subr.bf16.mxu0 %v3434_v13 }
0x1967   :  { %1881 = vmatpush2.bf16.msra.mxu0 %v3432_v30 }
0x1968   :  { %1882 = vmatprep.subr.bf16.mxu0 %v3437_v39  ;;  %v1687_v39 = vrot.slane %v1682_v22, %v268_v61 }
0x196b   :  { %1883 = vmatpush2.bf16.msra.mxu0 %v3435_v27 }
0x196c   :  { %1884 = vmatprep.subr.bf16.mxu0 %v3440_v52 }
0x196f   :  { %1885 = vmatpush2.bf16.msra.mxu0 %v3438_v38 }
0x19f2   :  { %v3311_v54 = vpop.f32.mrf.mxu0 }
0x19f3   :  { %v1603_v40 = vmul.f32 %v3311_v54, %v4159_v1  ;;  %v1599_v23 = vsub.f32 %v4159_v1, %v3311_v54 }
0x19f4   :  { %v1579_v33 = vpop.f32.mrf.mxu0 }
0x19f5   :  { %v3367_v43 = vpack.i.bf16 %v3311_v54, %v1579_v33  ;;  %v1602_v45 = vmul.f32 %v1579_v33, %v4167_v31  ;;  %v1598_v18 = vsub.f32 %v4167_v31, %v1579_v33 }
0x19f7   :  { %3368 = vrot.lane.b32.xlu0 %v3367_v43, %s3554_s5  ;;  %v3362_v49 = vpack.i.bf16 %v1603_v40, %v1602_v45 }
0x19f9   :  { %3363 = vrot.lane.b32.xlu1 %v3362_v49, %s3554_s5  ;;  %v3314_v41 = vpop.f32.mrf.mxu0 }
0x19fa   :  { %v1605_v15 = vmul.f32 %v3314_v41, %v4141_v0  ;;  %v1601_v7 = vsub.f32 %v4141_v0, %v3314_v41 }
0x19fb   :  { %v1589_v59 = vpop.f32.mrf.mxu0 }
0x19fc   :  { %v1604_v28 = vmul.f32 %v1589_v59, %v4151_v29  ;;  %v3377_v63 = vpack.i.bf16 %v3314_v41, %v1589_v59  ;;  %v1600_v48 = vsub.f32 %v4151_v29, %v1589_v59 }
0x19fe   :  { %v3372_v55 = vpack.i.bf16 %v1605_v15, %v1604_v28  ;;  %v2014_v40 = vpop.f32.mrf.mxu1 }
0x1a00   :  { %3373 = vrot.lane.b32.xlu1 %v3372_v55, %s3554_s5 }
0x1a04   :  { %3378 = vrot.lane.b32.xlu1 %v3377_v63, %s3554_s5  ;;  %v2016_v63 = vpop.f32.mrf.mxu1 }
0x1a69   :  { %v3369_v42 = vpop.permute.xlu0 %3368 }
0x1a6a   :  { %v3371_v25 = vunpack.i.h.bf16 %v3369_v42  ;;  %v3370_v4 = vunpack.i.l.bf16 %v3369_v42 }
0x1a6b   :  { %v3364_v44 = vpop.permute.xlu1 %3363 }
0x1a6c   :  { %v3366_v2 = vunpack.i.h.bf16 %v3364_v44  ;;  %v3365_v5 = vunpack.i.l.bf16 %v3364_v44  ;;  %v1639_v32 = vsel %vm126_vm0, %v4159_v1, %v3371_v25  ;;  %v1638_v36 = vsel %vm126_vm0, %v4167_v31, %v3370_v4 }
0x1a6d   :  { %v1646_v6 = vpack.c.bf16 %v1639_v32, %v1638_v36  ;;  %v2019_v32 = vsel %vm56_vm12, %v2014_v40, %v2016_v63 }
0x1a6e   :  { %v1642_v37 = vsel %vm126_vm0, %v1598_v18, %v3365_v5  ;;  %v1643_v46 = vsel %vm126_vm0, %v1599_v23, %v3366_v2 }
0x1a6f   :  { %v1647_v47 = vpack.c.bf16 %v1643_v46, %v1642_v37 }
0x1a71   :  { %1886 = vmatprep.mubr.bf16.mxu0 %v1647_v47 }
0x1a72   :  { %v3374_v17 = vpop.permute.xlu1 %3373  ;;  %1887 = vmatmul.mubr.bf16.vlgmr.msra.gmra.mxu0 %v1646_v6 }
0x1a73   :  { %v3376_v50 = vunpack.i.h.bf16 %v3374_v17  ;;  %v3375_v26 = vunpack.i.l.bf16 %v3374_v17 }
0x1a75   :  { %v1644_v1 = vsel %vm126_vm0, %v1600_v48, %v3375_v26  ;;  %v1645_v8 = vsel %vm126_vm0, %v1601_v7, %v3376_v50 }
0x1a76   :  { %v3379_v31 = vpop.permute.xlu1 %3378  ;;  %v1649_v9 = vpack.c.bf16 %v1645_v8, %v1644_v1 }
0x1a77   :  { %v3381_v10 = vunpack.i.h.bf16 %v3379_v31  ;;  %v3380_v20 = vunpack.i.l.bf16 %v3379_v31 }
0x1a78   :  { %1896 = vmatprep.mubr.bf16.mxu0 %v1649_v9 }
0x1a79   :  { %v1640_v12 = vsel %vm126_vm0, %v4151_v29, %v3380_v20  ;;  %v1641_v19 = vsel %vm126_vm0, %v4141_v0, %v3381_v10 }
0x1a7a   :  { %v1648_v21 = vpack.c.bf16 %v1641_v19, %v1640_v12 }
0x1a7c   :  { %1897 = vmatmul.mubr.bf16.gmra.mxu0 %v1648_v21 }
0x1b32   :  { %v1888_v13 = vpop.f32.mrf.mxu0 }
0x1b33   :  { %v1889_v59 = vadd.f32 %v1888_v13, %v1687_v39 }
0x1b34   :  { %v1890_v30 = vpop.f32.mrf.mxu0 }
0x1b35   :  { %v1891_v27 = vadd.f32 %v1890_v30, %v1691_v3  ;;  %v1910_v36 = vrot.slane %v1889_v59, 4 }
0x1b36   :  { %v1892_v38 = vpop.f32.mrf.mxu0 }
0x1b37   :  { %v1893_v29 = vadd.f32 %v1892_v38, %v1687_v39  ;;  %v1937_v4 = vrot.slane %v1891_v27, 4 }
0x1b38   :  { %v1894_v52 = vpop.f32.mrf.mxu0 }
0x1b39   :  { %v1895_v54 = vadd.f32 %v1894_v52, %v1691_v3  ;;  %v1918_v15 = vrot.slane %v1893_v29, 4 }
0x1b3b   :  { %v1929_v45 = vrot.slane %v1895_v54, 4 }
0x1b3c   :  { %v1898_v0 = vpop.f32.mrf.mxu0 }
0x1b3d   :  { %v1899_v33 = vadd.f32 %v1898_v0, %v1687_v39 }
0x1b3e   :  { %v1900_v43 = vpop.f32.mrf.mxu0 }
0x1b3f   :  { %v1926_v49 = vrot.slane %v1899_v33, 4  ;;  %v1901_v41 = vadd.f32 %v1900_v43, %v1691_v3  ;;  %v4395_v62 = vsel %vm1907_vm10, %v1899_v33, %v1895_v54 }
0x1b40   :  { %v1902_v28 = vpop.f32.mrf.mxu0 }
0x1b41   :  { %v1921_v61 = vrot.slane %v1901_v41, 4  ;;  %v1903_v55 = vadd.f32 %v1902_v28, %v1687_v39  ;;  %v4398_v42 = vsel %vm1907_vm10, %v1893_v29, %v1901_v41  ;;  %v4401_v25 = vsel %vm1907_vm10, %v1926_v49, %v1929_v45 }
0x1b42   :  { %v1904_v44 = vpop.f32.mrf.mxu0 }
0x1b43   :  { %v1934_v23 = vrot.slane %v1903_v55, 4  ;;  %v1905_v18 = vadd.f32 %v1904_v44, %v1691_v3  ;;  %v4404_v2 = vsel %vm1907_vm10, %v1918_v15, %v1921_v61  ;;  %v4407_v5 = vsel %vm1907_vm10, %v1903_v55, %v1891_v27 }
0x1b45   :  { %v1913_v37 = vrot.slane %v1905_v18, 4  ;;  %v1908_v46 = vsel %vm1907_vm10, %v1889_v59, %v1905_v18  ;;  %v4413_v47 = vsel %vm1907_vm10, %v1934_v23, %v1937_v4 }
0x1b46   :  { %v2020_v6 = vadd.f32 %v2019_v32, %v1908_v46 }
0x1b47   :  { %v1915_v17 = vsel %vm1907_vm10, %v1910_v36, %v1913_v37 }
0x1b48   :  { %v2021_v7 = vmul.f32 %v2020_v6, %v3831_v14 }
0x1b4a   :  { %3489 = vtanh.f32 %v2021_v7 }
0x1b57   :  { %v3490_v48 = vpop.eup %3489 }
0x1b58   :  { %v2023_v50 = vmul.f32 %v3490_v48, %v3831_v14 }
0x1b5a   :  { %v2024_v26 = vadd.f32 %v2023_v50, %v3853_v34 }
0x1b5c   :  { %2027 = vrot.lane.b32.xlu0 %v2024_v26, %s3554_s5  ;;  %v2025_v31 = vmul.f32 0.0, %v2024_v26 }
0x1bce   :  { %v2028_v1 = vpop.permute.xlu0 %2027 }
0x1bcf   :  { %v2030_v8 = vmul.f32 %v2028_v1, %v2024_v26 }
0x1bd1   :  { %2032 = vrot.lane.b32.xlu1 %v2030_v8, %s3555_s25 }
0x1c43   :  { %v2033_v9 = vpop.permute.xlu1 %2032 }
0x1c44   :  { %v2035_v10 = vadd.f32 %v2033_v9, %v2025_v31 }
0x1c46   :  { %3491 = vtanh.f32 %v2035_v10 }
0x1c53   :  { %v3492_v20 = vpop.eup %3491 }
0x1c54   :  { %2038 = vrot.lane.b32.xlu0 %v3492_v20, %s3554_s5 }
0x1cc6   :  { %v2039_v12 = vpop.permute.xlu0 %2038 }
0x1cc7   :  { %v4422_v19 = vmul.f32 %v2039_v12, %v2024_v26 }
0x1cc9   :  { %2043 = vrot.lane.b32.xlu1 %v4422_v19, %s3555_s25 }
0x1d3b   :  { %v2044_v21 = vpop.permute.xlu1 %2043 }
0x1d3c   :  { %3160 = vmatmul.mubr.msk.f32.vlgmr.msra.gmra.mxu1 %vm296_vm9, %v2044_v21 }
0x1d3d   :  { %2171 = vmatpush1.msra.mxu1 %v4315_v53  ;;  %2210 = vmatprep.mubr.f32.mxu1 %v3552_v24 }
0x1d3e   :  { %2172 = vmatprep.subr.mxu1 %v4320_v57 }
0x1d3f   :  { %2173 = vmatpush1.msra.mxu1 %v4327_v58 }
0x1d40   :  { %2174 = vmatprep.subr.mxu1 %v4337_v56 }
0x1d41   :  { %2175 = vmatpush1.msra.mxu1 %v4342_v11 }
0x1d42   :  { %2176 = vmatprep.subr.mxu1 %v4347_v35 }
0x1d43   :  { %2177 = vmatpush1.msra.mxu1 %v4353_v16 }
0x1d44   :  { %2269 = vmatprep.subr.mxu1 %v4310_v51 }
0x1dfc   :  { %v2113_v22 = vpop.f32.mrf.mxu1 }
0x1dfe   :  { %v2115_v3 = vpop.f32.mrf.mxu1 }
0x1dff   :  { %v2118_v13 = vsel %vm56_vm12, %v2113_v22, %v2115_v3 }
0x1e00   :  { %v2119_v30 = vadd.f32 %v2118_v13, %v1915_v17 }
0x1e02   :  { %v2120_v39 = vmul.f32 %v2119_v30, %v3831_v14 }
0x1e04   :  { %3493 = vtanh.f32 %v2120_v39 }
0x1e11   :  { %v3494_v27 = vpop.eup %3493 }
0x1e12   :  { %v2122_v38 = vmul.f32 %v3494_v27, %v3831_v14 }
0x1e14   :  { %v2123_v29 = vadd.f32 %v2122_v38, %v3853_v34 }
0x1e16   :  { %2126 = vrot.lane.b32.xlu0 %v2123_v29, %s3554_s5  ;;  %v2124_v0 = vmul.f32 %v2123_v29, %v2035_v10 }
0x1e88   :  { %v2127_v52 = vpop.permute.xlu0 %2126 }
0x1e89   :  { %v2129_v54 = vmul.f32 %v2127_v52, %v2123_v29 }
0x1e8b   :  { %2131 = vrot.lane.b32.xlu1 %v2129_v54, %s3555_s25 }
0x1efd   :  { %v2132_v33 = vpop.permute.xlu1 %2131 }
0x1efe   :  { %v2134_v40 = vadd.f32 %v2132_v33, %v2124_v0 }
0x1f00   :  { %3495 = vtanh.f32 %v2134_v40 }
0x1f0d   :  { %v3496_v43 = vpop.eup %3495 }
0x1f0e   :  { %2137 = vrot.lane.b32.xlu0 %v3496_v43, %s3554_s5 }
0x1f80   :  { %v2138_v45 = vpop.permute.xlu0 %2137 }
0x1f81   :  { %v2140_v49 = vmul.f32 %v2138_v45, %v2123_v29 }
0x1f83   :  { %2142 = vrot.lane.b32.xlu1 %v2140_v49, %s3555_s25  ;;  %v2735_v6 = vadd.f32 %v2140_v49, %v4422_v19 }
0x1ff5   :  { %v2143_v41 = vpop.permute.xlu1 %2142 }
0x1ff6   :  { %3161 = vmatmul.mubr.msk.f32.vlgmr.msra.gmra.mxu1 %vm296_vm9, %v2143_v41 }
0x1ff7   :  { %2270 = vmatpush1.msra.mxu1 %v4315_v53  ;;  %2309 = vmatprep.mubr.f32.mxu1 %v3552_v24 }
0x1ff8   :  { %2271 = vmatprep.subr.mxu1 %v4320_v57 }
0x1ff9   :  { %2272 = vmatpush1.msra.mxu1 %v4327_v58 }
0x1ffa   :  { %2273 = vmatprep.subr.mxu1 %v4337_v56 }
0x1ffb   :  { %2274 = vmatpush1.msra.mxu1 %v4342_v11 }
0x1ffc   :  { %2275 = vmatprep.subr.mxu1 %v4347_v35 }
0x1ffd   :  { %2276 = vmatpush1.msra.mxu1 %v4353_v16 }
0x1ffe   :  { %2368 = vmatprep.subr.mxu1 %v4310_v51 }
0x20b6   :  { %v2212_v59 = vpop.f32.mrf.mxu1 }
0x20b8   :  { %v2214_v15 = vpop.f32.mrf.mxu1 }
0x20b9   :  { %v2217_v28 = vsel %vm56_vm12, %v2212_v59, %v2214_v15 }
0x20ba   :  { %v2218_v61 = vadd.f32 %v2217_v28, %v4398_v42 }
0x20bc   :  { %v2219_v55 = vmul.f32 %v2218_v61, %v3831_v14 }
0x20be   :  { %3497 = vtanh.f32 %v2219_v55 }
0x20cb   :  { %v3498_v63 = vpop.eup %3497 }
0x20cc   :  { %v2221_v4 = vmul.f32 %v3498_v63, %v3831_v14 }
0x20ce   :  { %v2222_v44 = vadd.f32 %v2221_v4, %v3853_v34 }
0x20d0   :  { %2225 = vrot.lane.b32.xlu0 %v2222_v44, %s3554_s5  ;;  %v2223_v32 = vmul.f32 %v2222_v44, %v2134_v40 }
0x2142   :  { %v2226_v23 = vpop.permute.xlu0 %2225 }
0x2143   :  { %v2228_v18 = vmul.f32 %v2226_v23, %v2222_v44 }
0x2145   :  { %2230 = vrot.lane.b32.xlu1 %v2228_v18, %s3555_s25 }
0x21b7   :  { %v2231_v36 = vpop.permute.xlu1 %2230 }
0x21b8   :  { %v2233_v37 = vadd.f32 %v2231_v36, %v2223_v32 }
0x21ba   :  { %3499 = vtanh.f32 %v2233_v37 }
0x21c7   :  { %v3500_v46 = vpop.eup %3499 }
0x21c8   :  { %2236 = vrot.lane.b32.xlu0 %v3500_v46, %s3554_s5 }
0x223a   :  { %v2237_v42 = vpop.permute.xlu0 %2236 }
0x223b   :  { %v2239_v17 = vmul.f32 %v2237_v42, %v2222_v44 }
0x223d   :  { %v2736_v7 = vadd.f32 %v2735_v6, %v2239_v17  ;;  %2241 = vrot.lane.b32.xlu1 %v2239_v17, %s3555_s25 }
0x22af   :  { %v2242_v48 = vpop.permute.xlu1 %2241 }
0x22b0   :  { %3162 = vmatmul.mubr.msk.f32.vlgmr.msra.gmra.mxu1 %vm296_vm9, %v2242_v48 }
0x22b1   :  { %2369 = vmatpush1.msra.mxu1 %v4315_v53  ;;  %2408 = vmatprep.mubr.f32.mxu1 %v3552_v24 }
0x22b2   :  { %2370 = vmatprep.subr.mxu1 %v4320_v57 }
0x22b3   :  { %2371 = vmatpush1.msra.mxu1 %v4327_v58 }
0x22b4   :  { %2372 = vmatprep.subr.mxu1 %v4337_v56 }
0x22b5   :  { %2373 = vmatpush1.msra.mxu1 %v4342_v11 }
0x22b6   :  { %2374 = vmatprep.subr.mxu1 %v4347_v35 }
0x22b7   :  { %2375 = vmatpush1.msra.mxu1 %v4353_v16 }
0x22b8   :  { %2467 = vmatprep.subr.mxu1 %v4310_v51 }
0x2370   :  { %v2311_v50 = vpop.f32.mrf.mxu1 }
0x2372   :  { %v2313_v26 = vpop.f32.mrf.mxu1 }
0x2373   :  { %v2316_v1 = vsel %vm56_vm12, %v2311_v50, %v2313_v26 }
0x2374   :  { %v2317_v8 = vadd.f32 %v2316_v1, %v4404_v2 }
0x2376   :  { %v2318_v31 = vmul.f32 %v2317_v8, %v3831_v14 }
0x2378   :  { %3501 = vtanh.f32 %v2318_v31 }
0x2385   :  { %v3502_v9 = vpop.eup %3501 }
0x2386   :  { %v2320_v10 = vmul.f32 %v3502_v9, %v3831_v14 }
0x2388   :  { %v2321_v20 = vadd.f32 %v2320_v10, %v3853_v34 }
0x238a   :  { %2324 = vrot.lane.b32.xlu0 %v2321_v20, %s3554_s5  ;;  %v2322_v21 = vmul.f32 %v2321_v20, %v2233_v37 }
0x23fc   :  { %v2325_v12 = vpop.permute.xlu0 %2324 }
0x23fd   :  { %v2327_v19 = vmul.f32 %v2325_v12, %v2321_v20 }
0x23ff   :  { %2329 = vrot.lane.b32.xlu1 %v2327_v19, %s3555_s25 }
0x2471   :  { %v2330_v22 = vpop.permute.xlu1 %2329 }
0x2472   :  { %v2332_v3 = vadd.f32 %v2330_v22, %v2322_v21 }
0x2474   :  { %3503 = vtanh.f32 %v2332_v3 }
0x2481   :  { %v3504_v13 = vpop.eup %3503 }
0x2482   :  { %2335 = vrot.lane.b32.xlu0 %v3504_v13, %s3554_s5 }
0x24f4   :  { %v2336_v2 = vpop.permute.xlu0 %2335 }
0x24f5   :  { %v2338_v30 = vmul.f32 %v2336_v2, %v2321_v20 }
0x24f7   :  { %v2737_v39 = vadd.f32 %v2736_v7, %v2338_v30  ;;  %2340 = vrot.lane.b32.xlu1 %v2338_v30, %s3555_s25 }
0x2569   :  { %v2341_v27 = vpop.permute.xlu1 %2340 }
0x256a   :  { %3163 = vmatmul.mubr.msk.f32.vlgmr.msra.gmra.mxu1 %vm296_vm9, %v2341_v27 }
0x256b   :  { %2468 = vmatpush1.msra.mxu1 %v4315_v53  ;;  %2507 = vmatprep.mubr.f32.mxu1 %v3552_v24 }
0x256c   :  { %2469 = vmatprep.subr.mxu1 %v4320_v57 }
0x256d   :  { %2470 = vmatpush1.msra.mxu1 %v4327_v58 }
0x256e   :  { %2471 = vmatprep.subr.mxu1 %v4337_v56 }
0x256f   :  { %2472 = vmatpush1.msra.mxu1 %v4342_v11 }
0x2570   :  { %2473 = vmatprep.subr.mxu1 %v4347_v35 }
0x2571   :  { %2474 = vmatpush1.msra.mxu1 %v4353_v16 }
0x2572   :  { %2566 = vmatprep.subr.mxu1 %v4310_v51 }
0x262a   :  { %v2410_v38 = vpop.f32.mrf.mxu1 }
0x262c   :  { %v2412_v29 = vpop.f32.mrf.mxu1 }
0x262d   :  { %v2415_v52 = vsel %vm56_vm12, %v2410_v38, %v2412_v29 }
0x262e   :  { %v2416_v54 = vadd.f32 %v2415_v52, %v4395_v62 }
0x2630   :  { %v2417_v0 = vmul.f32 %v2416_v54, %v3831_v14 }
0x2632   :  { %3505 = vtanh.f32 %v2417_v0 }
0x263f   :  { %v3506_v33 = vpop.eup %3505 }
0x2640   :  { %v2419_v40 = vmul.f32 %v3506_v33, %v3831_v14 }
0x2642   :  { %v2420_v43 = vadd.f32 %v2419_v40, %v3853_v34 }
0x2644   :  { %2423 = vrot.lane.b32.xlu0 %v2420_v43, %s3554_s5  ;;  %v2421_v41 = vmul.f32 %v2420_v43, %v2332_v3 }
0x26b6   :  { %v2424_v45 = vpop.permute.xlu0 %2423 }
0x26b7   :  { %v2426_v49 = vmul.f32 %v2424_v45, %v2420_v43 }
0x26b9   :  { %2428 = vrot.lane.b32.xlu1 %v2426_v49, %s3555_s25  ;;  %v2793_v49 = vld [vmem:[%s4751_s9 + $0xf0] sm:$0xff] }
0x272b   :  { %v2429_v59 = vpop.permute.xlu1 %2428 }
0x272c   :  { %v2431_v15 = vadd.f32 %v2429_v59, %v2421_v41  ;;  %v2777_v41 = vld [vmem:[%s4751_s9 + $0x70] sm:$0xff] }
0x272e   :  { %3507 = vtanh.f32 %v2431_v15 }
0x273b   :  { %v3508_v28 = vpop.eup %3507 }
0x273c   :  { %2434 = vrot.lane.b32.xlu0 %v3508_v28, %s3554_s5  ;;  %v2776_v28 = vld [vmem:[%s4751_s9 + $0x68] sm:$0xff] }
0x27ae   :  { %v2435_v62 = vpop.permute.xlu0 %2434 }
0x27af   :  { %v2437_v61 = vmul.f32 %v2435_v62, %v2420_v43 }
0x27b1   :  { %v2738_v55 = vadd.f32 %v2737_v39, %v2437_v61  ;;  %2439 = vrot.lane.b32.xlu1 %v2437_v61, %s3555_s25  ;;  %v2791_v61 = vld [vmem:[%s4751_s9 + $0xe0] sm:$0xff] }
0x2823   :  { %v2440_v63 = vpop.permute.xlu1 %2439 }
0x2824   :  { %3164 = vmatmul.mubr.msk.f32.vlgmr.msra.gmra.mxu1 %vm296_vm9, %v2440_v63  ;;  %v2790_v63 = vld [vmem:[%s4751_s9 + $0xd8] sm:$0xff] }
0x2825   :  { %2567 = vmatpush1.msra.mxu1 %v4315_v53  ;;  %2606 = vmatprep.mubr.f32.mxu1 %v3552_v24 }
0x2826   :  { %2568 = vmatprep.subr.mxu1 %v4320_v57 }
0x2827   :  { %2569 = vmatpush1.msra.mxu1 %v4327_v58 }
0x2828   :  { %2570 = vmatprep.subr.mxu1 %v4337_v56 }
0x2829   :  { %2571 = vmatpush1.msra.mxu1 %v4342_v11 }
0x282a   :  { %2572 = vmatprep.subr.mxu1 %v4347_v35 }
0x282b   :  { %2573 = vmatpush1.msra.mxu1 %v4353_v16 }
0x282c   :  { %2665 = vmatprep.subr.mxu1 %v4310_v51 }
0x28e4   :  { %v2509_v4 = vpop.f32.mrf.mxu1 }
0x28e6   :  { %v2511_v44 = vpop.f32.mrf.mxu1 }
0x28e7   :  { %v2514_v23 = vsel %vm56_vm12, %v2509_v4, %v2511_v44  ;;  %v2774_v4 = vld [vmem:[%s4751_s9 + $0x58] sm:$0xff]  ;;  %v2789_v44 = vld [vmem:[%s4751_s9 + $0xd0] sm:$0xff] }
0x28e8   :  { %v2515_v18 = vadd.f32 %v2514_v23, %v4401_v25  ;;  %v2773_v23 = vld [vmem:[%s4751_s9 + $0x50] sm:$0xff] }
0x28ea   :  { %v2516_v32 = vmul.f32 %v2515_v18, %v3831_v14  ;;  %v2788_v18 = vld [vmem:[%s4751_s9 + $0xc8] sm:$0xff] }
0x28ec   :  { %3509 = vtanh.f32 %v2516_v32  ;;  %v2772_v32 = vld [vmem:[%s4751_s9 + $0x48] sm:$0xff] }
0x28f9   :  { %v3510_v36 = vpop.eup %3509 }
0x28fa   :  { %v2518_v37 = vmul.f32 %v3510_v36, %v3831_v14  ;;  %v2787_v36 = vld [vmem:[%s4751_s9 + $0xc0] sm:$0xff] }
0x28fc   :  { %v2519_v46 = vadd.f32 %v2518_v37, %v3853_v34  ;;  %v2771_v37 = vld [vmem:[%s4751_s9 + $0x40] sm:$0xff] }
0x28fe   :  { %2522 = vrot.lane.b32.xlu0 %v2519_v46, %s3554_s5  ;;  %v2520_v51 = vmul.f32 %v2519_v46, %v2431_v15  ;;  %v2792_v15 = vld [vmem:[%s4751_s9 + $0xe8] sm:$0xff] }
0x2970   :  { %v2523_v42 = vpop.permute.xlu0 %2522 }
0x2971   :  { %v2525_v6 = vmul.f32 %v2523_v42, %v2519_v46  ;;  %v2770_v42 = vld [vmem:[%s4751_s9 + $0x38] sm:$0xff] }
0x2973   :  { %2527 = vrot.lane.b32.xlu1 %v2525_v6, %s3555_s25  ;;  %v2785_v6 = vld [vmem:[%s4751_s9 + $0xb0] sm:$0xff] }
0x29e5   :  { %v2528_v17 = vpop.permute.xlu1 %2527 }
0x29e6   :  { %v2530_v7 = vadd.f32 %v2528_v17, %v2520_v51  ;;  %v2769_v51 = vld [vmem:[%s4751_s9 + $0x30] sm:$0xff]  ;;  %v2784_v17 = vld [vmem:[%s4751_s9 + $0xa8] sm:$0xff] }
0x29e8   :  { %3511 = vtanh.f32 %v2530_v7 }
0x29f5   :  { %v3512_v48 = vpop.eup %3511 }
0x29f6   :  { %2533 = vrot.lane.b32.xlu0 %v3512_v48, %s3554_s5  ;;  %v2783_v48 = vld [vmem:[%s4751_s9 + $0xa0] sm:$0xff] }
0x2a68   :  { %v2534_v25 = vpop.permute.xlu0 %2533 }
0x2a69   :  { %v2536_v50 = vmul.f32 %v2534_v25, %v2519_v46  ;;  %v2786_v46 = vld [vmem:[%s4751_s9 + $0xb8] sm:$0xff]  ;;  %v2767_v25 = vld [vmem:[%s4751_s9 + $0x20] sm:$0xff] }
0x2a6b   :  { %v2739_v26 = vadd.f32 %v2738_v55, %v2536_v50  ;;  %2538 = vrot.lane.b32.xlu1 %v2536_v50, %s3555_s25  ;;  %v2775_v55 = vld [vmem:[%s4751_s9 + $0x60] sm:$0xff]  ;;  %v2782_v50 = vld [vmem:[%s4751_s9 + $0x98] sm:$0xff] }
0x2add   :  { %v2539_v1 = vpop.permute.xlu1 %2538 }
0x2ade   :  { %3165 = vmatmul.mubr.msk.f32.vlgmr.msra.gmra.mxu1 %vm296_vm9, %v2539_v1  ;;  %v2781_v1 = vld [vmem:[%s4751_s9 + $0x90] sm:$0xff] }
0x2adf   :  { %2666 = vmatpush1.msra.mxu1 %v4315_v53  ;;  %2705 = vmatprep.mubr.f32.mxu1 %v3552_v24 }
0x2ae0   :  { %2667 = vmatprep.subr.mxu1 %v4320_v57 }
0x2ae1   :  { %2668 = vmatpush1.msra.mxu1 %v4327_v58 }
0x2ae2   :  { %2669 = vmatprep.subr.mxu1 %v4337_v56 }
0x2ae3   :  { %2670 = vmatpush1.msra.mxu1 %v4342_v11 }
0x2ae4   :  { %2671 = vmatprep.subr.mxu1 %v4347_v35 }
0x2ae5   :  { %2672 = vmatpush1.msra.mxu1 %v4353_v16 }
0x2ae6   :  { %3315 = vmatprep.subr.mxu1 %v3552_v24 }
0x2b9e   :  { %v2608_v8 = vpop.f32.mrf.mxu1 }
0x2ba0   :  { %v2610_v31 = vpop.f32.mrf.mxu1 }
0x2ba1   :  { %v2613_v53 = vsel %vm56_vm12, %v2608_v8, %v2610_v31  ;;  %v2765_v8 = vld [vmem:[%s4751_s9 + $0x10] sm:$0xff]  ;;  %v2780_v31 = vld [vmem:[%s4751_s9 + $0x88] sm:$0xff] }
0x2ba2   :  { %v2614_v9 = vadd.f32 %v2613_v53, %v4407_v5  ;;  %v2764_v53 = vld [vmem:[%s4751_s9 + $0x8] sm:$0xff] }
0x2ba4   :  { %v2615_v57 = vmul.f32 %v2614_v9, %v3831_v14  ;;  %v2779_v9 = vld [vmem:[%s4751_s9 + $0x80] sm:$0xff] }
0x2ba6   :  { %3513 = vtanh.f32 %v2615_v57  ;;  %v2763_v57 = vld [vmem:[%s4751_s9] sm:$0xff] }
0x2bb3   :  { %v3514_v58 = vpop.eup %3513 }
0x2bb4   :  { %v2617_v56 = vmul.f32 %v3514_v58, %v3831_v14 }
0x2bb6   :  { %v2618_v11 = vadd.f32 %v2617_v56, %v3853_v34 }
0x2bb8   :  { %2621 = vrot.lane.b32.xlu0 %v2618_v11, %s3554_s5  ;;  %v2619_v10 = vmul.f32 %v2618_v11, %v2530_v7  ;;  %v2768_v7 = vld [vmem:[%s4751_s9 + $0x28] sm:$0xff] }
0x2c2a   :  { %v2622_v35 = vpop.permute.xlu0 %2621 }
0x2c2b   :  { %v2624_v16 = vmul.f32 %v2622_v35, %v2618_v11 }
0x2c2d   :  { %2626 = vrot.lane.b32.xlu1 %v2624_v16, %s3555_s25 }
0x2c9f   :  { %v2627_v20 = vpop.permute.xlu1 %2626 }
0x2ca0   :  { %v2629_v12 = vadd.f32 %v2627_v20, %v2619_v10 }
0x2ca2   :  { %3515 = vtanh.f32 %v2629_v12 }
0x2caf   :  { %v3516_v19 = vpop.eup %3515 }
0x2cb0   :  { %2632 = vrot.lane.b32.xlu0 %v3516_v19, %s3554_s5 }
0x2d22   :  { %v2633_v5 = vpop.permute.xlu0 %2632 }
0x2d23   :  { %v2635_v21 = vmul.f32 %v2633_v5, %v2618_v11 }
0x2d25   :  { %v2740_v22 = vadd.f32 %v2739_v26, %v2635_v21  ;;  %2637 = vrot.lane.b32.xlu1 %v2635_v21, %s3555_s25  ;;  %v2766_v26 = vld [vmem:[%s4751_s9 + $0x18] sm:$0xff] }
0x2d97   :  { %v2638_v3 = vpop.permute.xlu1 %2637 }
0x2d98   :  { %3166 = vmatmul.mubr.msk.f32.vlgmr.msra.gmra.mxu1 %vm296_vm9, %v2638_v3  ;;  %v2883_v3 = vld [vmem:[%s4753_s11 + $0x30] sm:$0xff] }
0x2e58   :  { %v2707_v13 = vpop.f32.mrf.mxu1 }
0x2e5a   :  { %v2709_v2 = vpop.f32.mrf.mxu1 }
0x2e5b   :  { %v2712_v30 = vsel %vm56_vm12, %v2707_v13, %v2709_v2  ;;  %v2882_v13 = vld [vmem:[%s4753_s11 + $0x28] sm:$0xff]  ;;  %v2881_v2 = vld [vmem:[%s4753_s11 + $0x20] sm:$0xff] }
0x2e5c   :  { %v2713_v39 = vadd.f32 %v2712_v30, %v4413_v47  ;;  %v2880_v30 = vld [vmem:[%s4753_s11 + $0x18] sm:$0xff] }
0x2e5e   :  { %v2714_v27 = vmul.f32 %v2713_v39, %v3831_v14  ;;  %v2879_v39 = vld [vmem:[%s4753_s11 + $0x10] sm:$0xff] }
0x2e60   :  { %3517 = vtanh.f32 %v2714_v27  ;;  %v2878_v27 = vld [vmem:[%s4753_s11 + $0x8] sm:$0xff] }
0x2e6d   :  { %v3518_v38 = vpop.eup %3517 }
0x2e6e   :  { %v2716_v29 = vmul.f32 %v3518_v38, %v3831_v14  ;;  %v2794_v14 = vld [vmem:[%s4751_s9 + $0xf8] sm:$0xff]  ;;  %v2877_v38 = vld [vmem:[%s4753_s11] sm:$0xff] }
0x2e6f   :  { %3206 = vmatprep.subr.mxu0 %v2794_v14  ;;  %v2976_v14 = vld [vmem:[%s4755_s13 + $0x30] sm:$0xff] }
0x2e70   :  { %v2717_v52 = vadd.f32 %v2716_v29, %v3853_v34  ;;  %v2778_v34 = vld [vmem:[%s4751_s9 + $0x78] sm:$0xff] }
0x2e71   :  { %3207 = vmatpush3.msra.mxu0 %v2778_v34  ;;  %v2975_v34 = vld [vmem:[%s4755_s13 + $0x28] sm:$0xff] }
0x2e72   :  { %2720 = vrot.lane.b32.xlu0 %v2717_v52, %s3554_s5  ;;  %v2718_v33 = vmul.f32 %v2717_v52, %v2629_v12  ;;  %3208 = vmatprep.subr.mxu0 %v2793_v49  ;;  %v2974_v49 = vld [vmem:[%s4755_s13 + $0x20] sm:$0xff] }
0x2e73   :  { %3209 = vmatpush3.msra.mxu0 %v2777_v41  ;;  %v2973_v41 = vld [vmem:[%s4755_s13 + $0x18] sm:$0xff] }
0x2e74   :  { %3210 = vmatprep.subr.mxu0 %v2792_v15  ;;  %v2971_v15 = vld [vmem:[%s4755_s13 + $0x8] sm:$0xff] }
0x2e75   :  { %3211 = vmatpush3.msra.mxu0 %v2776_v28  ;;  %v2970_v28 = vld [vmem:[%s4755_s13] sm:$0xff] }
0x2e76   :  { %3212 = vmatprep.subr.mxu0 %v2791_v61 }
0x2e77   :  { %3213 = vmatpush3.msra.mxu0 %v2775_v55 }
0x2e78   :  { %3214 = vmatprep.subr.mxu0 %v2790_v63 }
0x2e79   :  { %3215 = vmatpush3.msra.mxu0 %v2774_v4 }
0x2e7a   :  { %3216 = vmatprep.subr.mxu0 %v2789_v44 }
0x2e7b   :  { %3217 = vmatpush3.msra.mxu0 %v2773_v23 }
0x2e7c   :  { %3218 = vmatprep.subr.mxu0 %v2788_v18 }
0x2e7d   :  { %3219 = vmatpush3.msra.mxu0 %v2772_v32 }
0x2e7e   :  { %3220 = vmatprep.subr.mxu0 %v2787_v36 }
0x2e7f   :  { %3221 = vmatpush3.msra.mxu0 %v2771_v37 }
0x2e80   :  { %3222 = vmatprep.subr.mxu0 %v2786_v46 }
0x2e81   :  { %3223 = vmatpush3.msra.mxu0 %v2770_v42 }
0x2e82   :  { %3224 = vmatprep.subr.mxu0 %v2785_v6 }
0x2e83   :  { %3225 = vmatpush3.msra.mxu0 %v2769_v51 }
0x2e84   :  { %3226 = vmatprep.subr.mxu0 %v2784_v17 }
0x2e85   :  { %3227 = vmatpush3.msra.mxu0 %v2768_v7 }
0x2e86   :  { %3228 = vmatprep.subr.mxu0 %v2783_v48 }
0x2e87   :  { %3229 = vmatpush3.msra.mxu0 %v2767_v25 }
0x2e88   :  { %3230 = vmatprep.subr.mxu0 %v2782_v50 }
0x2e89   :  { %3231 = vmatpush3.msra.mxu0 %v2766_v26 }
0x2e8a   :  { %3232 = vmatprep.subr.mxu0 %v2781_v1 }
0x2e8b   :  { %3233 = vmatpush3.msra.mxu0 %v2765_v8 }
0x2e8c   :  { %3234 = vmatprep.subr.mxu0 %v2780_v31 }
0x2e8d   :  { %3235 = vmatpush3.msra.mxu0 %v2764_v53 }
0x2e8e   :  { %3236 = vmatprep.subr.mxu0 %v2779_v9 }
0x2e8f   :  { %3237 = vmatpush3.msra.mxu0 %v2763_v57 }
0x2ee4   :  { %v2721_v54 = vpop.permute.xlu0 %2720 }
0x2ee5   :  { %v2723_v0 = vmul.f32 %v2721_v54, %v2717_v52 }
0x2ee7   :  { %2725 = vrot.lane.b32.xlu1 %v2723_v0, %s3555_s25 }
0x2f59   :  { %v2726_v40 = vpop.permute.xlu1 %2725 }
0x2f5a   :  { %v2728_v60 = vadd.f32 %v2726_v40, %v2718_v33 }
0x2f5c   :  { %3519 = vtanh.f32 %v2728_v60 }
0x2f69   :  { %v3520_v43 = vpop.eup %3519 }
0x2f6a   :  { %2731 = vrot.lane.b32.xlu0 %v3520_v43, %s3554_s5 }
0x2fdc   :  { %v2732_v47 = vpop.permute.xlu0 %2731 }
0x2fdd   :  { %v2734_v45 = vmul.f32 %v2732_v47, %v2717_v52  ;;  %v3167_v52 = vld [vmem:[%s4752_s10] ss:$0 sm:$0xff] }
0x2fdf   :  { %v2741_v59 = vadd.f32 %v2740_v22, %v2734_v45  ;;  %v2884_v22 = vld [vmem:[%s4753_s11 + $0x38] sm:$0xff] }
0x2fe0   :  { %3316 = vmatpush3.msra.mxu1 %v2884_v22  ;;  %v2977_v45 = vld [vmem:[%s4755_s13 + $0x38] sm:$0xff] }
0x2fe1   :  { %2743 = vrot.lane.b32.xlu1 %v2741_v59, %s3555_s25  ;;  %v2746_v62 = vrot.slane %v2741_v59, 4  ;;  %3317 = vmatprep.subr.mxu1 %v3552_v24  ;;  %v2972_v59 = vld [vmem:[%s4755_s13 + $0x10] sm:$0xff] }
0x2fe2   :  { %3318 = vmatpush3.msra.mxu1 %v2883_v3 }
0x2fe3   :  { %2747 = vrot.lane.b32.xlu0 %v2746_v62, %s3554_s5  ;;  %3319 = vmatprep.subr.mxu1 %v3552_v24  ;;  %v3169_v62 = vld [vmem:[%s4754_s12] ss:$0 sm:$0xff]  ;;  %s3557_s12 = smov [#allocation3]  }
0x2fe4   :  { %3320 = vmatpush3.msra.mxu1 %v2882_v13  ;;  %s3077_s13 = sshll.u32 %s3557_s12, 4  ;;  %s3078_s13 = int_to_ptr.vmem [resolvable:$true] %s3077_s13 }
0x2fe5   :  { %3321 = vmatprep.subr.mxu1 %v3552_v24  ;;  %p3534_p1 = scmp.lt.s32.totalorder %s3078_s13, %s3078_s13 }
0x2fe6   :  { %3322 = vmatpush3.msra.mxu1 %v2881_v2 }
0x2fe7   :  { %3323 = vmatprep.subr.mxu1 %v3552_v24 }
0x2fe8   :  { %3324 = vmatpush3.msra.mxu1 %v2880_v30 }
0x2fe9   :  { %3325 = vmatprep.subr.mxu1 %v3552_v24 }
0x2fea   :  { %3326 = vmatpush3.msra.mxu1 %v2879_v39 }
0x2feb   :  { %3327 = vmatprep.subr.mxu1 %v3552_v24 }
0x2fec   :  { %3328 = vmatpush3.msra.mxu1 %v2878_v27 }
0x2fed   :  { %3329 = vmatprep.subr.mxu1 %v3552_v24 }
0x2fee   :  { %3330 = vmatpush3.msra.mxu1 %v2877_v38 }
0x2fef   :  { %3334 = vmatprep.subr.mxu1 %v3552_v24 }
0x3053   :  { %v2744_v58 = vpop.permute.xlu1 %2743 }
0x3055   :  { %v2748_v56 = vpop.permute.xlu0 %2747 }
0x3056   :  { %v2750_v11 = vsel %vm296_vm9, %v2744_v58, %v2748_v56  ;;  %vm3556_vm9 = vmmov 0  }
0x3057   :  { %v2751_v35 = vmul.f32 0.125, %v2750_v11  ;;  %3331 = vmatprep.mubr.msk.f32.mxu1 %vm3556_vm9, %v3552_v24 }
0x3059   :  { %v2756_v16 = vrot.slane %v2751_v35, 2 }
0x305b   :  { %v3382_v10 = vpack.i.bf16 %v2751_v35, %v2756_v16 }
0x305d   :  { %3383 = vrot.lane.b32.xlu1 %v3382_v10, %s3554_s5 }
0x30cf   :  { %v3384_v20 = vpop.permute.xlu1 %3383 }
0x30d0   :  { %v3386_v12 = vunpack.i.h.bf16 %v3384_v20  ;;  %v3385_v19 = vunpack.i.l.bf16 %v3384_v20 }
0x30d2   :  { %v2762_v5 = vsel %vm126_vm0, %v2756_v16, %v3385_v19  ;;  %v2761_v21 = vsel %vm126_vm0, %v2751_v35, %v3386_v12 }
0x30d3   :  { %2866 = vmatprep.mubr.f32.mxu0 %v2762_v5 }
0x30d4   :  { %2867 = vmatmul.mubr.f32.vlgmr.msra.gmra.mxu0 %v2761_v21 }
0x3194   :  { %v3238_v29 = vpop.f32.mrf.mxu0 }
0x3196   :  { %v3239_v54 = vpop.f32.mrf.mxu0 }
0x3197   :  { %v3240_v0 = vadd.f32 %v3239_v54, %v3238_v29 }
0x3199   :  { %v2869_v33 = vadd.f32 %v3240_v0, %v3167_v52 }
0x319b   :  { %v2873_v40 = vmul.f32 1.442695, %v2869_v33  ;;  %vm2872_vm11 = vcmp.gt.f32.partialorder %v2869_v33, 0.0 }
0x319d   :  { %3521 = vpow2.f32 %v2873_v40 }
0x31aa   :  { %v3522_v60 = vpop.eup %3521 }
0x31ab   :  { %v3168_v43 = vadd.f32 -1.0, %v3522_v60 }
0x31ad   :  { %v2876_v47 = vsel %vm2872_vm11, %v2869_v33, %v3168_v43 }
0x31ae   :  { %3332 = vmatmul.mubr.msk.f32.vlgmr.msra.gmra.mxu1 %vm126_vm0, %v2876_v47 }
0x31af   :  { %3350 = vmatprep.mubr.msk.f32.mxu1 %vm3556_vm9, %v3552_v24  ;;  %3335 = vmatpush3.msra.mxu1 %v2977_v45 }
0x31b0   :  { %3336 = vmatprep.subr.mxu1 %v3552_v24 }
0x31b1   :  { %3337 = vmatpush3.msra.mxu1 %v2976_v14 }
0x31b2   :  { %3338 = vmatprep.subr.mxu1 %v3552_v24 }
0x31b3   :  { %3339 = vmatpush3.msra.mxu1 %v2975_v34 }
0x31b4   :  { %3340 = vmatprep.subr.mxu1 %v3552_v24 }
0x31b5   :  { %3341 = vmatpush3.msra.mxu1 %v2974_v49 }
0x31b6   :  { %3342 = vmatprep.subr.mxu1 %v3552_v24 }
0x31b7   :  { %3343 = vmatpush3.msra.mxu1 %v2973_v41 }
0x31b8   :  { %3344 = vmatprep.subr.mxu1 %v3552_v24 }
0x31b9   :  { %3345 = vmatpush3.msra.mxu1 %v2972_v59 }
0x31ba   :  { %3346 = vmatprep.subr.mxu1 %v3552_v24 }
0x31bb   :  { %3347 = vmatpush3.msra.mxu1 %v2971_v15 }
0x31bc   :  { %3348 = vmatprep.subr.mxu1 %v3552_v24  ;;  %v3172_v24 = vld [vmem:[%s4756_s14] ss:$0 sm:$0xff]  ;;  %s3529_s14 = scalar_lea.vmem %s3078_s13, 32 }
0x31bd   :  { %3349 = vmatpush3.msra.mxu1 %v2970_v28  ;;  %p3530_p0 = scmp.ne.s32.totalorder %s3078_s13, %s3529_s14  ;;  %p3535_p2 = scmp.lt.s32.totalorder %s3529_s14, %s3529_s14 }
0x31bf   :  { %p3536_p3 = por %p3535_p2, %p3534_p1 }
0x31c1   :  { %p3537_p4 = pnand %p3536_p3, %p3530_p0 }
0x326e   :  { %v2961_v61 = vpop.f32.mrf.mxu1 }
0x326f   :  { %v2962_v55 = vadd.f32 %v3169_v62, %v2961_v61 }
0x3270   :  { %v3333_v63 = vpop.f32.mrf.mxu1 }
0x3271   :  { %v2966_v4 = vmul.f32 1.442695, %v2962_v55  ;;  %vm2965_vm12 = vcmp.gt.f32.partialorder %v2962_v55, 0.0 }
0x3273   :  { %3523 = vpow2.f32 %v2966_v4 }
0x3280   :  { %v3524_v44 = vpop.eup %3523 }
0x3281   :  { %v3171_v23 = vadd.f32 -1.0, %v3524_v44 }
0x3283   :  { %v2969_v18 = vsel %vm2965_vm12, %v2962_v55, %v3171_v23 }
0x3284   :  { %3351 = vmatmul.mubr.msk.f32.vlgmr.msra.gmra.mxu1 %vm126_vm0, %v2969_v18 }
0x3344   :  { %v3054_v32 = vpop.f32.mrf.mxu1 }
0x3345   :  { %v3055_v36 = vadd.f32 %v3172_v24, %v3054_v32 }
0x3346   :  { %v3352_v37 = vpop.f32.mrf.mxu1 }
0x3347   :  { %v3059_v46 = vsel %vm3058_vm13, %v3055_v36, -inf }
0x3348   :  { %3060 = vmax.xlane.f32.xlu0 %v3059_v46 }
0x33d1   :  { %v3061_v42 = vpop.xlane.xlu0 %3060 }
0x33d2   :  { %v3062_v6 = vsub.f32 %v3055_v36, %v3061_v42 }
0x33d4   :  { %v3063_v51 = vmul.f32 1.442695, %v3062_v6 }
0x33d6   :  { %3525 = vpow2.f32 %v3063_v51 }
0x33e3   :  { %v3526_v17 = vpop.eup %3525 }
0x33e4   :  { %v3065_v7 = vsel %vm3058_vm13, %v3526_v17, 0.0 }
0x33e5   :  { %3066 = vadd.xlane.f32.xlu1 %v3065_v7 }
0x346e   :  { %v3067_v48 = vpop.xlane.xlu1 %3066 }
0x346f   :  { %3527 = vrcp.f32 %v3067_v48 }
0x347c   :  { %v3528_v25 = vpop.eup %3527 }
0x347d   :  { %v3069_v50 = vmul.f32 %v3528_v25, %v3526_v17 }
0x347f   :  { %3070 = vst.msk [vmem:[#allocation3] sm:$0x3] %vm3058_vm13, %v3069_v50 }
0x3480   :  { %3540 = shalt.err (!%p3537_p4)
}
0x3481   :  { %3080 = dma.vmem_to_hbm [thread:$0]  %s3078_s13, 32, %s4757_s15, [#allocation4]  }
0x3482   :  { %3549 = dma.done.wait [#allocation4], 32  }
0x3483   :  { %3550 = vsyncadd [#allocation4], 4294967264 }
0x3484   :  { %3084 = vsyncpa [#allocation4], 1 }

</bundles_post_ra>
